<compile_context>
chip_gen: v5e
topology: v5e:2x2
jax: 0.10.0
libtpu: 0.0.40
codegen_flags: <defaults>
</compile_context>

<pallas_src>
import functools

import jax
import jax.numpy as jnp
from jax.experimental import pallas as pl
from jax.experimental.pallas import tpu as pltpu


# ------------------------------- Pallas kernel -------------------------------

def _sra_fused_kernel(q_ref, kv_ref, wL_ref, bL_ref, wsr_ref, bsr_ref,
                      ln_g_ref, ln_b_ref, w2f_ref, b2_ref, o_ref, *, scale):
    f32 = jnp.float32
    bb, N, C = q_ref.shape
    n_kv2 = kv_ref.shape[1]          # 2 * Nr  (key rows stacked on value rows)
    nr = n_kv2 // 2
    hd = wL_ref.shape[1]
    cdt = q_ref.dtype                # compute dtype for MXU operands (bf16)

    # ---- SR on [key ; value] rows in one pass (one matmul + one LayerNorm) --
    kv2d = kv_ref[...].reshape(bb * n_kv2, kv_ref.shape[2])      # (bb*2Nr, R2*C)
    h = jnp.dot(kv2d, wsr_ref[...], preferred_element_type=f32) + bsr_ref[...]
    mu = jnp.mean(h, axis=-1, keepdims=True)
    var = jnp.mean(jnp.square(h - mu), axis=-1, keepdims=True)
    hn = (h - mu) * jax.lax.rsqrt(var + 1e-5) * ln_g_ref[...] + ln_b_ref[...]

    # ---- shared L projection of [q rows ; SR(k) rows ; SR(v) rows] at once --
    q2d = q_ref[...].reshape(bb * N, C)
    rows = jnp.concatenate([q2d, hn.astype(cdt)], axis=0)        # (bb*(N+2Nr), C)
    proj = jnp.dot(rows, wL_ref[...], preferred_element_type=f32) + bL_ref[...]

    q_L = proj[:bb * N].reshape(bb, N, hd)                       # (bb, N,  hd) f32
    kv_L = proj[bb * N:].reshape(bb, n_kv2, hd)                  # (bb, 2Nr, hd)
    k_L = kv_L[:, :nr, :]
    v_L = kv_L[:, nr:, :]

    # ---- attention: scores (bb, N, Nr); torch softmax(dim=1) == query axis --
    s = jnp.einsum('bqd,bkd->bqk', q_L.astype(cdt), k_L.astype(cdt),
                   preferred_element_type=f32) * scale           # (bb, N, Nr)
    m = jnp.max(s, axis=1, keepdims=True)
    e = jnp.exp(s - m)
    p = e * pl.reciprocal(jnp.sum(e, axis=1, keepdims=True), approx=True)

    ai = jnp.einsum('bqk,bkd->bqd', p.astype(cdt), v_L.astype(cdt),
                    preferred_element_type=f32)                  # (bb, N, hd)

    # ---- L2 with the head replication folded into an (hd, C) weight ---------
    out = jnp.dot(ai.reshape(bb * N, hd).astype(cdt), w2f_ref[...],
                  preferred_element_type=f32) + b2_ref[...]      # (bb*N, C)
    o_ref[...] = out.reshape(bb, N, C)


# ------------------------------ kernel wrapper --------------------------------

def _pick_batch_block(batch):
    """Whole batch in one grid step on single-TC chips; split across the two
    TensorCores on megacore-style chips (v7x / v4 / v5p)."""
    try:
        kind = jax.devices()[0].device_kind.lower()
    except Exception:
        kind = ""
    multi_tc = any(tag in kind for tag in ("v7", "v4", "v5p"))
    if multi_tc and batch >= 2 and batch % 2 == 0:
        return batch // 2
    return batch


def sra_attention_forward(params, query, key, value, *, num_heads,
                          reduction_ratio, batch_block=None):
    """SRAttention.forward(query, key, value); q/k/v: (B, N, C), N = H*W."""
    B, N, C = query.shape
    hd = C // num_heads
    R2 = reduction_ratio ** 2
    assert N % R2 == 0, "H*W must be divisible by reduction_ratio**2"
    Nr = N // R2

    if batch_block is None:
        batch_block = _pick_batch_block(B)
    assert B % batch_block == 0
    nb = B // batch_block

    cdt = jnp.bfloat16
    # SR's torch.reshape is a free row-major collapse; stack key rows on value
    # rows so the kernel runs the SR matmul + LayerNorm exactly once.
    k_red = key.reshape(B, Nr, R2 * C)
    v_red = value.reshape(B, Nr, R2 * C)
    kv_red = jnp.concatenate([k_red, v_red], axis=1).astype(cdt)   # (B, 2Nr, R2C)
    q_c = query.astype(cdt)

    # Every head produces an identical Ai (shared L / SR), so
    # L2(concat([Ai]*heads)) == Ai @ sum_h W2_rows[h] + b2.  Fold once here.
    w2_folded = params["w2"].reshape(num_heads, hd, C).sum(axis=0)  # (hd, C)

    kern = functools.partial(_sra_fused_kernel, scale=1.0 / (hd ** 0.5))

    def _w(shape):
        # Grid-invariant (whole-array) weight block resident in VMEM.
        return pl.BlockSpec(shape, lambda g: (0,) * len(shape))

    return pl.pallas_call(
        kern,
        out_shape=jax.ShapeDtypeStruct((B, N, C), jnp.float32),
        grid=(nb,),
        in_specs=[
            pl.BlockSpec((batch_block, N, C), lambda g: (g, 0, 0)),        # q
            pl.BlockSpec((batch_block, 2 * Nr, R2 * C), lambda g: (g, 0, 0)),  # [k;v] reduced
            _w((C, hd)),        # L weight
            _w((1, hd)),        # L bias
            _w((R2 * C, C)),    # SR linear weight
            _w((1, C)),         # SR linear bias
            _w((1, C)),         # SR LayerNorm gamma
            _w((1, C)),         # SR LayerNorm beta
            _w((hd, C)),        # head-folded L2 weight
            _w((1, C)),         # L2 bias
        ],
        out_specs=pl.BlockSpec((batch_block, N, C), lambda g: (g, 0, 0)),
        compiler_params=pltpu.CompilerParams(
            dimension_semantics=("parallel",)),
    )(q_c, kv_red,
      params["wL"].astype(cdt), params["bL"].reshape(1, hd),
      params["wsr"].astype(cdt), params["bsr"].reshape(1, C),
      params["gamma"].reshape(1, C), params["beta"].reshape(1, C),
      w2_folded.astype(cdt), params["b2"].reshape(1, C))


# ------------------------------ pure-JAX reference ----------------------------

def sra_reference(params, query, key, value, *, num_heads, reduction_ratio):
    B, N, C = query.shape
    hd = C // num_heads
    R2 = reduction_ratio ** 2
    Nr = N // R2

    def sr(x):
        r = x.reshape(B, Nr, R2 * C)
        h = r @ params["wsr"] + params["bsr"]
        mu = h.mean(-1, keepdims=True)
        var = ((h - mu) ** 2).mean(-1, keepdims=True)
        return (h - mu) / jnp.sqrt(var + 1e-5) * params["gamma"] + params["beta"]

    L = lambda x: x @ params["wL"] + params["bL"]
    qi, srk, srv = L(query), L(sr(key)), L(sr(value))
    s = jnp.einsum('bnd,bmd->bnm', qi, srk) / (hd ** 0.5)
    p = jax.nn.softmax(s, axis=1)                     # torch softmax(dim=1)
    A = jnp.einsum('bnm,bmd->bnd', p, srv)
    SRA = jnp.concatenate([A] * num_heads, axis=2)
    return SRA @ params["w2"] + params["b2"]


# ------------------------------ parameter init --------------------------------

def _init_linear(key, fan_in, fan_out):
    # PyTorch nn.Linear default init, stored in (in, out) layout.
    k1, k2 = jax.random.split(key)
    bound = 1.0 / (fan_in ** 0.5)
    w = jax.random.uniform(k1, (fan_in, fan_out), jnp.float32, -bound, bound)
    b = jax.random.uniform(k2, (fan_out,), jnp.float32, -bound, bound)
    return w, b


def init_sra_params(key, channels, num_heads, reduction_ratio):
    hd = channels // num_heads
    R2 = reduction_ratio ** 2
    ks = jax.random.split(key, 3)
    wL, bL = _init_linear(ks[0], channels, hd)               # SRAttention.L
    wsr, bsr = _init_linear(ks[1], R2 * channels, channels)  # SR.linear_projection
    w2, b2 = _init_linear(ks[2], channels, channels)         # SRAttention.L2
    return dict(wL=wL, bL=bL, wsr=wsr, bsr=bsr,
                gamma=jnp.ones((channels,), jnp.float32),    # SR.norm
                beta=jnp.zeros((channels,), jnp.float32),
                w2=w2, b2=b2)


# ------------------------------------ main -------------------------------------

if __name__ == "__main__":
    root = jax.random.PRNGKey(0)
    kq, kk, kv, kp = jax.random.split(root, 4)

    # SRAttention(num_heads=2, channels=64, height=16, width=16,
    #             reduction_ratio=4, batch_size=2)
    B, C, H, W = 2, 64, 16, 16
    num_heads, R = 2, 4
    N = H * W                                   # 256 tokens, Nr = 16

    params = init_sra_params(kp, C, num_heads, R)
    query = jax.random.normal(kq, (B, N, C), jnp.float32)
    key_t = jax.random.normal(kk, (B, N, C), jnp.float32)
    value = jax.random.normal(kv, (B, N, C), jnp.float32)

    fwd = jax.jit(functools.partial(sra_attention_forward,
                                    num_heads=num_heads, reduction_ratio=R))
    out = jax.block_until_ready(fwd(params, query, key_t, value))

    assert out.shape == (B, N, C), out.shape
    assert bool(jnp.all(jnp.isfinite(out)))

    # Loose tolerance: bf16 MXU operands + approx-reciprocal softmax vs f32 ref.
    ref = sra_reference(params, query, key_t, value,
                        num_heads=num_heads, reduction_ratio=R)
    max_err = float(jnp.max(jnp.abs(out - ref)))
    assert max_err < 7.5e-2, f"max abs err vs reference: {max_err}"
    print("KERNEL_OK")
</pallas_src>

<mosaic_0001>
module attributes {stable_mosaic.version = 11 : i64} {
  func.func @_sra_fused_kernel(%arg0: i32, %arg1: memref<2x256x64xbf16, #tpu.memory_space<vmem>>, %arg2: memref<2x32x1024xbf16, #tpu.memory_space<vmem>>, %arg3: memref<64x32xbf16, #tpu.memory_space<vmem>>, %arg4: memref<1x32xf32, #tpu.memory_space<vmem>>, %arg5: memref<1024x64xbf16, #tpu.memory_space<vmem>>, %arg6: memref<1x64xf32, #tpu.memory_space<vmem>>, %arg7: memref<1x64xf32, #tpu.memory_space<vmem>>, %arg8: memref<1x64xf32, #tpu.memory_space<vmem>>, %arg9: memref<32x64xbf16, #tpu.memory_space<vmem>>, %arg10: memref<1x64xf32, #tpu.memory_space<vmem>>, %arg11: memref<2x256x64xf32, #tpu.memory_space<vmem>>) attributes {dimension_semantics = [#tpu.dimension_semantics<parallel>], iteration_bounds = array<i64: 1>, scalar_prefetch = 0 : i64, scratch_operands = 0 : i64, tpu.core_type = #tpu.core_type<tc>, window_params = [{transform_indices = @transform_0, window_bounds = array<i64: 2, 256, 64>}, {transform_indices = @transform_1, window_bounds = array<i64: 2, 32, 1024>}, {pipeline_mode = #tpu.pipeline_mode<synchronous>, transform_indices = @transform_2, window_bounds = array<i64: 64, 32>}, {pipeline_mode = #tpu.pipeline_mode<synchronous>, transform_indices = @transform_3, window_bounds = array<i64: 1, 32>}, {pipeline_mode = #tpu.pipeline_mode<synchronous>, transform_indices = @transform_4, window_bounds = array<i64: 1024, 64>}, {pipeline_mode = #tpu.pipeline_mode<synchronous>, transform_indices = @transform_5, window_bounds = array<i64: 1, 64>}, {pipeline_mode = #tpu.pipeline_mode<synchronous>, transform_indices = @transform_6, window_bounds = array<i64: 1, 64>}, {pipeline_mode = #tpu.pipeline_mode<synchronous>, transform_indices = @transform_7, window_bounds = array<i64: 1, 64>}, {pipeline_mode = #tpu.pipeline_mode<synchronous>, transform_indices = @transform_8, window_bounds = array<i64: 32, 64>}, {pipeline_mode = #tpu.pipeline_mode<synchronous>, transform_indices = @transform_9, window_bounds = array<i64: 1, 64>}, {transform_indices = @transform_10, window_bounds = array<i64: 2, 256, 64>}]} {
    %c0 = arith.constant 0 : index
    %c0_0 = arith.constant 0 : index
    %c0_1 = arith.constant 0 : index
    %0 = vector.load %arg2[%c0, %c0_0, %c0_1] : memref<2x32x1024xbf16, #tpu.memory_space<vmem>>, vector<2x32x1024xbf16>
    %1 = vector.shape_cast %0 : vector<2x32x1024xbf16> to vector<64x1024xbf16>
    %c0_2 = arith.constant 0 : index
    %c0_3 = arith.constant 0 : index
    %2 = vector.load %arg5[%c0_2, %c0_3] : memref<1024x64xbf16, #tpu.memory_space<vmem>>, vector<1024x64xbf16>
    %cst = arith.constant dense<0.000000e+00> : vector<64x64xf32>
    %3 = tpu.matmul %1, %2, %cst {dimension_numbers = #tpu.dot_dimension_numbers<[1], [0], [0], [1], [0, 0, 1, 1], [], []>} : vector<64x1024xbf16>, vector<1024x64xbf16>, vector<64x64xf32> -> vector<64x64xf32>
    %c0_4 = arith.constant 0 : index
    %c0_5 = arith.constant 0 : index
    %4 = vector.load %arg6[%c0_4, %c0_5] : memref<1x64xf32, #tpu.memory_space<vmem>>, vector<1x64xf32>
    %5 = vector.broadcast %4 : vector<1x64xf32> to vector<64x64xf32>
    %6 = arith.addf %3, %5 : vector<64x64xf32>
    %cst_6 = arith.constant dense<0.000000e+00> : vector<64xf32>
    %7 = vector.multi_reduction <add>, %6, %cst_6 [1] : vector<64x64xf32> to vector<64xf32>
    %8 = vector.shape_cast %7 : vector<64xf32> to vector<64x1xf32>
    %cst_7 = arith.constant 6.400000e+01 : f32
    %9 = vector.broadcast %cst_7 : f32 to vector<64x1xf32>
    %10 = arith.divf %8, %9 : vector<64x1xf32>
    %11 = vector.broadcast %10 : vector<64x1xf32> to vector<64x64xf32>
    %12 = arith.subf %6, %11 : vector<64x64xf32>
    %13 = arith.mulf %12, %12 : vector<64x64xf32>
    %cst_8 = arith.constant dense<0.000000e+00> : vector<64xf32>
    %14 = vector.multi_reduction <add>, %13, %cst_8 [1] : vector<64x64xf32> to vector<64xf32>
    %15 = vector.shape_cast %14 : vector<64xf32> to vector<64x1xf32>
    %cst_9 = arith.constant 6.400000e+01 : f32
    %16 = vector.broadcast %cst_9 : f32 to vector<64x1xf32>
    %17 = arith.divf %15, %16 : vector<64x1xf32>
    %18 = vector.broadcast %10 : vector<64x1xf32> to vector<64x64xf32>
    %19 = arith.subf %6, %18 : vector<64x64xf32>
    %cst_10 = arith.constant 9.99999974E-6 : f32
    %20 = vector.broadcast %cst_10 : f32 to vector<64x1xf32>
    %21 = arith.addf %17, %20 : vector<64x1xf32>
    %22 = math.rsqrt %21 : vector<64x1xf32>
    %23 = vector.broadcast %22 : vector<64x1xf32> to vector<64x64xf32>
    %24 = arith.mulf %19, %23 : vector<64x64xf32>
    %c0_11 = arith.constant 0 : index
    %c0_12 = arith.constant 0 : index
    %25 = vector.load %arg7[%c0_11, %c0_12] : memref<1x64xf32, #tpu.memory_space<vmem>>, vector<1x64xf32>
    %26 = vector.broadcast %25 : vector<1x64xf32> to vector<64x64xf32>
    %27 = arith.mulf %24, %26 : vector<64x64xf32>
    %c0_13 = arith.constant 0 : index
    %c0_14 = arith.constant 0 : index
    %28 = vector.load %arg8[%c0_13, %c0_14] : memref<1x64xf32, #tpu.memory_space<vmem>>, vector<1x64xf32>
    %29 = vector.broadcast %28 : vector<1x64xf32> to vector<64x64xf32>
    %30 = arith.addf %27, %29 : vector<64x64xf32>
    %c0_15 = arith.constant 0 : index
    %c0_16 = arith.constant 0 : index
    %c0_17 = arith.constant 0 : index
    %31 = vector.load %arg1[%c0_15, %c0_16, %c0_17] : memref<2x256x64xbf16, #tpu.memory_space<vmem>>, vector<2x256x64xbf16>
    %32 = vector.shape_cast %31 : vector<2x256x64xbf16> to vector<512x64xbf16>
    %33 = arith.truncf %30 : vector<64x64xf32> to vector<64x64xbf16>
    %34 = tpu.concatenate %32, %33 in 0 : vector<512x64xbf16>, vector<64x64xbf16> -> vector<576x64xbf16>
    %c0_18 = arith.constant 0 : index
    %c0_19 = arith.constant 0 : index
    %35 = vector.load %arg3[%c0_18, %c0_19] : memref<64x32xbf16, #tpu.memory_space<vmem>>, vector<64x32xbf16>
    %cst_20 = arith.constant dense<0.000000e+00> : vector<576x32xf32>
    %36 = tpu.matmul %34, %35, %cst_20 {dimension_numbers = #tpu.dot_dimension_numbers<[1], [0], [0], [1], [0, 0, 1, 1], [], []>} : vector<576x64xbf16>, vector<64x32xbf16>, vector<576x32xf32> -> vector<576x32xf32>
    %c0_21 = arith.constant 0 : index
    %c0_22 = arith.constant 0 : index
    %37 = vector.load %arg4[%c0_21, %c0_22] : memref<1x32xf32, #tpu.memory_space<vmem>>, vector<1x32xf32>
    %38 = vector.broadcast %37 : vector<1x32xf32> to vector<576x32xf32>
    %39 = arith.addf %36, %38 : vector<576x32xf32>
    %40 = vector.extract_strided_slice %39 {offsets = [0, 0], sizes = [512, 32], strides = [1, 1]} : vector<576x32xf32> to vector<512x32xf32>
    %41 = vector.shape_cast %40 : vector<512x32xf32> to vector<2x256x32xf32>
    %42 = vector.extract_strided_slice %39 {offsets = [512, 0], sizes = [64, 32], strides = [1, 1]} : vector<576x32xf32> to vector<64x32xf32>
    %43 = vector.shape_cast %42 : vector<64x32xf32> to vector<2x32x32xf32>
    %44 = vector.extract_strided_slice %43 {offsets = [0, 0, 0], sizes = [2, 16, 32], strides = [1, 1, 1]} : vector<2x32x32xf32> to vector<2x16x32xf32>
    %45 = vector.extract_strided_slice %43 {offsets = [0, 16, 0], sizes = [2, 16, 32], strides = [1, 1, 1]} : vector<2x32x32xf32> to vector<2x16x32xf32>
    %46 = arith.truncf %41 : vector<2x256x32xf32> to vector<2x256x32xbf16>
    %47 = arith.truncf %44 : vector<2x16x32xf32> to vector<2x16x32xbf16>
    "tpu.trace_start"() <{level = 10 : i32, message = "bqd,bkd->bqk"}> : () -> ()
    %cst_23 = arith.constant dense<0.000000e+00> : vector<2x256x16xf32>
    %48 = tpu.matmul %46, %47, %cst_23 {dimension_numbers = #tpu.dot_dimension_numbers<[2], [2], [1], [1], [0, 0, 0, 1, 1, 1], [0], [0]>} : vector<2x256x32xbf16>, vector<2x16x32xbf16>, vector<2x256x16xf32> -> vector<2x256x16xf32>
    "tpu.trace_stop"() : () -> ()
    %cst_24 = arith.constant 0.176776692 : f32
    %49 = vector.broadcast %cst_24 : f32 to vector<2x256x16xf32>
    %50 = arith.mulf %48, %49 : vector<2x256x16xf32>
    %cst_25 = arith.constant dense<0xFF800000> : vector<2x16xf32>
    %51 = vector.multi_reduction <maximumf>, %50, %cst_25 [1] : vector<2x256x16xf32> to vector<2x16xf32>
    %52 = vector.shape_cast %51 : vector<2x16xf32> to vector<2x1x16xf32>
    %53 = vector.broadcast %52 : vector<2x1x16xf32> to vector<2x256x16xf32>
    %54 = arith.subf %50, %53 : vector<2x256x16xf32>
    %55 = math.exp %54 : vector<2x256x16xf32>
    %cst_26 = arith.constant dense<0.000000e+00> : vector<2x16xf32>
    %56 = vector.multi_reduction <add>, %55, %cst_26 [1] : vector<2x256x16xf32> to vector<2x16xf32>
    %57 = vector.shape_cast %56 : vector<2x16xf32> to vector<2x1x16xf32>
    %58 = tpu.reciprocal %57 {approx = true} : vector<2x1x16xf32> -> vector<2x1x16xf32>
    %59 = vector.broadcast %58 : vector<2x1x16xf32> to vector<2x256x16xf32>
    %60 = arith.mulf %55, %59 : vector<2x256x16xf32>
    %61 = arith.truncf %60 : vector<2x256x16xf32> to vector<2x256x16xbf16>
    %62 = arith.truncf %45 : vector<2x16x32xf32> to vector<2x16x32xbf16>
    "tpu.trace_start"() <{level = 10 : i32, message = "bqk,bkd->bqd"}> : () -> ()
    %cst_27 = arith.constant dense<0.000000e+00> : vector<2x256x32xf32>
    %63 = tpu.matmul %61, %62, %cst_27 {dimension_numbers = #tpu.dot_dimension_numbers<[2], [1], [1], [2], [0, 0, 0, 1, 1, 2], [0], [0]>} : vector<2x256x16xbf16>, vector<2x16x32xbf16>, vector<2x256x32xf32> -> vector<2x256x32xf32>
    "tpu.trace_stop"() : () -> ()
    %64 = vector.shape_cast %63 : vector<2x256x32xf32> to vector<512x32xf32>
    %65 = arith.truncf %64 : vector<512x32xf32> to vector<512x32xbf16>
    %c0_28 = arith.constant 0 : index
    %c0_29 = arith.constant 0 : index
    %66 = vector.load %arg9[%c0_28, %c0_29] : memref<32x64xbf16, #tpu.memory_space<vmem>>, vector<32x64xbf16>
    %cst_30 = arith.constant dense<0.000000e+00> : vector<512x64xf32>
    %67 = tpu.matmul %65, %66, %cst_30 {dimension_numbers = #tpu.dot_dimension_numbers<[1], [0], [0], [1], [0, 0, 1, 1], [], []>} : vector<512x32xbf16>, vector<32x64xbf16>, vector<512x64xf32> -> vector<512x64xf32>
    %c0_31 = arith.constant 0 : index
    %c0_32 = arith.constant 0 : index
    %68 = vector.load %arg10[%c0_31, %c0_32] : memref<1x64xf32, #tpu.memory_space<vmem>>, vector<1x64xf32>
    %69 = vector.broadcast %68 : vector<1x64xf32> to vector<512x64xf32>
    %70 = arith.addf %67, %69 : vector<512x64xf32>
    %71 = vector.shape_cast %70 : vector<512x64xf32> to vector<2x256x64xf32>
    %c0_33 = arith.constant 0 : index
    %c0_34 = arith.constant 0 : index
    %c0_35 = arith.constant 0 : index
    %72 = vector.load %arg11[%c0_33, %c0_34, %c0_35] : memref<2x256x64xf32, #tpu.memory_space<vmem>>, vector<2x256x64xf32>
    tpu.vector_store %arg11[%c0_33, %c0_34, %c0_35], %71 {strides = array<i32>} : memref<2x256x64xf32, #tpu.memory_space<vmem>>, vector<2x256x64xf32>,
    return
  }
  func.func @transform_0(%arg0: i32) -> (i32, i32, i32) {
    %c0_i32 = arith.constant 0 : i32
    %c0_i32_0 = arith.constant 0 : i32
    %c0_i32_1 = arith.constant 0 : i32
    return %arg0, %c0_i32, %c0_i32_0 : i32, i32, i32
  }
  func.func @transform_1(%arg0: i32) -> (i32, i32, i32) {
    %c0_i32 = arith.constant 0 : i32
    %c0_i32_0 = arith.constant 0 : i32
    %c0_i32_1 = arith.constant 0 : i32
    return %arg0, %c0_i32, %c0_i32_0 : i32, i32, i32
  }
  func.func @transform_2(%arg0: i32) -> (i32, i32) {
    %c0_i32 = arith.constant 0 : i32
    %c0_i32_0 = arith.constant 0 : i32
    %c0_i32_1 = arith.constant 0 : i32
    return %c0_i32, %c0_i32_0 : i32, i32
  }
  func.func @transform_3(%arg0: i32) -> (i32, i32) {
    %c0_i32 = arith.constant 0 : i32
    %c0_i32_0 = arith.constant 0 : i32
    %c0_i32_1 = arith.constant 0 : i32
    return %c0_i32, %c0_i32_0 : i32, i32
  }
  func.func @transform_4(%arg0: i32) -> (i32, i32) {
    %c0_i32 = arith.constant 0 : i32
    %c0_i32_0 = arith.constant 0 : i32
    %c0_i32_1 = arith.constant 0 : i32
    return %c0_i32, %c0_i32_0 : i32, i32
  }
  func.func @transform_5(%arg0: i32) -> (i32, i32) {
    %c0_i32 = arith.constant 0 : i32
    %c0_i32_0 = arith.constant 0 : i32
    %c0_i32_1 = arith.constant 0 : i32
    return %c0_i32, %c0_i32_0 : i32, i32
  }
  func.func @transform_6(%arg0: i32) -> (i32, i32) {
    %c0_i32 = arith.constant 0 : i32
    %c0_i32_0 = arith.constant 0 : i32
    %c0_i32_1 = arith.constant 0 : i32
    return %c0_i32, %c0_i32_0 : i32, i32
  }
  func.func @transform_7(%arg0: i32) -> (i32, i32) {
    %c0_i32 = arith.constant 0 : i32
    %c0_i32_0 = arith.constant 0 : i32
    %c0_i32_1 = arith.constant 0 : i32
    return %c0_i32, %c0_i32_0 : i32, i32
  }
  func.func @transform_8(%arg0: i32) -> (i32, i32) {
    %c0_i32 = arith.constant 0 : i32
    %c0_i32_0 = arith.constant 0 : i32
    %c0_i32_1 = arith.constant 0 : i32
    return %c0_i32, %c0_i32_0 : i32, i32
  }
  func.func @transform_9(%arg0: i32) -> (i32, i32) {
    %c0_i32 = arith.constant 0 : i32
    %c0_i32_0 = arith.constant 0 : i32
    %c0_i32_1 = arith.constant 0 : i32
    return %c0_i32, %c0_i32_0 : i32, i32
  }
  func.func @transform_10(%arg0: i32) -> (i32, i32, i32) {
    %c0_i32 = arith.constant 0 : i32
    %c0_i32_0 = arith.constant 0 : i32
    %c0_i32_1 = arith.constant 0 : i32
    return %arg0, %c0_i32, %c0_i32_0 : i32, i32, i32
  }
}

</mosaic_0001>

<bundles_post_ra>
// kernel: sra_attention_forward.1
= control target key start
LH: loop header
LB: loop body
LE: loop exit
PB: predicated region body
PF: predicated region fallthrough
CT: control target
= control target key end

     0   :  { %vm976_vm0 = vcmask 523264   ;;  %s7341_s4 = inlined_call_operand.vmem [shape: bf16[1024,64], index: 4, kind: input, shape index: {}]   ;;  %s7342_s5 = inlined_call_operand.vmem [shape: f32[1,64], index: 5, kind: input, shape index: {}]   ;;  %s7343_s1 = inlined_call_operand.vmem [shape: bf16[2,32,1024], index: 1, kind: input, shape index: {}]   ;;  %s7344_s2 = inlined_call_operand.vmem [shape: bf16[64,32], index: 2, kind: input, shape index: {}]   ;;  %s7345_s0 = inlined_call_operand.vmem [shape: bf16[2,256,64], index: 0, kind: input, shape index: {}]   ;;  %s7346_s3 = inlined_call_operand.vmem [shape: f32[1,32], index: 3, kind: input, shape index: {}]   ;;  %s7347_s6 = inlined_call_operand.vmem [shape: f32[1,64], index: 6, kind: input, shape index: {}]   ;;  %s7348_s7 = inlined_call_operand.vmem [shape: f32[1,64], index: 7, kind: input, shape index: {}]   ;;  %s7349_s8 = inlined_call_operand.vmem [shape: bf16[32,64], index: 8, kind: input, shape index: {}]   ;;  %s7350_s9 = inlined_call_operand.vmem [shape: f32[1,64], index: 9, kind: input, shape index: {}]   ;;  %s7351_s10 = inlined_call_operand.vmem [shape: f32[2,256,64], index: 10, kind: output, shape index: {}]  }
   0x1   :  { %v4493_v0 = vld [vmem:[%s7341_s4 + $0x38] sm:$0xff]  ;;  %v4492_v1 = vld [vmem:[%s7341_s4 + $0x30] sm:$0xff]  ;;  %v4491_v6 = vld [vmem:[%s7341_s4 + $0x28] sm:$0xff] }
   0x2   :  { %744 = vmatpush.bf16.msra.mxu0 %v4493_v0  ;;  %4588 = vmatpush.bf16.msra.mxu1 %v4493_v0  ;;  %v4509_v2 = vld [vmem:[%s7341_s4 + $0xb8] sm:$0xff]  ;;  %v4508_v4 = vld [vmem:[%s7341_s4 + $0xb0] sm:$0xff]  ;;  %v4507_v7 = vld [vmem:[%s7341_s4 + $0xa8] sm:$0xff] }
   0x3   :  { %v4517_v3 = vld [vmem:[%s7341_s4 + $0xf8] sm:$0xff]  ;;  %802 = vmatpush.bf16.msra.mxu2 %v4509_v2  ;;  %v4516_v5 = vld [vmem:[%s7341_s4 + $0xf0] sm:$0xff]  ;;  %v4515_v8 = vld [vmem:[%s7341_s4 + $0xe8] sm:$0xff] }
   0x4   :  { %831 = vmatpush.bf16.msra.mxu3 %v4517_v3  ;;  %v4490_v9 = vld [vmem:[%s7341_s4 + $0x20] sm:$0xff]  ;;  %v4489_v12 = vld [vmem:[%s7341_s4 + $0x18] sm:$0xff]  ;;  %v4488_v15 = vld [vmem:[%s7341_s4 + $0x10] sm:$0xff] }
   0x5   :  { %v4506_v10 = vld [vmem:[%s7341_s4 + $0xa0] sm:$0xff]  ;;  %v4505_v13 = vld [vmem:[%s7341_s4 + $0x98] sm:$0xff]  ;;  %v4504_v16 = vld [vmem:[%s7341_s4 + $0x90] sm:$0xff] }
   0x6   :  { %745 = vmatpush.bf16.msra.mxu0 %v4492_v1  ;;  %4589 = vmatpush.bf16.msra.mxu1 %v4492_v1  ;;  %v4514_v11 = vld [vmem:[%s7341_s4 + $0xe0] sm:$0xff]  ;;  %v4513_v14 = vld [vmem:[%s7341_s4 + $0xd8] sm:$0xff]  ;;  %v4512_v17 = vld [vmem:[%s7341_s4 + $0xd0] sm:$0xff] }
   0x7   :  { %803 = vmatpush.bf16.msra.mxu2 %v4508_v4  ;;  %v4487_v18 = vld [vmem:[%s7341_s4 + $0x8] sm:$0xff]  ;;  %v4486_v20 = vld [vmem:[%s7341_s4] sm:$0xff]  ;;  %v4501_v26 = vld [vmem:[%s7341_s4 + $0x78] sm:$0xff] }
   0x8   :  { %832 = vmatpush.bf16.msra.mxu3 %v4516_v5  ;;  %v4503_v19 = vld [vmem:[%s7341_s4 + $0x88] sm:$0xff]  ;;  %v3788_v21 = vld [vmem:[%s7343_s1] sm:$0xf]  ;;  %v4525_v27 = vld [vmem:[%s7341_s4 + $0x138] sm:$0xff] }
   0x9   :  { %v4511_v22 = vld [vmem:[%s7341_s4 + $0xc8] sm:$0xff]  ;;  %v4458_v23 = vld [vmem:[%s7343_s1 + $0x1c] sm:$0xf0]  ;;  %v4500_v36 = vld [vmem:[%s7341_s4 + $0x70] sm:$0xff] }
   0xa   :  { %746 = vmatpush.bf16.msra.mxu0 %v4491_v6  ;;  %4590 = vmatpush.bf16.msra.mxu1 %v4491_v6  ;;  %v3852_v24 = vld [vmem:[%s7343_s1 + $0x80] sm:$0xf]  ;;  %v3789_v29 = vor.u32 %v4458_v23, %v3788_v21  ;;  %v3796_v31 = vld [vmem:[%s7343_s1 + $0x8] sm:$0xf]  ;;  %v4455_v34 = vld [vmem:[%s7343_s1 + $0xc] sm:$0xf] }
   0xb   :  { %804 = vmatpush.bf16.msra.mxu2 %v4507_v7  ;;  %v4474_v25 = vld [vmem:[%s7343_s1 + $0x9c] sm:$0xf0]  ;;  %v4459_v32 = vld [vmem:[%s7343_s1 + $0x24] sm:$0xf0]  ;;  %v3798_v35 = vld [vmem:[%s7343_s1 + $0x28] sm:$0xf0] }
   0xc   :  { %833 = vmatpush.bf16.msra.mxu3 %v4515_v8  ;;  %v4502_v28 = vld [vmem:[%s7341_s4 + $0x80] sm:$0xff]  ;;  %v3853_v30 = vor.u32 %v4474_v25, %v3852_v24  ;;  %v4524_v37 = vld [vmem:[%s7341_s4 + $0x130] sm:$0xff]  ;;  %v3797_v38 = vor.u32 %v4459_v32, %v3796_v31  ;;  %v3801_v39 = vor.u32 %v4455_v34, %v3798_v35  ;;  %v4499_v40 = vld [vmem:[%s7341_s4 + $0x68] sm:$0xff] }
   0xd   :  { %v4510_v33 = vld [vmem:[%s7341_s4 + $0xc0] sm:$0xff]  ;;  %v4523_v41 = vld [vmem:[%s7341_s4 + $0x128] sm:$0xff]  ;;  %v4497_v48 = vld [vmem:[%s7341_s4 + $0x58] sm:$0xff] }
   0xe   :  { %747 = vmatpush.bf16.msra.mxu0 %v4490_v9  ;;  %4591 = vmatpush.bf16.msra.mxu1 %v4490_v9  ;;  %v4498_v42 = vld [vmem:[%s7341_s4 + $0x60] sm:$0xff]  ;;  %v4521_v49 = vld [vmem:[%s7341_s4 + $0x118] sm:$0xff]  ;;  %v3828_v52 = vld [vmem:[%s7343_s1 + $0x48] sm:$0xf] }
   0xf   :  { %805 = vmatpush.bf16.msra.mxu2 %v4506_v10  ;;  %v4522_v43 = vld [vmem:[%s7341_s4 + $0x120] sm:$0xff]  ;;  %v4467_v53 = vld [vmem:[%s7343_s1 + $0x64] sm:$0xf0]  ;;  %v4463_v54 = vld [vmem:[%s7343_s1 + $0x4c] sm:$0xf] }
  0x10   :  { %834 = vmatpush.bf16.msra.mxu3 %v4514_v11  ;;  %v3820_v44 = vld [vmem:[%s7343_s1 + $0x40] sm:$0xf]  ;;  %v3830_v55 = vld [vmem:[%s7343_s1 + $0x68] sm:$0xf0]  ;;  %v4496_v56 = vld [vmem:[%s7341_s4 + $0x50] sm:$0xff]  ;;  %v3829_v58 = vor.u32 %v4467_v53, %v3828_v52 }
  0x11   :  { %v4466_v45 = vld [vmem:[%s7343_s1 + $0x5c] sm:$0xf0]  ;;  %v4520_v57 = vld [vmem:[%s7341_s4 + $0x110] sm:$0xff]  ;;  %v3833_v59 = vor.u32 %v4463_v54, %v3830_v55  ;;  %v4541_v60 = vld [vmem:[%s7341_s4 + $0x1b8] sm:$0xff] }
  0x12   :  { %748 = vmatpush.bf16.msra.mxu0 %v4489_v12  ;;  %4592 = vmatpush.bf16.msra.mxu1 %v4489_v12  ;;  %v3884_v46 = vld [vmem:[%s7343_s1 + $0xc0] sm:$0xf]  ;;  %v3821_v50 = vor.u32 %v4466_v45, %v3820_v44  ;;  %v4549_v61 = vld [vmem:[%s7341_s4 + $0x1f8] sm:$0xff]  ;;  %v4495_v62 = vld [vmem:[%s7341_s4 + $0x48] sm:$0xff] }
  0x13   :  { %806 = vmatpush.bf16.msra.mxu2 %v4505_v13  ;;  %v4482_v47 = vld [vmem:[%s7343_s1 + $0xdc] sm:$0xf0]  ;;  %v4519_v63 = vld [vmem:[%s7341_s4 + $0x108] sm:$0xff]  ;;  %v4454_v2 = vld [vmem:[%s7343_s1 + $0x4] sm:$0xf] }
  0x14   :  { %835 = vmatpush.bf16.msra.mxu3 %v4513_v14  ;;  %v3885_v51 = vor.u32 %v4482_v47, %v3884_v46  ;;  %v4494_v0 = vld [vmem:[%s7341_s4 + $0x40] sm:$0xff]  ;;  %v3804_v4 = vld [vmem:[%s7343_s1 + $0x10] sm:$0xf]  ;;  %v3860_v8 = vld [vmem:[%s7343_s1 + $0x88] sm:$0xf] }
  0x15   :  { %v4518_v1 = vld [vmem:[%s7341_s4 + $0x100] sm:$0xff]  ;;  %v4460_v5 = vld [vmem:[%s7343_s1 + $0x2c] sm:$0xf0]  ;;  %v4475_v9 = vld [vmem:[%s7343_s1 + $0xa4] sm:$0xf0] }
  0x16   :  { %749 = vmatpush.bf16.msra.mxu0 %v4488_v15  ;;  %4593 = vmatpush.bf16.msra.mxu1 %v4488_v15  ;;  %v3790_v3 = vld [vmem:[%s7343_s1 + $0x20] sm:$0xf0]  ;;  %v3805_v7 = vor.u32 %v4460_v5, %v3804_v4  ;;  %v4471_v10 = vld [vmem:[%s7343_s1 + $0x8c] sm:$0xf]  ;;  %v3861_v12 = vor.u32 %v4475_v9, %v3860_v8  ;;  %v4533_v13 = vld [vmem:[%s7341_s4 + $0x178] sm:$0xff] }
  0x17   :  { %807 = vmatpush.bf16.msra.mxu2 %v4504_v16  ;;  %v3793_v6 = vor.u32 %v4454_v2, %v3790_v3  ;;  %v3862_v11 = vld [vmem:[%s7343_s1 + $0xa8] sm:$0xf0]  ;;  %v4540_v14 = vld [vmem:[%s7341_s4 + $0x1b0] sm:$0xff]  ;;  %v4538_v21 = vld [vmem:[%s7341_s4 + $0x1a0] sm:$0xff] }
  0x18   :  { %836 = vmatpush.bf16.msra.mxu3 %v4512_v17  ;;  %v3865_v15 = vor.u32 %v4471_v10, %v3862_v11  ;;  %v4548_v16 = vld [vmem:[%s7341_s4 + $0x1f0] sm:$0xff]  ;;  %v4462_v23 = vld [vmem:[%s7343_s1 + $0x44] sm:$0xf]  ;;  %v3892_v32 = vld [vmem:[%s7343_s1 + $0xc8] sm:$0xf] }
  0x19   :  { %v4532_v17 = vld [vmem:[%s7341_s4 + $0x170] sm:$0xff]  ;;  %v3822_v24 = vld [vmem:[%s7343_s1 + $0x60] sm:$0xf0]  ;;  %v4479_v34 = vld [vmem:[%s7343_s1 + $0xcc] sm:$0xf] }
  0x1a   :  { %750 = vmatpush.bf16.msra.mxu0 %v4487_v18  ;;  %4594 = vmatpush.bf16.msra.mxu1 %v4487_v18  ;;  %v4539_v18 = vld [vmem:[%s7341_s4 + $0x1a8] sm:$0xff]  ;;  %v3836_v25 = vld [vmem:[%s7343_s1 + $0x50] sm:$0xf]  ;;  %v4534_v47 = vld [vmem:[%s7341_s4 + $0x180] sm:$0xff] }
  0x1b   :  { %808 = vmatpush.bf16.msra.mxu2 %v4503_v19  ;;  %v4547_v19 = vld [vmem:[%s7341_s4 + $0x1e8] sm:$0xff]  ;;  %v4584_v44 = vld [vmem:[%s7344_s2 + $0x10] sm:$0xff]  ;;  %v4526_v54 = vld [vmem:[%s7341_s4 + $0x140] sm:$0xff] }
  0x1c   :  { %837 = vmatpush.bf16.msra.mxu3 %v4511_v22  ;;  %v4546_v22 = vld [vmem:[%s7341_s4 + $0x1e0] sm:$0xff]  ;;  %v3894_v35 = vld [vmem:[%s7343_s1 + $0xe8] sm:$0xf0]  ;;  %v3868_v52 = vld [vmem:[%s7343_s1 + $0x90] sm:$0xf] }
  0x1d   :  { %v4543_v45 = vld [vmem:[%s7341_s4 + $0x1c8] sm:$0xff]  ;;  %v4476_v53 = vld [vmem:[%s7343_s1 + $0xac] sm:$0xf0]  ;;  %v4582_v55 = vld [vmem:[%s7344_s2] sm:$0xff] }
  0x1e   :  { %751 = vmatpush.bf16.msra.mxu0 %v4486_v20  ;;  %4595 = vmatpush.bf16.msra.mxu1 %v4486_v20  ;;  %v4531_v20 = vld [vmem:[%s7341_s4 + $0x168] sm:$0xff]  ;;  %v3900_v2 = vld [vmem:[%s7343_s1 + $0xd0] sm:$0xf]  ;;  %v4465_v8 = vld [vmem:[%s7343_s1 + $0x5c] sm:$0xf] }
  0x1f   :  { %809 = vmatpush.bf16.msra.mxu2 %v4502_v28  ;;  %v4537_v28 = vld [vmem:[%s7341_s4 + $0x198] sm:$0xff]  ;;  %v4527_v46 = vld [vmem:[%s7341_s4 + $0x148] sm:$0xff]  ;;  %v4484_v3 = vld [vmem:[%s7343_s1 + $0xec] sm:$0xf0] }
  0x20   :  { %838 = vmatpush.bf16.msra.mxu3 %v4510_v33  ;;  %v4483_v33 = vld [vmem:[%s7343_s1 + $0xe4] sm:$0xf0]  ;;  %v3901_v5 = vor.u32 %v4484_v3, %v3900_v2  ;;  %v3846_v9 = vld [vmem:[%s7343_s1 + $0x78] sm:$0xf0] }
  0x21   :  { %752 = vmatmul.bf16.vlgmr.msra.gmra.mxu0 %v3789_v29  ;;  %762 = vmatmul.bf16.vlgmr.msra.gmra.mxu1 %v3853_v30  ;;  %v4545_v29 = vld [vmem:[%s7341_s4 + $0x1d8] sm:$0xff]  ;;  %v3825_v30 = vor.u32 %v4462_v23, %v3822_v24  ;;  %v3849_v11 = vor.u32 %v4465_v8, %v3846_v9  ;;  %v3838_v23 = vld [vmem:[%s7343_s1 + $0x70] sm:$0xf0] }
  0x22   :  { %773 = vmatpush.bf16.msrb.mxu1 %v4501_v26  ;;  %860 = vmatpush.bf16.msrb.mxu0 %v4525_v27  ;;  %v4468_v26 = vld [vmem:[%s7343_s1 + $0x6c] sm:$0xf0]  ;;  %v4530_v27 = vld [vmem:[%s7341_s4 + $0x160] sm:$0xff] }
  0x23   :  { %810 = vmatmul.bf16.vlgmr.msra.gmra.mxu2 %v3797_v38  ;;  %839 = vmatmul.bf16.vlgmr.msra.gmra.mxu3 %v3801_v39  ;;  %v3837_v31 = vor.u32 %v4468_v26, %v3836_v25  ;;  %v4536_v38 = vld [vmem:[%s7341_s4 + $0x190] sm:$0xff]  ;;  %v4585_v39 = vld [vmem:[%s7344_s2 + $0x18] sm:$0xff]  ;;  %v4551_v25 = vld [vmem:[%s7345_s0 + $0x8] sm:$0xff] }
  0x24   :  { %947 = vmatpush.bf16.msrb.mxu3 %v4549_v61  ;;  %918 = vmatpush.bf16.msrb.mxu2 %v4541_v60  ;;  %v4457_v60 = vld [vmem:[%s7343_s1 + $0x1c] sm:$0xf]  ;;  %v3908_v26 = vld [vmem:[%s7343_s1 + $0xd8] sm:$0xf]  ;;  %v4556_v8 = vld [vmem:[%s7345_s0 + $0x30] sm:$0xff] }
  0x25   :  { %v3814_v61 = vld [vmem:[%s7343_s1 + $0x38] sm:$0xf0] }
  0x26   :  { %774 = vmatpush.bf16.msrb.mxu1 %v4500_v36  ;;  %861 = vmatpush.bf16.msrb.mxu0 %v4524_v37  ;;  %v3893_v36 = vor.u32 %v4483_v33, %v3892_v32  ;;  %v4529_v37 = vld [vmem:[%s7341_s4 + $0x158] sm:$0xff]  ;;  %v4472_v32 = vld [vmem:[%s7343_s1 + $0x94] sm:$0xf] }
  0x27   :  { %v3870_v33 = vld [vmem:[%s7343_s1 + $0xb0] sm:$0xf0] }
  0x28   :  { %919 = vmatpush.bf16.msrb.mxu2 %v4540_v14  ;;  %948 = vmatpush.bf16.msrb.mxu3 %v4548_v16  ;;  %v4550_v14 = vld [vmem:[%s7345_s0] sm:$0xff]  ;;  %v3876_v16 = vld [vmem:[%s7343_s1 + $0x98] sm:$0xf] }
  0x2a   :  { %775 = vmatpush.bf16.msrb.mxu1 %v4499_v40  ;;  %862 = vmatpush.bf16.msrb.mxu0 %v4523_v41  ;;  %v3897_v40 = vor.u32 %v4479_v34, %v3894_v35  ;;  %v4544_v41 = vld [vmem:[%s7341_s4 + $0x1d0] sm:$0xff]  ;;  %v3873_v34 = vor.u32 %v4472_v32, %v3870_v33 }
  0x2b   :  { %v4552_v35 = vld [vmem:[%s7345_s0 + $0x10] sm:$0xff] }
  0x2c   :  { %920 = vmatpush.bf16.msrb.mxu2 %v4539_v18  ;;  %949 = vmatpush.bf16.msrb.mxu3 %v4547_v19  ;;  %v4473_v18 = vld [vmem:[%s7343_s1 + $0x9c] sm:$0xf] }
  0x2d   :  { %v3878_v19 = vld [vmem:[%s7343_s1 + $0xb8] sm:$0xf0] }
  0x2e   :  { %776 = vmatpush.bf16.msrb.mxu1 %v4498_v42  ;;  %863 = vmatpush.bf16.msrb.mxu0 %v4522_v43  ;;  %v4528_v42 = vld [vmem:[%s7341_s4 + $0x150] sm:$0xff]  ;;  %v4535_v43 = vld [vmem:[%s7341_s4 + $0x188] sm:$0xff] }
  0x30   :  { %921 = vmatpush.bf16.msrb.mxu2 %v4538_v21  ;;  %950 = vmatpush.bf16.msrb.mxu3 %v4546_v22  ;;  %v3881_v21 = vor.u32 %v4473_v18, %v3878_v19  ;;  %v4464_v22 = vld [vmem:[%s7343_s1 + $0x54] sm:$0xf] }
  0x31   :  { %757 = vmatmul.bf16.gmra.mxu0 %v3821_v50  ;;  %767 = vmatmul.bf16.gmra.mxu1 %v3885_v51  ;;  %v4470_v50 = vld [vmem:[%s7343_s1 + $0x84] sm:$0xf]  ;;  %v3841_v24 = vor.u32 %v4464_v22, %v3838_v23 }
  0x32   :  { %777 = vmatpush.bf16.msrb.mxu1 %v4497_v48  ;;  %864 = vmatpush.bf16.msrb.mxu0 %v4521_v49  ;;  %v4583_v48 = vld [vmem:[%s7344_s2 + $0x8] sm:$0xff]  ;;  %v4542_v49 = vld [vmem:[%s7341_s4 + $0x1c0] sm:$0xff] }
  0x33   :  { %815 = vmatmul.bf16.gmra.mxu2 %v3829_v58  ;;  %844 = vmatmul.bf16.gmra.mxu3 %v3833_v59  ;;  %v3854_v51 = vld [vmem:[%s7343_s1 + $0xa0] sm:$0xf0]  ;;  %v3812_v58 = vld [vmem:[%s7343_s1 + $0x18] sm:$0xf] }
  0x34   :  { %922 = vmatpush.bf16.msrb.mxu2 %v4537_v28  ;;  %951 = vmatpush.bf16.msrb.mxu3 %v4545_v29  ;;  %v4461_v59 = vld [vmem:[%s7343_s1 + $0x34] sm:$0xf0]  ;;  %v4481_v28 = vld [vmem:[%s7343_s1 + $0xdc] sm:$0xf] }
  0x35   :  { %v3910_v29 = vld [vmem:[%s7343_s1 + $0xf8] sm:$0xf0] }
  0x36   :  { %778 = vmatpush.bf16.msrb.mxu1 %v4496_v56  ;;  %865 = vmatpush.bf16.msrb.mxu0 %v4520_v57  ;;  %v3857_v56 = vor.u32 %v4470_v50, %v3854_v51  ;;  %v3869_v57 = vor.u32 %v4476_v53, %v3868_v52 }
  0x38   :  { %923 = vmatpush.bf16.msrb.mxu2 %v4536_v38  ;;  %952 = vmatpush.bf16.msrb.mxu3 %v4544_v41 }
  0x3a   :  { %779 = vmatpush.bf16.msrb.mxu1 %v4495_v62  ;;  %866 = vmatpush.bf16.msrb.mxu0 %v4519_v63  ;;  %v3813_v62 = vor.u32 %v4461_v59, %v3812_v58  ;;  %v3817_v63 = vor.u32 %v4457_v60, %v3814_v61 }
  0x3c   :  { %924 = vmatpush.bf16.msrb.mxu2 %v4535_v43  ;;  %953 = vmatpush.bf16.msrb.mxu3 %v4543_v45  ;;  %v3902_v43 = vld [vmem:[%s7343_s1 + $0xf0] sm:$0xf0] }
  0x3e   :  { %780 = vmatpush.bf16.msrb.mxu1 %v4494_v0  ;;  %867 = vmatpush.bf16.msrb.mxu0 %v4518_v1  ;;  %v4478_v0 = vld [vmem:[%s7343_s1 + $0xc4] sm:$0xf] }
  0x3f   :  { %v3886_v1 = vld [vmem:[%s7343_s1 + $0xe0] sm:$0xf0] }
  0x40   :  { %925 = vmatpush.bf16.msrb.mxu2 %v4534_v47  ;;  %954 = vmatpush.bf16.msrb.mxu3 %v4542_v49  ;;  %v3889_v4 = vor.u32 %v4478_v0, %v3886_v1 }
  0x41   :  { %781 = vmatmul.bf16.vlgmr.msrb.gmra.mxu1 %v3793_v6  ;;  %868 = vmatmul.bf16.vlgmr.msrb.gmra.mxu0 %v3805_v7  ;;  %v3844_v6 = vld [vmem:[%s7343_s1 + $0x58] sm:$0xf] }
  0x42   :  { %889 = vmatpush.bf16.msra.mxu1 %v4533_v13  ;;  %1584 = vmatpush.bf16.msra.mxu0 %v4585_v39  ;;  %v4469_v7 = vld [vmem:[%s7343_s1 + $0x74] sm:$0xf0]  ;;  %v3806_v13 = vld [vmem:[%s7343_s1 + $0x30] sm:$0xf0] }
  0x43   :  { %820 = vmatmul.bf16.gmra.mxu2 %v3861_v12  ;;  %849 = vmatmul.bf16.gmra.mxu3 %v3865_v15  ;;  %v3845_v10 = vor.u32 %v4469_v7, %v3844_v6  ;;  %v4456_v12 = vld [vmem:[%s7343_s1 + $0x14] sm:$0xf] }
  0x44   :  { %4596 = vmatpush.bf16.msra.mxu2 %v4585_v39  ;;  %v3809_v15 = vor.u32 %v4456_v12, %v3806_v13 }
  0x46   :  { %890 = vmatpush.bf16.msra.mxu1 %v4532_v17  ;;  %1585 = vmatpush.bf16.msra.mxu0 %v4584_v44  ;;  %v4477_v17 = vld [vmem:[%s7343_s1 + $0xb4] sm:$0xf0] }
  0x48   :  { %4597 = vmatpush.bf16.msra.mxu2 %v4584_v44  ;;  %v5231_v44 = vld [vmem:[%s7342_s5] ss:$0 sm:$0xff] }
  0x4a   :  { %891 = vmatpush.bf16.msra.mxu1 %v4531_v20  ;;  %1586 = vmatpush.bf16.msra.mxu0 %v4583_v48  ;;  %v3877_v20 = vor.u32 %v4477_v17, %v3876_v16 }
  0x4c   :  { %4598 = vmatpush.bf16.msra.mxu2 %v4583_v48 }
  0x4e   :  { %892 = vmatpush.bf16.msra.mxu1 %v4530_v27  ;;  %1587 = vmatpush.bf16.msra.mxu0 %v4582_v55  ;;  %v4485_v27 = vld [vmem:[%s7343_s1 + $0xf4] sm:$0xf0] }
  0x50   :  { %4599 = vmatpush.bf16.msra.mxu2 %v4582_v55 }
  0x51   :  { %786 = vmatmul.bf16.gmra.mxu1 %v3825_v30  ;;  %873 = vmatmul.bf16.gmra.mxu0 %v3837_v31  ;;  %v3909_v30 = vor.u32 %v4485_v27, %v3908_v26  ;;  %v3913_v31 = vor.u32 %v4481_v28, %v3910_v29 }
  0x52   :  { %893 = vmatpush.bf16.msra.mxu1 %v4529_v37 }
  0x53   :  { %825 = vmatmul.bf16.gmra.mxu2 %v3893_v36  ;;  %854 = vmatmul.bf16.gmra.mxu3 %v3897_v40 }
  0x56   :  { %894 = vmatpush.bf16.msra.mxu1 %v4528_v42  ;;  %v4480_v42 = vld [vmem:[%s7343_s1 + $0xd4] sm:$0xf] }
  0x57   :  { %v3905_v45 = vor.u32 %v4480_v42, %v3902_v43 }
  0x5a   :  { %895 = vmatpush.bf16.msra.mxu1 %v4527_v46  ;;  %v4553_v46 = vld [vmem:[%s7345_s0 + $0x18] sm:$0xff] }
  0x5e   :  { %896 = vmatpush.bf16.msra.mxu1 %v4526_v54 }
  0x61   :  { %791 = vmatmul.bf16.gmra.mxu1 %v3857_v56  ;;  %878 = vmatmul.bf16.gmra.mxu0 %v3869_v57  ;;  %v4554_v56 = vld [vmem:[%s7345_s0 + $0x20] sm:$0xff] }
  0x63   :  { %926 = vmatmul.bf16.vlgmr.msrb.gmra.mxu2 %v3813_v62  ;;  %955 = vmatmul.bf16.vlgmr.msrb.gmra.mxu3 %v3817_v63  ;;  %v4555_v63 = vld [vmem:[%s7345_s0 + $0x28] sm:$0xff] }
  0x71   :  { %796 = vmatmul.bf16.gmra.mxu1 %v3889_v4  ;;  %883 = vmatmul.bf16.gmra.mxu0 %v3901_v5 }
  0x73   :  { %931 = vmatmul.bf16.gmra.mxu2 %v3845_v10  ;;  %960 = vmatmul.bf16.gmra.mxu3 %v3849_v11 }
  0x81   :  { %897 = vmatmul.bf16.vlgmr.msra.gmra.mxu1 %v3809_v15  ;;  %4314 = vmatmul.msk.bf16.vlgmr.msra.gmra.mxu0 %vm976_vm0, %v4550_v14 }
  0x83   :  { %936 = vmatmul.bf16.gmra.mxu2 %v3877_v20  ;;  %965 = vmatmul.bf16.gmra.mxu3 %v3881_v21  ;;  %v4557_v20 = vld [vmem:[%s7345_s0 + $0x38] sm:$0xff] }
  0x91   :  { %902 = vmatmul.bf16.gmra.mxu1 %v3841_v24  ;;  %4315 = vmatmul.msk.bf16.gmra.mxu0 %vm976_vm0, %v4551_v25 }
  0x93   :  { %941 = vmatmul.bf16.gmra.mxu2 %v3909_v30  ;;  %970 = vmatmul.bf16.gmra.mxu3 %v3913_v31 }
  0x9e   :  { %v753_v36 = vpop.f32.mrf.mxu0  ;;  %v5215_v37 = vpop.f32.mrf.mxu1 }
  0x9f   :  { %v754_v25 = vadd.f32 %v5231_v44, %v753_v36 }
  0xa1   :  { %907 = vmatmul.bf16.gmra.mxu1 %v3873_v34  ;;  %4316 = vmatmul.msk.bf16.gmra.mxu0 %vm976_vm0, %v4552_v35 }
  0xa6   :  { %v5218_v38 = vpop.f32.mrf.mxu0  ;;  %v765_v39 = vpop.f32.mrf.mxu1 }
  0xa7   :  { %v811_v40 = vpop.f32.mrf.mxu2  ;;  %v5220_v41 = vpop.f32.mrf.mxu3  ;;  %v766_v12 = vadd.f32 %v5231_v44, %v765_v39  ;;  %v756_v39 = vadd.f32 %v5231_v44, %v5218_v38 }
  0xae   :  { %v5236_v47 = vpop.f32.mrf.mxu0  ;;  %v768_v48 = vpop.f32.mrf.mxu1 }
  0xaf   :  { %v769_v49 = vadd.f32 %v5231_v44, %v768_v48  ;;  %v5239_v50 = vpop.f32.mrf.mxu2  ;;  %v5242_v51 = vpop.f32.mrf.mxu3  ;;  %v759_v38 = vadd.f32 %v5231_v44, %v5236_v47 }
  0xb1   :  { %912 = vmatmul.bf16.gmra.mxu1 %v3905_v45  ;;  %4317 = vmatmul.msk.bf16.gmra.mxu0 %vm976_vm0, %v4553_v46 }
  0xb6   :  { %v5244_v52 = vpop.f32.mrf.mxu0  ;;  %v770_v53 = vpop.f32.mrf.mxu1 }
  0xb7   :  { %v5246_v54 = vpop.f32.mrf.mxu2  ;;  %v5248_v55 = vpop.f32.mrf.mxu3  ;;  %v771_v29 = vadd.f32 %v5231_v44, %v770_v53 }
  0xbe   :  { %v782_v57 = vpop.f32.mrf.mxu1  ;;  %v869_v58 = vpop.f32.mrf.mxu0 }
  0xbf   :  { %v5254_v59 = vpop.f32.mrf.mxu2  ;;  %v5256_v60 = vpop.f32.mrf.mxu3  ;;  %v783_v27 = vadd.f32 %v782_v57, %v754_v25 }
  0xc1   :  { %4318 = vmatmul.msk.bf16.gmra.mxu0 %vm976_vm0, %v4554_v56  ;;  %v812_v31 = vadd.f32 %v811_v40, %v783_v27  ;;  %v4558_v40 = vld [vmem:[%s7345_s0 + $0x40] sm:$0xff] }
  0xc3   :  { %v841_v36 = vadd.f32 %v5220_v41, %v812_v31  ;;  %v5307_v41 = vld [vmem:[%s7346_s3] ss:$0 sm:$0xff] }
  0xc5   :  { %v870_v53 = vadd.f32 %v869_v58, %v841_v36 }
  0xc6   :  { %v784_v61 = vpop.f32.mrf.mxu1  ;;  %v5258_v62 = vpop.f32.mrf.mxu0 }
  0xc7   :  { %v5263_v0 = vpop.f32.mrf.mxu2  ;;  %v5267_v3 = vpop.f32.mrf.mxu3  ;;  %v785_v45 = vadd.f32 %v784_v61, %v756_v39 }
  0xce   :  { %v787_v1 = vpop.f32.mrf.mxu1  ;;  %v5265_v2 = vpop.f32.mrf.mxu0 }
  0xcf   :  { %v823_v6 = vpop.f32.mrf.mxu2  ;;  %v852_v7 = vpop.f32.mrf.mxu3  ;;  %v788_v58 = vadd.f32 %v787_v1, %v759_v38 }
  0xd1   :  { %4319 = vmatmul.msk.bf16.gmra.mxu0 %vm976_vm0, %v4555_v63  ;;  %v817_v47 = vadd.f32 %v5246_v54, %v788_v58 }
  0xd6   :  { %v5270_v4 = vpop.f32.mrf.mxu1  ;;  %v5272_v5 = vpop.f32.mrf.mxu0 }
  0xd7   :  { %v826_v11 = vpop.f32.mrf.mxu2  ;;  %v855_v13 = vpop.f32.mrf.mxu3 }
  0xde   :  { %v5277_v9 = vpop.f32.mrf.mxu1  ;;  %v5279_v10 = vpop.f32.mrf.mxu0 }
  0xdf   :  { %v828_v19 = vpop.f32.mrf.mxu2  ;;  %v857_v21 = vpop.f32.mrf.mxu3 }
  0xe1   :  { %4320 = vmatmul.msk.bf16.gmra.mxu0 %vm976_vm0, %v4556_v8 }
  0xe6   :  { %v794_v14 = vpop.f32.mrf.mxu1  ;;  %v881_v15 = vpop.f32.mrf.mxu0 }
  0xe7   :  { %v795_v16 = vadd.f32 %v794_v14, %v766_v12  ;;  %v927_v32 = vpop.f32.mrf.mxu2  ;;  %v956_v43 = vpop.f32.mrf.mxu3 }
  0xe9   :  { %v824_v17 = vadd.f32 %v823_v6, %v795_v16 }
  0xeb   :  { %v853_v18 = vadd.f32 %v852_v7, %v824_v17 }
  0xed   :  { %v5286_v22 = vadd.f32 %v881_v15, %v853_v18 }
  0xee   :  { %v797_v23 = vpop.f32.mrf.mxu1  ;;  %v884_v24 = vpop.f32.mrf.mxu0 }
  0xef   :  { %v798_v26 = vadd.f32 %v797_v23, %v769_v49  ;;  %v814_v49 = vadd.f32 %v5239_v50, %v785_v45  ;;  %v929_v61 = vpop.f32.mrf.mxu2  ;;  %v958_v8 = vpop.f32.mrf.mxu3 }
  0xf1   :  { %v827_v28 = vadd.f32 %v826_v11, %v798_v26  ;;  %4321 = vmatmul.msk.bf16.gmra.mxu0 %vm976_vm0, %v4557_v20  ;;  %v843_v50 = vadd.f32 %v5242_v51, %v814_v49  ;;  %v761_v51 = vadd.f32 %v5231_v44, %v5244_v52  ;;  %v764_v52 = vadd.f32 %v5231_v44, %v5215_v37 }
  0xf3   :  { %v856_v30 = vadd.f32 %v855_v13, %v827_v28  ;;  %v872_v13 = vadd.f32 %v5258_v62, %v843_v50  ;;  %v790_v20 = vadd.f32 %v5270_v4, %v761_v51  ;;  %v793_v44 = vadd.f32 %v5277_v9, %v764_v52 }
  0xf5   :  { %v5291_v33 = vadd.f32 %v884_v24, %v856_v30  ;;  %v819_v27 = vadd.f32 %v5254_v59, %v790_v20  ;;  %v822_v39 = vadd.f32 %v5263_v0, %v793_v44 }
  0xf6   :  { %v799_v34 = vpop.f32.mrf.mxu1  ;;  %v886_v35 = vpop.f32.mrf.mxu0 }
  0xf7   :  { %v800_v42 = vadd.f32 %v799_v34, %v771_v29  ;;  %v932_v62 = vpop.f32.mrf.mxu2  ;;  %v961_v26 = vpop.f32.mrf.mxu3  ;;  %v4559_v29 = vld [vmem:[%s7345_s0 + $0x48] sm:$0xff]  ;;  %v848_v37 = vadd.f32 %v5256_v60, %v819_v27  ;;  %v851_v49 = vadd.f32 %v5267_v3, %v822_v39 }
  0xf9   :  { %v829_v46 = vadd.f32 %v828_v19, %v800_v42  ;;  %v846_v19 = vadd.f32 %v5248_v55, %v817_v47  ;;  %v877_v42 = vadd.f32 %v5272_v5, %v848_v37 }
  0xfb   :  { %v858_v48 = vadd.f32 %v857_v21, %v829_v46  ;;  %v875_v4 = vadd.f32 %v5265_v2, %v846_v19  ;;  %v4561_v19 = vld [vmem:[%s7345_s0 + $0x58] sm:$0xff] }
  0xfd   :  { %v5300_v56 = vadd.f32 %v886_v35, %v858_v48 }
  0xfe   :  { %v898_v57 = vpop.f32.mrf.mxu1  ;;  %v1589_v63 = vpop.f32.mrf.mxu0 }
  0xff   :  { %v899_v6 = vadd.f32 %v898_v57, %v870_v53  ;;  %v1590_v11 = vadd.f32 %v5307_v41, %v1589_v63  ;;  %v934_v35 = vpop.f32.mrf.mxu2  ;;  %v963_v36 = vpop.f32.mrf.mxu3  ;;  %v880_v63 = vadd.f32 %v5279_v10, %v851_v49 }
 0x101   :  { %v928_v7 = vadd.f32 %v927_v32, %v899_v6  ;;  %4322 = vmatmul.msk.bf16.gmra.mxu0 %vm976_vm0, %v4558_v40  ;;  %v1769_v1 = vpack.c.bf16 %v1590_v11, %v1590_v11 }
 0x103   :  { %v5312_v12 = vadd.f32 %v956_v43, %v928_v7  ;;  %v5323_v23 = vunpack.c.l.b16 %v1769_v1 }
 0x105   :  { %v977_v14 = vsel %vm976_vm0, %v5312_v12, 0.0 }
 0x106   :  { %v900_v15 = vpop.f32.mrf.mxu1  ;;  %978 = vadd.xlane.f32.xlu0 %v977_v14  ;;  %v1591_v16 = vpop.f32.mrf.mxu0 }
 0x107   :  { %v901_v17 = vadd.f32 %v900_v15, %v872_v13  ;;  %v1592_v18 = vadd.f32 %v5307_v41, %v1591_v16  ;;  %v937_v6 = vpop.f32.mrf.mxu2 }
 0x109   :  { %v1770_v54 = vpack.c.bf16 %v1592_v18, %v1592_v18  ;;  %v930_v21 = vadd.f32 %v929_v61, %v901_v17  ;;  %v4560_v61 = vld [vmem:[%s7345_s0 + $0x50] sm:$0xff] }
 0x10b   :  { %v5325_v24 = vunpack.c.l.b16 %v1770_v54  ;;  %v5327_v25 = vadd.f32 %v958_v8, %v930_v21  ;;  %v966_v8 = vpop.f32.mrf.mxu3 }
 0x10d   :  { %v980_v28 = vsel %vm976_vm0, %v5327_v25, 0.0 }
 0x10e   :  { %v903_v30 = vpop.f32.mrf.mxu1  ;;  %981 = vadd.xlane.f32.xlu0 %v980_v28  ;;  %v1594_v31 = vpop.f32.mrf.mxu0 }
 0x10f   :  { %v904_v32 = vadd.f32 %v903_v30, %v875_v4  ;;  %v1595_v2 = vadd.f32 %v5307_v41, %v1594_v31 }
 0x111   :  { %v933_v59 = vadd.f32 %v932_v62, %v904_v32  ;;  %4323 = vmatmul.msk.bf16.gmra.mxu0 %vm976_vm0, %v4559_v29  ;;  %v1771_v9 = vpack.c.bf16 %v1595_v2, %v1595_v2  ;;  %v4562_v29 = vld [vmem:[%s7345_s0 + $0x60] sm:$0xff] }
 0x113   :  { %v5344_v34 = vadd.f32 %v961_v26, %v933_v59  ;;  %v5352_v57 = vunpack.c.l.b16 %v1771_v9 }
 0x115   :  { %v983_v43 = vsel %vm976_vm0, %v5344_v34, 0.0 }
 0x116   :  { %v905_v45 = vpop.f32.mrf.mxu1  ;;  %984 = vadd.xlane.f32.xlu2 %v983_v43  ;;  %v1596_v60 = vpop.f32.mrf.mxu0 }
 0x117   :  { %v906_v46 = vadd.f32 %v905_v45, %v877_v42  ;;  %v1597_v48 = vadd.f32 %v5307_v41, %v1596_v60  ;;  %v4563_v42 = vld [vmem:[%s7345_s0 + $0x68] sm:$0xff] }
 0x119   :  { %v1772_v53 = vpack.c.bf16 %v1597_v48, %v1597_v48  ;;  %v935_v40 = vadd.f32 %v934_v35, %v906_v46 }
 0x11b   :  { %v5354_v0 = vunpack.c.l.b16 %v1772_v53  ;;  %v5356_v5 = vadd.f32 %v963_v36, %v935_v40  ;;  %v4564_v40 = vld [vmem:[%s7345_s0 + $0x70] sm:$0xff] }
 0x11d   :  { %v986_v38 = vsel %vm976_vm0, %v5356_v5, 0.0 }
 0x11e   :  { %v908_v50 = vpop.f32.mrf.mxu1  ;;  %987 = vadd.xlane.f32.xlu2 %v986_v38  ;;  %v1599_v58 = vpop.f32.mrf.mxu0  ;;  %v4758_v38 = vmov 64.0  }
 0x11f   :  { %v909_v7 = vadd.f32 %v908_v50, %v880_v63  ;;  %v1600_v10 = vadd.f32 %v5307_v41, %v1599_v58  ;;  %4607 = vrcp.f32 %v4758_v38  ;;  %v939_v38 = vpop.f32.mrf.mxu2 }
 0x121   :  { %v938_v11 = vadd.f32 %v937_v6, %v909_v7  ;;  %4324 = vmatmul.msk.bf16.gmra.mxu0 %vm976_vm0, %v4560_v61  ;;  %v1773_v15 = vpack.c.bf16 %v1600_v10, %v1600_v10 }
 0x123   :  { %v5368_v47 = vadd.f32 %v966_v8, %v938_v11  ;;  %v5373_v1 = vunpack.c.l.b16 %v1773_v15 }
 0x125   :  { %v989_v13 = vsel %vm976_vm0, %v5368_v47, 0.0  ;;  %v4608_v61 = vpop.eup %4607 }
 0x126   :  { %990 = vadd.xlane.f32.xlu0 %v989_v13  ;;  %v1601_v14 = vpop.f32.mrf.mxu0  ;;  %v1002_v8 = vmul.f32 64.0, %v4608_v61  ;;  %vm1006_vm1 = vweird.f32 %v4608_v61 }
 0x127   :  { %v1602_v16 = vadd.f32 %v5307_v41, %v1601_v14 }
 0x128   :  { %v1003_v14 = vsub.f32 1.0, %v1002_v8 }
 0x129   :  { %v1774_v51 = vpack.c.bf16 %v1602_v16, %v1602_v16  ;;  %v4565_v16 = vld [vmem:[%s7345_s0 + $0x78] sm:$0xff] }
 0x12b   :  { %v5375_v17 = vunpack.c.l.b16 %v1774_v51 }
 0x12e   :  { %v1604_v20 = vpop.f32.mrf.mxu0 }
 0x12f   :  { %v1605_v54 = vadd.f32 %v5307_v41, %v1604_v20 }
 0x131   :  { %4325 = vmatmul.msk.bf16.gmra.mxu0 %vm976_vm0, %v4561_v19  ;;  %v1775_v62 = vpack.c.bf16 %v1605_v54, %v1605_v54  ;;  %v1004_v19 = vmul.f32 %v4608_v61, %v1003_v14 }
 0x133   :  { %v5385_v27 = vunpack.c.l.b16 %v1775_v62  ;;  %v1005_v54 = vadd.f32 %v4608_v61, %v1004_v19 }
 0x136   :  { %v1606_v21 = vpop.f32.mrf.mxu0 }
 0x137   :  { %v1607_v26 = vadd.f32 %v5307_v41, %v1606_v21 }
 0x139   :  { %v1776_v52 = vpack.c.bf16 %v1607_v26, %v1607_v26 }
 0x13b   :  { %v5387_v4 = vunpack.c.l.b16 %v1776_v52  ;;  %v5433_v52 = vsel %vm1006_vm1, %v4608_v61, %v1005_v54 }
 0x13e   :  { %v1609_v30 = vpop.f32.mrf.mxu0 }
 0x13f   :  { %v1610_v31 = vadd.f32 %v5307_v41, %v1609_v30 }
 0x141   :  { %4326 = vmatmul.msk.bf16.gmra.mxu0 %vm976_vm0, %v4562_v29  ;;  %v1777_v37 = vpack.c.bf16 %v1610_v31, %v1610_v31 }
 0x143   :  { %v5397_v2 = vunpack.c.l.b16 %v1777_v37 }
 0x146   :  { %v1611_v32 = vpop.f32.mrf.mxu0 }
 0x147   :  { %v1612_v44 = vadd.f32 %v5307_v41, %v1611_v32 }
 0x149   :  { %v1778_v59 = vpack.c.bf16 %v1612_v44, %v1612_v44 }
 0x14b   :  { %v5399_v35 = vunpack.c.l.b16 %v1778_v59 }
 0x14e   :  { %v1614_v43 = vpop.f32.mrf.mxu0 }
 0x14f   :  { %v1615_v36 = vadd.f32 %v5307_v41, %v1614_v43 }
 0x151   :  { %4327 = vmatmul.msk.bf16.gmra.mxu0 %vm976_vm0, %v4563_v42  ;;  %v1779_v60 = vpack.c.bf16 %v1615_v36, %v1615_v36  ;;  %v4566_v42 = vld [vmem:[%s7345_s0 + $0x80] sm:$0xff] }
 0x153   :  { %v5409_v48 = vunpack.c.l.b16 %v1779_v60  ;;  %v910_v60 = vpop.f32.mrf.mxu1 }
 0x156   :  { %v1616_v45 = vpop.f32.mrf.mxu0 }
 0x157   :  { %v1617_v9 = vadd.f32 %v5307_v41, %v1616_v45 }
 0x159   :  { %v1780_v46 = vpack.c.bf16 %v1617_v9, %v1617_v9 }
 0x15b   :  { %v5411_v49 = vunpack.c.l.b16 %v1780_v46 }
 0x15e   :  { %v1619_v63 = vpop.f32.mrf.mxu0 }
 0x15f   :  { %v1620_v6 = vadd.f32 %v5307_v41, %v1619_v63 }
 0x161   :  { %4328 = vmatmul.msk.bf16.gmra.mxu0 %vm976_vm0, %v4564_v40  ;;  %v1781_v58 = vpack.c.bf16 %v1620_v6, %v1620_v6  ;;  %v911_v40 = vadd.f32 %v910_v60, %v5286_v22 }
 0x163   :  { %v5421_v10 = vunpack.c.l.b16 %v1781_v58 }
 0x166   :  { %v1621_v50 = vpop.f32.mrf.mxu0 }
 0x167   :  { %v1622_v7 = vadd.f32 %v5307_v41, %v1621_v50 }
 0x169   :  { %v1782_v11 = vpack.c.bf16 %v1622_v7, %v1622_v7  ;;  %v940_v7 = vadd.f32 %v939_v38, %v911_v40 }
 0x16b   :  { %v5423_v13 = vunpack.c.l.b16 %v1782_v11  ;;  %v968_v11 = vpop.f32.mrf.mxu3 }
 0x16c   :  { %v5467_v19 = vadd.f32 %v968_v11, %v940_v7 }
 0x16e   :  { %v1624_v51 = vpop.f32.mrf.mxu0 }
 0x16f   :  { %v1625_v20 = vadd.f32 %v5307_v41, %v1624_v51 }
 0x171   :  { %4329 = vmatmul.msk.bf16.gmra.mxu0 %vm976_vm0, %v4565_v16  ;;  %v1783_v62 = vpack.c.bf16 %v1625_v20, %v1625_v20 }
 0x173   :  { %v5436_v32 = vunpack.c.l.b16 %v1783_v62 }
 0x176   :  { %v1626_v21 = vpop.f32.mrf.mxu0 }
 0x177   :  { %v1627_v26 = vadd.f32 %v5307_v41, %v1626_v21 }
 0x179   :  { %v1784_v29 = vpack.c.bf16 %v1627_v26, %v1627_v26  ;;  %v979_v30 = vpop.xlane.xlu0 %978  ;;  %v4567_v26 = vld [vmem:[%s7345_s0 + $0x88] sm:$0xff] }
 0x17a   :  { %v1008_v31 = vmul.f32 %v5433_v52, %v979_v30 }
 0x17b   :  { %v5438_v37 = vunpack.c.l.b16 %v1784_v29  ;;  %v913_v29 = vpop.f32.mrf.mxu1 }
 0x17c   :  { %v5441_v44 = vsub.f32 %v5312_v12, %v1008_v31  ;;  %v992_v31 = vsel %vm976_vm0, %v5467_v19, 0.0 }
 0x17e   :  { %v1629_v43 = vpop.f32.mrf.mxu0  ;;  %v1024_v36 = vmul.f32 %v5441_v44, %v5441_v44 }
 0x17f   :  { %v1630_v46 = vadd.f32 %v5307_v41, %v1629_v43  ;;  %v942_v43 = vpop.f32.mrf.mxu2 }
 0x180   :  { %v1032_v45 = vsel %vm976_vm0, %v1024_v36, 0.0 }
 0x181   :  { %1033 = vadd.xlane.f32.xlu1 %v1032_v45  ;;  %v982_v9 = vpop.xlane.xlu0 %981  ;;  %4330 = vmatmul.msk.bf16.gmra.mxu0 %vm976_vm0, %v4566_v42  ;;  %v1785_v50 = vpack.c.bf16 %v1630_v46, %v1630_v46  ;;  %v914_v45 = vadd.f32 %v913_v29, %v5291_v33  ;;  %v971_v46 = vpop.f32.mrf.mxu3  ;;  %v4568_v29 = vld [vmem:[%s7345_s0 + $0x90] sm:$0xff] }
 0x182   :  { %v1009_v12 = vmul.f32 %v5433_v52, %v982_v9 }
 0x183   :  { %v5463_v51 = vunpack.c.l.b16 %v1785_v50  ;;  %v915_v50 = vpop.f32.mrf.mxu1 }
 0x184   :  { %v5456_v63 = vsub.f32 %v5327_v25, %v1009_v12 }
 0x185   :  { %7403 = vst [vmem:[#allocation2_spill] sm:$0xff] %v5463_v51 }
 0x186   :  { %v1631_v6 = vpop.f32.mrf.mxu0  ;;  %v1025_v61 = vmul.f32 %v5456_v63, %v5456_v63 }
 0x187   :  { %v1632_v58 = vadd.f32 %v5307_v41, %v1631_v6  ;;  %v943_v6 = vadd.f32 %v942_v43, %v914_v45 }
 0x188   :  { %v1035_v8 = vsel %vm976_vm0, %v1025_v61, 0.0 }
 0x189   :  { %v1786_v14 = vpack.c.bf16 %v1632_v58, %v1632_v58  ;;  %v985_v16 = vpop.xlane.xlu2 %984  ;;  %1036 = vadd.xlane.f32.xlu1 %v1035_v8  ;;  %v5498_v11 = vadd.f32 %v971_v46, %v943_v6 }
 0x18a   :  { %v1010_v22 = vmul.f32 %v5433_v52, %v985_v16 }
 0x18b   :  { %v5465_v25 = vunpack.c.l.b16 %v1786_v14  ;;  %v916_v14 = vadd.f32 %v915_v50, %v5300_v56 }
 0x18c   :  { %v5470_v20 = vsub.f32 %v5344_v34, %v1010_v22  ;;  %v944_v22 = vpop.f32.mrf.mxu2 }
 0x18d   :  { %7404 = vst [vmem:[#allocation3_spill] sm:$0xff] %v5465_v25 }
 0x18e   :  { %v1634_v21 = vpop.f32.mrf.mxu0  ;;  %v1026_v62 = vmul.f32 %v5470_v20, %v5470_v20 }
 0x18f   :  { %v1635_v36 = vadd.f32 %v5307_v41, %v1634_v21 }
 0x190   :  { %v1038_v30 = vsel %vm976_vm0, %v1026_v62, 0.0 }
 0x191   :  { %1039 = vadd.xlane.f32.xlu2 %v1038_v30  ;;  %v988_v34 = vpop.xlane.xlu2 %987  ;;  %993 = vadd.xlane.f32.xlu1 %v992_v31  ;;  %v1787_v40 = vpack.c.bf16 %v1635_v36, %v1635_v36  ;;  %v945_v30 = vadd.f32 %v944_v22, %v916_v14  ;;  %v995_v31 = vsel %vm976_vm0, %v5498_v11, 0.0 }
 0x192   :  { %v1011_v42 = vmul.f32 %v5433_v52, %v988_v34  ;;  %4331 = vmatmul.msk.bf16.gmra.mxu0 %vm976_vm0, %v4567_v26 }
 0x193   :  { %v5494_v8 = vunpack.c.l.b16 %v1787_v40 }
 0x194   :  { %v5487_v60 = vsub.f32 %v5356_v5, %v1011_v42 }
 0x195   :  { %7405 = vst [vmem:[#allocation4_spill] sm:$0xff] %v5494_v8 }
 0x196   :  { %v1636_v9 = vpop.f32.mrf.mxu0  ;;  %v1027_v12 = vmul.f32 %v5487_v60, %v5487_v60 }
 0x197   :  { %v1637_v38 = vadd.f32 %v5307_v41, %v1636_v9 }
 0x198   :  { %v1041_v61 = vsel %vm976_vm0, %v1027_v12, 0.0 }
 0x199   :  { %v1788_v58 = vpack.c.bf16 %v1637_v38, %v1637_v38  ;;  %1042 = vadd.xlane.f32.xlu0 %v1041_v61  ;;  %v991_v7 = vpop.xlane.xlu0 %990  ;;  %v4569_v61 = vld [vmem:[%s7345_s0 + $0x98] sm:$0xff] }
 0x19a   :  { %v1012_v33 = vmul.f32 %v5433_v52, %v991_v7 }
 0x19b   :  { %v5496_v5 = vunpack.c.l.b16 %v1788_v58 }
 0x19c   :  { %v5502_v16 = vsub.f32 %v5368_v47, %v1012_v33  ;;  %v973_v47 = vpop.f32.mrf.mxu3 }
 0x19d   :  { %7406 = vst [vmem:[#allocation5_spill] sm:$0xff] %v5496_v5  ;;  %v5516_v42 = vadd.f32 %v973_v47, %v945_v30  ;;  %v4570_v30 = vld [vmem:[%s7345_s0 + $0xa0] sm:$0xff] }
 0x19e   :  { %v1639_v62 = vpop.f32.mrf.mxu0  ;;  %v1028_v26 = vmul.f32 %v5502_v16, %v5502_v16 }
 0x19f   :  { %v1640_v34 = vadd.f32 %v5307_v41, %v1639_v62  ;;  %v998_v9 = vsel %vm976_vm0, %v5516_v42, 0.0 }
 0x1a0   :  { %v1044_v56 = vsel %vm976_vm0, %v1028_v26, 0.0 }
 0x1a1   :  { %996 = vadd.xlane.f32.xlu0 %v995_v31  ;;  %1045 = vadd.xlane.f32.xlu1 %v1044_v56  ;;  %v1789_v36 = vpack.c.bf16 %v1640_v34, %v1640_v34 }
 0x1a2   :  { %4332 = vmatmul.msk.bf16.gmra.mxu0 %vm976_vm0, %v4568_v29 }
 0x1a3   :  { %v5521_v46 = vunpack.c.l.b16 %v1789_v36 }
 0x1a5   :  { %7407 = vst [vmem:[#allocation6_spill] sm:$0xff] %v5521_v46 }
 0x1a6   :  { %v1641_v43 = vpop.f32.mrf.mxu0 }
 0x1a7   :  { %v1642_v45 = vadd.f32 %v5307_v41, %v1641_v43 }
 0x1a9   :  { %v1790_v12 = vpack.c.bf16 %v1642_v45, %v1642_v45  ;;  %999 = vadd.xlane.f32.xlu1 %v998_v9 }
 0x1ab   :  { %v5523_v40 = vunpack.c.l.b16 %v1790_v12 }
 0x1ad   :  { %7408 = vst [vmem:[#allocation7_spill] sm:$0xff] %v5523_v40 }
 0x1ae   :  { %v1644_v6 = vpop.f32.mrf.mxu0 }
 0x1af   :  { %v1645_v50 = vadd.f32 %v5307_v41, %v1644_v6  ;;  %v4571_v6 = vld [vmem:[%s7345_s0 + $0xa8] sm:$0xff] }
 0x1b1   :  { %v1791_v7 = vpack.c.bf16 %v1645_v50, %v1645_v50 }
 0x1b2   :  { %4333 = vmatmul.msk.bf16.gmra.mxu0 %vm976_vm0, %v4569_v61 }
 0x1b3   :  { %v5533_v22 = vunpack.c.l.b16 %v1791_v7 }
 0x1b5   :  { %7409 = vst [vmem:[#allocation8_spill] sm:$0xff] %v5533_v22 }
 0x1b6   :  { %v1646_v58 = vpop.f32.mrf.mxu0 }
 0x1b7   :  { %v1647_v33 = vadd.f32 %v5307_v41, %v1646_v58 }
 0x1b9   :  { %v1792_v14 = vpack.c.bf16 %v1647_v33, %v1647_v33 }
 0x1bb   :  { %v5535_v62 = vunpack.c.l.b16 %v1792_v14 }
 0x1bd   :  { %7410 = vst [vmem:[#allocation9_spill] sm:$0xff] %v5535_v62 }
 0x1be   :  { %v1649_v29 = vpop.f32.mrf.mxu0 }
 0x1bf   :  { %v1650_v31 = vadd.f32 %v5307_v41, %v1649_v29 }
 0x1c1   :  { %v1793_v47 = vpack.c.bf16 %v1650_v31, %v1650_v31 }
 0x1c2   :  { %4334 = vmatmul.msk.bf16.gmra.mxu0 %vm976_vm0, %v4570_v30 }
 0x1c3   :  { %v5545_v36 = vunpack.c.l.b16 %v1793_v47 }
 0x1c5   :  { %7411 = vst [vmem:[#allocation10_spill] sm:$0xff] %v5545_v36 }
 0x1c6   :  { %v1651_v56 = vpop.f32.mrf.mxu0 }
 0x1c7   :  { %v1652_v34 = vadd.f32 %v5307_v41, %v1651_v56  ;;  %v4572_v56 = vld [vmem:[%s7345_s0 + $0xb0] sm:$0xff] }
 0x1c9   :  { %v1794_v43 = vpack.c.bf16 %v1652_v34, %v1652_v34 }
 0x1cb   :  { %v5547_v45 = vunpack.c.l.b16 %v1794_v43 }
 0x1cd   :  { %7412 = vst [vmem:[#allocation11_spill] sm:$0xff] %v5547_v45 }
 0x1ce   :  { %v1654_v12 = vpop.f32.mrf.mxu0 }
 0x1cf   :  { %v1655_v61 = vadd.f32 %v5307_v41, %v1654_v12 }
 0x1d1   :  { %v1795_v58 = vpack.c.bf16 %v1655_v61, %v1655_v61 }
 0x1d2   :  { %4335 = vmatmul.msk.bf16.gmra.mxu0 %vm976_vm0, %v4571_v6 }
 0x1d3   :  { %v5557_v14 = vunpack.c.l.b16 %v1795_v58 }
 0x1d5   :  { %7413 = vst [vmem:[#allocation12_spill] sm:$0xff] %v5557_v14 }
 0x1d6   :  { %v1656_v50 = vpop.f32.mrf.mxu0 }
 0x1d7   :  { %v1657_v7 = vadd.f32 %v5307_v41, %v1656_v50 }
 0x1d9   :  { %v1796_v33 = vpack.c.bf16 %v1657_v7, %v1657_v7 }
 0x1db   :  { %v5559_v29 = vunpack.c.l.b16 %v1796_v33  ;;  %v4573_v33 = vld [vmem:[%s7345_s0 + $0xb8] sm:$0xff] }
 0x1dd   :  { %7414 = vst [vmem:[#allocation13_spill] sm:$0xff] %v5559_v29 }
 0x1de   :  { %v1659_v31 = vpop.f32.mrf.mxu0 }
 0x1df   :  { %v1660_v47 = vadd.f32 %v5307_v41, %v1659_v31 }
 0x1e1   :  { %v1797_v43 = vpack.c.bf16 %v1660_v47, %v1660_v47 }
 0x1e2   :  { %4336 = vmatmul.msk.bf16.gmra.mxu0 %vm976_vm0, %v4572_v56 }
 0x1e3   :  { %v5569_v61 = vunpack.c.l.b16 %v1797_v43 }
 0x1e5   :  { %7415 = vst [vmem:[#allocation14_spill] sm:$0xff] %v5569_v61  ;;  %v4579_v61 = vld [vmem:[%s7345_s0 + $0xe8] sm:$0xff] }
 0x1e6   :  { %v1661_v34 = vpop.f32.mrf.mxu0 }
 0x1e7   :  { %v1662_v12 = vadd.f32 %v5307_v41, %v1661_v34 }
 0x1e9   :  { %v1798_v6 = vpack.c.bf16 %v1662_v12, %v1662_v12 }
 0x1eb   :  { %v5571_v50 = vunpack.c.l.b16 %v1798_v6 }
 0x1ed   :  { %7416 = vst [vmem:[#allocation15_spill] sm:$0xff] %v5571_v50 }
 0x1ee   :  { %v1664_v7 = vpop.f32.mrf.mxu0 }
 0x1ef   :  { %v1665_v31 = vadd.f32 %v5307_v41, %v1664_v7 }
 0x1f1   :  { %v1799_v43 = vpack.c.bf16 %v1665_v31, %v1665_v31  ;;  %v4574_v31 = vld [vmem:[%s7345_s0 + $0xc0] sm:$0xff] }
 0x1f2   :  { %4337 = vmatmul.msk.bf16.gmra.mxu0 %vm976_vm0, %v4573_v33 }
 0x1f3   :  { %v5582_v58 = vunpack.c.l.b16 %v1799_v43 }
 0x1f4   :  { %v1034_v56 = vpop.xlane.xlu1 %1033 }
 0x1f5   :  { %v1056_v47 = vmul.f32 %v1034_v56, %v5433_v52 }
 0x1f6   :  { %v1666_v34 = vpop.f32.mrf.mxu0 }
 0x1f7   :  { %v1064_v12 = vadd.f32 1e-05, %v1056_v47  ;;  %v1667_v6 = vadd.f32 %v5307_v41, %v1666_v34 }
 0x1f9   :  { %4609 = vrsqrt.f32 %v1064_v12  ;;  %v1800_v30 = vpack.c.bf16 %v1667_v6, %v1667_v6  ;;  %vm1078_vm3 = vweird.f32 %v1064_v12 }
 0x1fb   :  { %v5584_v9 = vunpack.c.l.b16 %v1800_v30 }
 0x1fc   :  { %v1037_v26 = vpop.xlane.xlu1 %1036 }
 0x1fd   :  { %v1057_v7 = vmul.f32 %v1037_v26, %v5433_v52 }
 0x1fe   :  { %v1669_v38 = vpop.f32.mrf.mxu0 }
 0x1ff   :  { %v4610_v56 = vpop.eup %4609  ;;  %v1065_v47 = vadd.f32 1e-05, %v1057_v7  ;;  %v1670_v30 = vadd.f32 %v5307_v41, %v1669_v38 }
 0x200   :  { %v1073_v34 = vmul.f32 %v4610_v56, %v1064_v12  ;;  %vm1079_vm2 = vweird.f32 %v4610_v56 }
 0x201   :  { %4611 = vrsqrt.f32 %v1065_v47  ;;  %v1801_v53 = vpack.c.bf16 %v1670_v30, %v1670_v30  ;;  %vm1080_vm4 = vmor %vm1078_vm3, %vm1079_vm2  ;;  %vm1088_vm6 = vweird.f32 %v1065_v47 }
 0x202   :  { %v1074_v6 = vmul.f32 %v4610_v56, %v1073_v34  ;;  %4338 = vmatmul.msk.bf16.gmra.mxu0 %vm976_vm0, %v4574_v31 }
 0x204   :  { %v1075_v43 = vmul.f32 0.5, %v1074_v6  ;;  %v994_v21 = vpop.xlane.xlu1 %993 }
 0x205   :  { %v1013_v54 = vmul.f32 %v5433_v52, %v994_v21 }
 0x206   :  { %v1076_v59 = vsub.f32 1.5, %v1075_v43  ;;  %v1671_v26 = vpop.f32.mrf.mxu0  ;;  %v5604_v43 = vld [vmem:[%s7347_s6] ss:$0 sm:$0xff] }
 0x207   :  { %v4612_v15 = vpop.eup %4611  ;;  %v5596_v39 = vsub.f32 %v5467_v19, %v1013_v54  ;;  %v1672_v7 = vadd.f32 %v5307_v41, %v1671_v26  ;;  %v5607_v54 = vunpack.c.l.b16 %v1801_v53 }
 0x208   :  { %v1077_v28 = vmul.f32 %v4610_v56, %v1076_v59  ;;  %v1083_v34 = vmul.f32 %v4612_v15, %v1065_v47  ;;  %vm1089_vm5 = vweird.f32 %v4612_v15 }
 0x209   :  { %v1802_v31 = vpack.c.bf16 %v1672_v7, %v1672_v7  ;;  %v1029_v38 = vmul.f32 %v5596_v39, %v5596_v39  ;;  %v4575_v7 = vld [vmem:[%s7345_s0 + $0xc8] sm:$0xff]  ;;  %vm1090_vm7 = vmor %vm1088_vm6, %vm1089_vm5 }
 0x20a   :  { %v1081_v6 = vsel %vm1080_vm4, %v4610_v56, %v1077_v28  ;;  %v1084_v21 = vmul.f32 %v4612_v15, %v1083_v34  ;;  %v5623_v34 = vld [vmem:[%s7348_s7] ss:$0 sm:$0xff] }
 0x20b   :  { %v1152_v19 = vmul.f32 %v1081_v6, %v5441_v44  ;;  %v5609_v30 = vunpack.c.l.b16 %v1802_v31  ;;  %v1047_v59 = vsel %vm976_vm0, %v1029_v38, 0.0 }
 0x20c   :  { %v1085_v12 = vmul.f32 0.5, %v1084_v21  ;;  %1048 = vadd.xlane.f32.xlu2 %v1047_v59  ;;  %v5612_v26 = vpop.xlane.xlu0 %1042 }
 0x20d   :  { %v1164_v53 = vmul.f32 %v5604_v43, %v1152_v19 }
 0x20e   :  { %v1086_v56 = vsub.f32 1.5, %v1085_v12 }
 0x20f   :  { %v1674_v44 = vpop.f32.mrf.mxu0  ;;  %v1176_v21 = vadd.f32 %v5623_v34, %v1164_v53 }
 0x210   :  { %v1087_v31 = vmul.f32 %v4612_v15, %v1086_v56  ;;  %v1675_v59 = vadd.f32 %v5307_v41, %v1674_v44 }
 0x212   :  { %v1091_v38 = vsel %vm1090_vm7, %v4612_v15, %v1087_v31  ;;  %4339 = vmatmul.msk.bf16.gmra.mxu0 %vm976_vm0, %v4575_v7  ;;  %v1248_v7 = vpack.c.bf16 %v1176_v21, %v1176_v21  ;;  %v1803_v31 = vpack.c.bf16 %v1675_v59, %v1675_v59 }
 0x213   :  { %v1153_v6 = vmul.f32 %v1091_v38, %v5456_v63 }
 0x214   :  { %v5629_v12 = vpop.xlane.xlu1 %1045  ;;  %v997_v19 = vpop.xlane.xlu0 %996 }
 0x215   :  { %v1165_v28 = vmul.f32 %v5604_v43, %v1153_v6  ;;  %v1014_v18 = vmul.f32 %v5433_v52, %v997_v19  ;;  %v5641_v6 = vunpack.c.l.b16 %v1248_v7 }
 0x217   :  { %v5634_v56 = vsub.f32 %v5498_v11, %v1014_v18  ;;  %v1676_v47 = vpop.f32.mrf.mxu0  ;;  %v1177_v15 = vadd.f32 %v5623_v34, %v1165_v28  ;;  %v5645_v18 = vunpack.c.l.b16 %v1803_v31 }
 0x218   :  { %v1677_v63 = vadd.f32 %v5307_v41, %v1676_v47  ;;  %v4576_v47 = vld [vmem:[%s7345_s0 + $0xd0] sm:$0xff] }
 0x219   :  { %v1030_v53 = vmul.f32 %v5634_v56, %v5634_v56  ;;  %v1249_v44 = vpack.c.bf16 %v1177_v15, %v1177_v15 }
 0x21a   :  { %v1804_v38 = vpack.c.bf16 %v1677_v63, %v1677_v63 }
 0x21b   :  { %v1050_v3 = vsel %vm976_vm0, %v1030_v53, 0.0  ;;  %v5643_v19 = vunpack.c.l.b16 %v1249_v44 }
 0x21c   :  { %v5647_v11 = vunpack.c.l.b16 %v1804_v38  ;;  %v1000_v28 = vpop.xlane.xlu1 %999  ;;  %1051 = vadd.xlane.f32.xlu2 %v1050_v3 }
 0x21d   :  { %v1015_v21 = vmul.f32 %v5433_v52, %v1000_v28 }
 0x21f   :  { %v5658_v7 = vsub.f32 %v5516_v42, %v1015_v21  ;;  %v1679_v31 = vpop.f32.mrf.mxu0  ;;  %v4577_v21 = vld [vmem:[%s7345_s0 + $0xd8] sm:$0xff] }
 0x220   :  { %v1680_v53 = vadd.f32 %v5307_v41, %v1679_v31 }
 0x221   :  { %v1031_v63 = vmul.f32 %v5658_v7, %v5658_v7 }
 0x222   :  { %4340 = vmatmul.msk.bf16.gmra.mxu0 %vm976_vm0, %v4576_v47  ;;  %v1805_v38 = vpack.c.bf16 %v1680_v53, %v1680_v53  ;;  %v4578_v47 = vld [vmem:[%s7345_s0 + $0xe0] sm:$0xff] }
 0x223   :  { %v1053_v3 = vsel %vm976_vm0, %v1031_v63, 0.0 }
 0x224   :  { %1054 = vadd.xlane.f32.xlu0 %v1053_v3  ;;  %v5666_v15 = vunpack.c.l.b16 %v1805_v38 }
 0x227   :  { %v1681_v44 = vpop.f32.mrf.mxu0 }
 0x228   :  { %v1682_v28 = vadd.f32 %v5307_v41, %v1681_v44 }
 0x22a   :  { %v1806_v33 = vpack.c.bf16 %v1682_v28, %v1682_v28 }
 0x22c   :  { %v5668_v42 = vunpack.c.l.b16 %v1806_v33 }
 0x22f   :  { %v1684_v63 = vpop.f32.mrf.mxu0 }
 0x230   :  { %v1685_v31 = vadd.f32 %v5307_v41, %v1684_v63 }
 0x232   :  { %4341 = vmatmul.msk.bf16.gmra.mxu0 %vm976_vm0, %v4577_v21  ;;  %v1807_v53 = vpack.c.bf16 %v1685_v31, %v1685_v31 }
 0x234   :  { %v5678_v28 = vunpack.c.l.b16 %v1807_v53 }
 0x237   :  { %v1686_v3 = vpop.f32.mrf.mxu0 }
 0x238   :  { %v1687_v44 = vadd.f32 %v5307_v41, %v1686_v3 }
 0x23a   :  { %v1808_v38 = vpack.c.bf16 %v1687_v44, %v1687_v44 }
 0x23c   :  { %v5680_v33 = vunpack.c.l.b16 %v1808_v38 }
 0x23f   :  { %v1689_v59 = vpop.f32.mrf.mxu0 }
 0x240   :  { %v1690_v21 = vadd.f32 %v5307_v41, %v1689_v59  ;;  %v1040_v59 = vpop.xlane.xlu2 %1039 }
 0x242   :  { %4342 = vmatmul.msk.bf16.gmra.mxu0 %vm976_vm0, %v4578_v47  ;;  %v1809_v31 = vpack.c.bf16 %v1690_v21, %v1690_v21  ;;  %v1059_v47 = vmul.f32 %v5612_v26, %v5433_v52 }
 0x244   :  { %v5690_v44 = vunpack.c.l.b16 %v1809_v31 }
 0x247   :  { %v1691_v63 = vpop.f32.mrf.mxu0 }
 0x248   :  { %v1692_v3 = vadd.f32 %v5307_v41, %v1691_v63  ;;  %v1058_v63 = vmul.f32 %v1040_v59, %v5433_v52 }
 0x24a   :  { %v1810_v53 = vpack.c.bf16 %v1692_v3, %v1692_v3  ;;  %v1067_v3 = vadd.f32 1e-05, %v1059_v47  ;;  %v1066_v14 = vadd.f32 1e-05, %v1058_v63 }
 0x24c   :  { %v5692_v38 = vunpack.c.l.b16 %v1810_v53  ;;  %4613 = vrsqrt.f32 %v1067_v3  ;;  %vm1108_vm10 = vweird.f32 %v1067_v3  ;;  %vm1098_vm12 = vweird.f32 %v1066_v14 }
 0x24d   :  { %4615 = vrsqrt.f32 %v1066_v14 }
 0x24f   :  { %v1694_v50 = vpop.f32.mrf.mxu0 }
 0x250   :  { %v1695_v21 = vadd.f32 %v5307_v41, %v1694_v50  ;;  %v4580_v50 = vld [vmem:[%s7345_s0 + $0xf0] sm:$0xff] }
 0x252   :  { %4343 = vmatmul.msk.bf16.gmra.mxu0 %vm976_vm0, %v4579_v61  ;;  %v1811_v53 = vpack.c.bf16 %v1695_v21, %v1695_v21  ;;  %v4614_v59 = vpop.eup %4613 }
 0x253   :  { %v4616_v47 = vpop.eup %4615  ;;  %v1103_v21 = vmul.f32 %v4614_v59, %v1067_v3  ;;  %vm1109_vm8 = vweird.f32 %v4614_v59 }
 0x254   :  { %v5705_v36 = vunpack.c.l.b16 %v1811_v53  ;;  %v1093_v63 = vmul.f32 %v4616_v47, %v1066_v14  ;;  %vm1099_vm9 = vweird.f32 %v4616_v47  ;;  %vm1110_vm11 = vmor %vm1108_vm10, %vm1109_vm8 }
 0x255   :  { %v1104_v22 = vmul.f32 %v4614_v59, %v1103_v21  ;;  %vm1100_vm13 = vmor %vm1098_vm12, %vm1099_vm9  ;;  %vm2352_vm12 = vcmask 130048  }
 0x256   :  { %v1094_v40 = vmul.f32 %v4616_v47, %v1093_v63 }
 0x257   :  { %v1696_v31 = vpop.f32.mrf.mxu0 }
 0x258   :  { %v1697_v55 = vadd.f32 %v5307_v41, %v1696_v31 }
 0x25a   :  { %v1812_v29 = vpack.c.bf16 %v1697_v55, %v1697_v55 }
 0x25c   :  { %v5707_v45 = vunpack.c.l.b16 %v1812_v29  ;;  %v1060_v29 = vmul.f32 %v5629_v12, %v5433_v52  ;;  %v4581_v12 = vld [vmem:[%s7345_s0 + $0xf8] sm:$0xff] }
 0x25e   :  { %v1068_v62 = vadd.f32 1e-05, %v1060_v29 }
 0x25f   :  { %v1699_v26 = vpop.f32.mrf.mxu0 }
 0x260   :  { %v1700_v55 = vadd.f32 %v5307_v41, %v1699_v26  ;;  %4617 = vrsqrt.f32 %v1068_v62  ;;  %vm1118_vm15 = vweird.f32 %v1068_v62 }
 0x262   :  { %4344 = vmatmul.msk.bf16.gmra.mxu0 %vm976_vm0, %v4580_v50  ;;  %v1813_v53 = vpack.c.bf16 %v1700_v55, %v1700_v55  ;;  %v1105_v50 = vmul.f32 0.5, %v1104_v22  ;;  %v1095_v55 = vmul.f32 0.5, %v1094_v40 }
 0x264   :  { %v5719_v8 = vunpack.c.l.b16 %v1813_v53 }
 0x266   :  { %7417 = vst [vmem:[#allocation16_spill] sm:$0xff] %v5719_v8  ;;  %v4618_v21 = vpop.eup %4617 }
 0x267   :  { %v1701_v31 = vpop.f32.mrf.mxu0  ;;  %v1113_v63 = vmul.f32 %v4618_v21, %v1068_v62  ;;  %vm1119_vm14 = vweird.f32 %v4618_v21 }
 0x268   :  { %v1702_v61 = vadd.f32 %v5307_v41, %v1701_v31  ;;  %v1106_v31 = vsub.f32 1.5, %v1105_v50  ;;  %vm1120_vm1 = vmor %vm1118_vm15, %vm1119_vm14 }
 0x26a   :  { %v1814_v46 = vpack.c.bf16 %v1702_v61, %v1702_v61  ;;  %v1096_v61 = vsub.f32 1.5, %v1095_v55  ;;  %v1114_v55 = vmul.f32 %v4618_v21, %v1113_v63 }
 0x26c   :  { %v5721_v5 = vunpack.c.l.b16 %v1814_v46  ;;  %v1107_v46 = vmul.f32 %v4614_v59, %v1106_v31  ;;  %v1097_v22 = vmul.f32 %v4616_v47, %v1096_v61 }
 0x26e   :  { %7418 = vst [vmem:[#allocation17_spill] sm:$0xff] %v5721_v5  ;;  %v1111_v40 = vsel %vm1110_vm11, %v4614_v59, %v1107_v46  ;;  %vm1922_vm11 = vcmask 261120  }
 0x26f   :  { %v1704_v51 = vpop.f32.mrf.mxu0  ;;  %v1155_v5 = vmul.f32 %v1111_v40, %v5487_v60  ;;  %v7419_v60 = vpack.c.b16 %v5643_v19, %v5641_v6 }
 0x270   :  { %v1705_v29 = vadd.f32 %v5307_v41, %v1704_v51 }
 0x271   :  { %v1167_v14 = vmul.f32 %v5604_v43, %v1155_v5 }
 0x272   :  { %4345 = vmatmul.msk.bf16.gmra.mxu0 %vm976_vm0, %v4581_v12  ;;  %v1815_v26 = vpack.c.bf16 %v1705_v29, %v1705_v29  ;;  %v1101_v12 = vsel %vm1100_vm13, %v4616_v47, %v1097_v22  ;;  %v1115_v29 = vmul.f32 0.5, %v1114_v55 }
 0x273   :  { %v1154_v3 = vmul.f32 %v1101_v12, %v5470_v20  ;;  %v1179_v46 = vadd.f32 %v5623_v34, %v1167_v14 }
 0x274   :  { %v5732_v51 = vunpack.c.l.b16 %v1815_v26  ;;  %v1116_v26 = vsub.f32 1.5, %v1115_v29 }
 0x275   :  { %v1166_v59 = vmul.f32 %v5604_v43, %v1154_v3  ;;  %v1251_v12 = vpack.c.bf16 %v1179_v46, %v1179_v46 }
 0x276   :  { %v1117_v63 = vmul.f32 %v4618_v21, %v1116_v26 }
 0x277   :  { %v1706_v53 = vpop.f32.mrf.mxu0  ;;  %v1178_v22 = vadd.f32 %v5623_v34, %v1166_v59  ;;  %v1427_v14 = vunpack.c.l.b16 %v1251_v12 }
 0x278   :  { %v1707_v8 = vadd.f32 %v5307_v41, %v1706_v53  ;;  %v1121_v3 = vsel %vm1120_vm1, %v4618_v21, %v1117_v63 }
 0x279   :  { %v1250_v19 = vpack.c.bf16 %v1178_v22, %v1178_v22  ;;  %v1156_v59 = vmul.f32 %v1121_v3, %v5502_v16  ;;  %v5763_v16 = vld [vmem:[%s7346_s3] ss:$0 sm:$0xff] }
 0x27a   :  { %v1816_v50 = vpack.c.bf16 %v1707_v8, %v1707_v8 }
 0x27b   :  { %v1168_v63 = vmul.f32 %v5604_v43, %v1156_v59 }
 0x27c   :  { %v5734_v31 = vunpack.c.l.b16 %v1816_v50 }
 0x27e   :  { %v2134_v61 = vpack.c.b16 %v5734_v31, %v5732_v51 }
 0x27f   :  { %v1709_v25 = vpop.f32.mrf.mxu0  ;;  %v1049_v53 = vpop.xlane.xlu2 %1048 }
 0x280   :  { %v1061_v8 = vmul.f32 %v1049_v53, %v5433_v52  ;;  %v1710_v20 = vadd.f32 %v5307_v41, %v1709_v25 }
 0x282   :  { %v1069_v47 = vadd.f32 1e-05, %v1061_v8  ;;  %4346 = vmatmul.msk.bf16.gmra.mxu0 %vm976_vm0, %v7419_v60  ;;  %v1817_v40 = vpack.c.bf16 %v1710_v20, %v1710_v20 }
 0x284   :  { %4619 = vrsqrt.f32 %v1069_v47  ;;  %v5750_v25 = vunpack.c.l.b16 %v1817_v40  ;;  %vm1128_vm3 = vweird.f32 %v1069_v47 }
 0x287   :  { %v1711_v5 = vpop.f32.mrf.mxu0 }
 0x288   :  { %v1712_v50 = vadd.f32 %v5307_v41, %v1711_v5  ;;  %v1426_v41 = vunpack.c.l.b16 %v1250_v19  ;;  %v1180_v19 = vadd.f32 %v5623_v34, %v1168_v63 }
 0x28a   :  { %v4620_v55 = vpop.eup %4619  ;;  %v1818_v6 = vpack.c.bf16 %v1712_v50, %v1712_v50  ;;  %v1433_v22 = vpack.c.b16 %v1427_v14, %v1426_v41 }
 0x28b   :  { %v1123_v29 = vmul.f32 %v4620_v55, %v1069_v47  ;;  %vm1129_vm2 = vweird.f32 %v4620_v55 }
 0x28c   :  { %v5752_v53 = vunpack.c.l.b16 %v1818_v6  ;;  %vm1130_vm4 = vmor %vm1128_vm3, %vm1129_vm2 }
 0x28d   :  { %v1124_v8 = vmul.f32 %v4620_v55, %v1123_v29 }
 0x28e   :  { %v2135_v60 = vpack.c.b16 %v5752_v53, %v5750_v25  ;;  %v7447_v25 = vld [vmem:[#allocation9_spill] sm:$0xff]  ;;  %v7448_v53 = vld [vmem:[#allocation8_spill] sm:$0xff] }
 0x28f   :  { %v1125_v26 = vmul.f32 0.5, %v1124_v8  ;;  %v1714_v62 = vpop.f32.mrf.mxu0  ;;  %v1052_v20 = vpop.xlane.xlu2 %1051 }
 0x290   :  { %v1062_v46 = vmul.f32 %v1052_v20, %v5433_v52  ;;  %v1715_v50 = vadd.f32 %v5763_v16, %v1714_v62 }
 0x291   :  { %v1126_v21 = vsub.f32 1.5, %v1125_v26 }
 0x292   :  { %v1070_v5 = vadd.f32 1e-05, %v1062_v46  ;;  %4347 = vmatmul.msk.bf16.gmra.mxu0 %vm976_vm0, %v1433_v22  ;;  %v1819_v8 = vpack.c.bf16 %v1715_v50, %v1715_v50  ;;  %v1252_v46 = vpack.c.bf16 %v1180_v19, %v1180_v19 }
 0x293   :  { %v1127_v40 = vmul.f32 %v4620_v55, %v1126_v21 }
 0x294   :  { %4621 = vrsqrt.f32 %v1070_v5  ;;  %v5772_v22 = vunpack.c.l.b16 %v1819_v8  ;;  %v1428_v50 = vunpack.c.l.b16 %v1252_v46  ;;  %vm1138_vm6 = vweird.f32 %v1070_v5 }
 0x295   :  { %v1131_v12 = vsel %vm1130_vm4, %v4620_v55, %v1127_v40 }
 0x296   :  { %v1157_v6 = vmul.f32 %v1131_v12, %v5596_v39 }
 0x297   :  { %v1716_v3 = vpop.f32.mrf.mxu0  ;;  %v1055_v29 = vpop.xlane.xlu0 %1054 }
 0x298   :  { %v1169_v14 = vmul.f32 %v5604_v43, %v1157_v6  ;;  %v1717_v47 = vadd.f32 %v5763_v16, %v1716_v3  ;;  %v1063_v59 = vmul.f32 %v1055_v29, %v5433_v52 }
 0x29a   :  { %v4622_v41 = vpop.eup %4621  ;;  %v1820_v26 = vpack.c.bf16 %v1717_v47, %v1717_v47  ;;  %v1071_v20 = vadd.f32 1e-05, %v1063_v59  ;;  %v1181_v62 = vadd.f32 %v5623_v34, %v1169_v14 }
 0x29b   :  { %v1133_v55 = vmul.f32 %v4622_v41, %v1070_v5  ;;  %vm1139_vm5 = vweird.f32 %v4622_v41 }
 0x29c   :  { %v5774_v39 = vunpack.c.l.b16 %v1820_v26  ;;  %4623 = vrsqrt.f32 %v1071_v20  ;;  %v1253_v21 = vpack.c.bf16 %v1181_v62, %v1181_v62  ;;  %vm1140_vm7 = vmor %vm1138_vm6, %vm1139_vm5  ;;  %vm1148_vm9 = vweird.f32 %v1071_v20 }
 0x29d   :  { %v1134_v63 = vmul.f32 %v4622_v41, %v1133_v55 }
 0x29e   :  { %v1429_v12 = vunpack.c.l.b16 %v1253_v21 }
 0x29f   :  { %v1135_v52 = vmul.f32 0.5, %v1134_v63  ;;  %v1719_v6 = vpop.f32.mrf.mxu0 }
 0x2a0   :  { %v1434_v3 = vpack.c.b16 %v1429_v12, %v1428_v50  ;;  %v1720_v47 = vadd.f32 %v5763_v16, %v1719_v6 }
 0x2a1   :  { %v1136_v29 = vsub.f32 1.5, %v1135_v52 }
 0x2a2   :  { %v4624_v14 = vpop.eup %4623  ;;  %4348 = vmatmul.msk.bf16.gmra.mxu0 %vm976_vm0, %v1434_v3  ;;  %v1821_v21 = vpack.c.bf16 %v1720_v47, %v1720_v47 }
 0x2a3   :  { %v1137_v19 = vmul.f32 %v4622_v41, %v1136_v29  ;;  %v1143_v8 = vmul.f32 %v4624_v14, %v1071_v20  ;;  %vm1149_vm8 = vweird.f32 %v4624_v14 }
 0x2a4   :  { %vm1150_vm10 = vmor %vm1148_vm9, %vm1149_vm8  ;;  %v5783_v5 = vunpack.c.l.b16 %v1821_v21 }
 0x2a5   :  { %v1141_v59 = vsel %vm1140_vm7, %v4622_v41, %v1137_v19  ;;  %v1144_v26 = vmul.f32 %v4624_v14, %v1143_v8 }
 0x2a6   :  { %v1158_v62 = vmul.f32 %v1141_v59, %v5634_v56 }
 0x2a7   :  { %v1145_v46 = vmul.f32 0.5, %v1144_v26  ;;  %v1721_v55 = vpop.f32.mrf.mxu0 }
 0x2a8   :  { %v1722_v63 = vadd.f32 %v5763_v16, %v1721_v55  ;;  %v1170_v12 = vmul.f32 %v5604_v43, %v1158_v62 }
 0x2a9   :  { %v1146_v50 = vsub.f32 1.5, %v1145_v46 }
 0x2aa   :  { %v1822_v52 = vpack.c.bf16 %v1722_v63, %v1722_v63  ;;  %v1182_v56 = vadd.f32 %v5623_v34, %v1170_v12 }
 0x2ab   :  { %v1147_v3 = vmul.f32 %v4624_v14, %v1146_v50 }
 0x2ac   :  { %v5785_v6 = vunpack.c.l.b16 %v1822_v52  ;;  %v1254_v59 = vpack.c.bf16 %v1182_v56, %v1182_v56 }
 0x2ad   :  { %v1151_v41 = vsel %vm1150_vm10, %v4624_v14, %v1147_v3 }
 0x2ae   :  { %v1159_v29 = vmul.f32 %v1151_v41, %v5658_v7  ;;  %v1430_v46 = vunpack.c.l.b16 %v1254_v59 }
 0x2af   :  { %v1724_v8 = vpop.f32.mrf.mxu0 }
 0x2b0   :  { %v1171_v47 = vmul.f32 %v5604_v43, %v1159_v29  ;;  %v1725_v62 = vadd.f32 %v5763_v16, %v1724_v8 }
 0x2b2   :  { %v1183_v26 = vadd.f32 %v5623_v34, %v1171_v47  ;;  %v1823_v14 = vpack.c.bf16 %v1725_v62, %v1725_v62 }
 0x2b4   :  { %v1255_v20 = vpack.c.bf16 %v1183_v26, %v1183_v26  ;;  %v5796_v12 = vunpack.c.l.b16 %v1823_v14 }
 0x2b6   :  { %v1431_v55 = vunpack.c.l.b16 %v1255_v20 }
 0x2b7   :  { %v1726_v21 = vpop.f32.mrf.mxu0 }
 0x2b8   :  { %v1727_v63 = vadd.f32 %v5763_v16, %v1726_v21  ;;  %v1435_v50 = vpack.c.b16 %v1431_v55, %v1430_v46 }
 0x2ba   :  { %v1824_v7 = vpack.c.bf16 %v1727_v63, %v1727_v63  ;;  %4349 = vmatmul.msk.bf16.vlgmr.msra.gmra.mxu2 %vm976_vm0, %v1435_v50 }
 0x2bc   :  { %v5798_v52 = vunpack.c.l.b16 %v1824_v7 }
 0x2bf   :  { %v1729_v34 = vpop.f32.mrf.mxu0 }
 0x2c0   :  { %v1730_v3 = vadd.f32 %v5763_v16, %v1729_v34 }
 0x2c2   :  { %v1825_v56 = vpack.c.bf16 %v1730_v3, %v1730_v3 }
 0x2c4   :  { %v5804_v47 = vunpack.c.l.b16 %v1825_v56 }
 0x2c7   :  { %v1731_v41 = vpop.f32.mrf.mxu0 }
 0x2c8   :  { %v1732_v29 = vadd.f32 %v5763_v16, %v1731_v41 }
 0x2ca   :  { %v1826_v8 = vpack.c.bf16 %v1732_v29, %v1732_v29 }
 0x2cc   :  { %v5806_v59 = vunpack.c.l.b16 %v1826_v8 }
 0x2cf   :  { %v1734_v20 = vpop.f32.mrf.mxu0 }
 0x2d0   :  { %v1735_v62 = vadd.f32 %v5763_v16, %v1734_v20 }
 0x2d2   :  { %v1827_v55 = vpack.c.bf16 %v1735_v62, %v1735_v62 }
 0x2d4   :  { %v5812_v63 = vunpack.c.l.b16 %v1827_v55 }
 0x2d7   :  { %v1736_v46 = vpop.f32.mrf.mxu0 }
 0x2d8   :  { %v1737_v21 = vadd.f32 %v5763_v16, %v1736_v46 }
 0x2da   :  { %v1828_v14 = vpack.c.bf16 %v1737_v21, %v1737_v21 }
 0x2dc   :  { %v5814_v50 = vunpack.c.l.b16 %v1828_v14 }
 0x2df   :  { %v1739_v34 = vpop.f32.mrf.mxu0 }
 0x2e0   :  { %v1740_v3 = vadd.f32 %v5763_v16, %v1739_v34 }
 0x2e2   :  { %v1829_v56 = vpack.c.bf16 %v1740_v3, %v1740_v3 }
 0x2e4   :  { %v5820_v20 = vunpack.c.l.b16 %v1829_v56 }
 0x2e7   :  { %v1741_v41 = vpop.f32.mrf.mxu0 }
 0x2e8   :  { %v1742_v29 = vadd.f32 %v5763_v16, %v1741_v41  ;;  %v7420_v41 = vpack.c.b16 %v5325_v24, %v5323_v23  ;;  %v7422_v23 = vpack.c.b16 %v5354_v0, %v5352_v57  ;;  %v7424_v57 = vpack.c.b16 %v5609_v30, %v5607_v54 }
 0x2ea   :  { %v1830_v8 = vpack.c.bf16 %v1742_v29, %v1742_v29 }
 0x2ec   :  { %v5822_v62 = vunpack.c.l.b16 %v1830_v8 }
 0x2ef   :  { %v1744_v55 = vpop.f32.mrf.mxu0 }
 0x2f0   :  { %v1745_v21 = vadd.f32 %v5763_v16, %v1744_v55 }
 0x2f2   :  { %v1831_v7 = vpack.c.bf16 %v1745_v21, %v1745_v21 }
 0x2f4   :  { %v5828_v43 = vunpack.c.l.b16 %v1831_v7 }
 0x2f7   :  { %v1746_v14 = vpop.f32.mrf.mxu0 }
 0x2f8   :  { %v1747_v26 = vadd.f32 %v5763_v16, %v1746_v14 }
 0x2fa   :  { %v1832_v34 = vpack.c.bf16 %v1747_v26, %v1747_v26 }
 0x2fc   :  { %v5830_v3 = vunpack.c.l.b16 %v1832_v34 }
 0x2ff   :  { %v1749_v56 = vpop.f32.mrf.mxu0 }
 0x300   :  { %v1750_v29 = vadd.f32 %v5763_v16, %v1749_v56  ;;  %v7421_v56 = vpack.c.b16 %v5584_v9, %v5582_v58 }
 0x302   :  { %v1833_v46 = vpack.c.bf16 %v1750_v29, %v1750_v29 }
 0x304   :  { %v1919_v40 = vunpack.c.l.b16 %v1833_v46 }
 0x307   :  { %v1751_v8 = vpop.f32.mrf.mxu0 }
 0x308   :  { %v1752_v19 = vadd.f32 %v5763_v16, %v1751_v8 }
 0x30a   :  { %v1834_v55 = vpack.c.bf16 %v1752_v19, %v1752_v19 }
 0x30c   :  { %v1920_v21 = vunpack.c.l.b16 %v1834_v55 }
 0x30e   :  { %v1921_v14 = vpack.c.b16 %v1920_v21, %v1919_v40 }
 0x30f   :  { %v1754_v26 = vpop.f32.mrf.mxu0 }
 0x310   :  { %v1972_v7 = vsel %vm1922_vm11, %v1921_v14, 0  ;;  %v1755_v29 = vadd.f32 %v5763_v16, %v1754_v26 }
 0x311   :  { %1981 = vmatpush.bf16.xpose.msrb.mxu1 %v1972_v7  ;;  %4600 = vmatpush.bf16.xpose.msra.mxu3 %v1972_v7 }
 0x312   :  { %v2951_v24 = vpack.c.bf16 %v1755_v29, %v1755_v29 }
 0x317   :  { %v1756_v34 = vpop.f32.mrf.mxu0 }
 0x318   :  { %4350 = vmatmul.msk.bf16.vlgmr.msrb.gmra.mxu1 %vm1922_vm11, %v7420_v41  ;;  %4365 = vmatmul.msk.bf16.vlgmr.msra.gmra.mxu3 %vm1922_vm11, %v7421_v56  ;;  %v1757_v46 = vadd.f32 %v5763_v16, %v1756_v34  ;;  %v3037_v34 = vunpack.c.l.b16 %v2951_v24  ;;  %v7442_v24 = vld [vmem:[#allocation4_spill] sm:$0xff] }
 0x31a   :  { %v2952_v55 = vpack.c.bf16 %v1757_v46, %v1757_v46  ;;  %v7423_v46 = vpack.c.b16 %v5375_v17, %v5373_v1  ;;  %v7426_v1 = vpack.c.b16 %v5647_v11, %v5645_v18  ;;  %v7435_v11 = vld [vmem:[#allocation3_spill] sm:$0xff] }
 0x31c   :  { %v3038_v58 = vunpack.c.l.b16 %v2952_v55 }
 0x31f   :  { %v1759_v19 = vpop.f32.mrf.mxu0 }
 0x320   :  { %v1760_v40 = vadd.f32 %v5763_v16, %v1759_v19  ;;  %v3039_v19 = vpack.c.b16 %v3038_v58, %v3037_v34 }
 0x322   :  { %v1835_v21 = vpack.c.bf16 %v1760_v40, %v1760_v40 }
 0x324   :  { %v2145_v41 = vunpack.c.l.b16 %v1835_v21 }
 0x327   :  { %v1761_v8 = vpop.f32.mrf.mxu0 }
 0x328   :  { %v1762_v14 = vadd.f32 %v5763_v16, %v1761_v8  ;;  %4351 = vmatmul.msk.bf16.gmra.mxu1 %vm1922_vm11, %v7422_v23  ;;  %v7427_v23 = vpack.c.b16 %v5399_v35, %v5397_v2  ;;  %v7431_v2 = vpack.c.b16 %v5423_v13, %v5421_v10  ;;  %v7432_v35 = vpack.c.b16 %v5692_v38, %v5690_v44  ;;  %v7436_v10 = vld [vmem:[#allocation2_spill] sm:$0xff]  ;;  %v7441_v38 = vld [vmem:[#allocation5_spill] sm:$0xff] }
 0x329   :  { %v7437_v13 = vpack.c.b16 %v7435_v11, %v7436_v10 }
 0x32a   :  { %v1836_v9 = vpack.c.bf16 %v1762_v14, %v1762_v14  ;;  %v7425_v14 = vpack.c.b16 %v5387_v4, %v5385_v27  ;;  %v7429_v27 = vpack.c.b16 %v5411_v49, %v5409_v48  ;;  %v7430_v4 = vpack.c.b16 %v5680_v33, %v5678_v28 }
 0x32b   :  { %v7433_v48 = vpack.c.b16 %v5438_v37, %v5436_v32  ;;  %v7434_v49 = vpack.c.b16 %v5707_v45, %v5705_v36 }
 0x32c   :  { %v2146_v7 = vunpack.c.l.b16 %v1836_v9  ;;  %v7443_v9 = vpack.c.b16 %v7441_v38, %v7442_v24  ;;  %v7456_v38 = vld [vmem:[#allocation10_spill] sm:$0xff] }
 0x32e   :  { %v2147_v56 = vpack.c.b16 %v2146_v7, %v2145_v41 }
 0x330   :  { %v2197_v26 = vsel %vm1922_vm11, %v2147_v56, 0 }
 0x331   :  { %2206 = vmatpush.bf16.xpose.msrb.mxu3 %v2197_v26 }
 0x338   :  { %4352 = vmatmul.msk.bf16.gmra.mxu1 %vm1922_vm11, %v7423_v46  ;;  %4366 = vmatmul.msk.bf16.vlgmr.msrb.gmra.mxu3 %vm1922_vm11, %v7424_v57 }
 0x339   :  { %3096 = vmatpush.bf16.msra.mxu3 %v3039_v19 }
 0x33d   :  { %v1764_v0 = vpop.f32.mrf.mxu2 }
 0x33e   :  { %v1765_v40 = vadd.f32 %v5763_v16, %v1764_v0  ;;  %v7444_v0 = vld [vmem:[#allocation7_spill] sm:$0xff] }
 0x340   :  { %v2953_v8 = vpack.c.bf16 %v1765_v40, %v1765_v40  ;;  %v7445_v40 = vld [vmem:[#allocation6_spill] sm:$0xff] }
 0x342   :  { %v3260_v17 = vunpack.c.l.b16 %v2953_v8 }
 0x345   :  { %v1766_v29 = vpop.f32.mrf.mxu2 }
 0x346   :  { %v1767_v55 = vadd.f32 %v5763_v16, %v1766_v29  ;;  %v7428_v16 = vpack.c.b16 %v5668_v42, %v5666_v15  ;;  %v7438_v15 = vld [vmem:[#allocation17_spill] sm:$0xff]  ;;  %v7439_v42 = vld [vmem:[#allocation16_spill] sm:$0xff]  ;;  %v7446_v29 = vpack.c.b16 %v7444_v0, %v7445_v40 }
 0x347   :  { %v7440_v28 = vpack.c.b16 %v7438_v15, %v7439_v42 }
 0x348   :  { %v2954_v21 = vpack.c.bf16 %v1767_v55, %v1767_v55  ;;  %4353 = vmatmul.msk.bf16.gmra.mxu1 %vm1922_vm11, %v7425_v14  ;;  %4367 = vmatmul.msk.bf16.gmra.mxu3 %vm1922_vm11, %v7426_v1 }
 0x34a   :  { %v3261_v54 = vunpack.c.l.b16 %v2954_v21 }
 0x34c   :  { %v3262_v30 = vpack.c.b16 %v3261_v54, %v3260_v17 }
 0x34e   :  { %3319 = vmatpush.bf16.msra.mxu1 %v3262_v30 }
 0x358   :  { %4354 = vmatmul.msk.bf16.gmra.mxu1 %vm1922_vm11, %v7427_v23  ;;  %4368 = vmatmul.msk.bf16.gmra.mxu3 %vm1922_vm11, %v7428_v16 }
 0x368   :  { %4355 = vmatmul.msk.bf16.gmra.mxu1 %vm1922_vm11, %v7429_v27  ;;  %4369 = vmatmul.msk.bf16.gmra.mxu3 %vm1922_vm11, %v7430_v4  ;;  %v7450_v27 = vpack.c.b16 %v5774_v39, %v5772_v22 }
 0x378   :  { %4356 = vmatmul.msk.bf16.gmra.mxu1 %vm1922_vm11, %v7431_v2  ;;  %4370 = vmatmul.msk.bf16.gmra.mxu3 %vm1922_vm11, %v7432_v35 }
 0x388   :  { %4357 = vmatmul.msk.bf16.gmra.mxu1 %vm1922_vm11, %v7433_v48  ;;  %4371 = vmatmul.msk.bf16.gmra.mxu3 %vm1922_vm11, %v7434_v49 }
 0x395   :  { %v1983_v18 = vpop.f32.mrf.mxu1 }
 0x396   :  { %v5912_v32 = vmul.f32 0.17677669, %v1983_v18 }
 0x398   :  { %4358 = vmatmul.msk.bf16.gmra.mxu1 %vm1922_vm11, %v7437_v13  ;;  %4372 = vmatmul.msk.bf16.gmra.mxu3 %vm1922_vm11, %v7440_v28  ;;  %v2353_v36 = vsel %vm2352_vm12, %v5912_v32, -inf }
 0x39b   :  { %v5928_v58 = vpop.f32.mrf.mxu3 }
 0x39d   :  { %v1985_v33 = vpop.f32.mrf.mxu1 }
 0x39e   :  { %v5930_v7 = vmul.f32 0.17677669, %v1985_v33 }
 0x3a0   :  { %v2354_v19 = vsel %vm2352_vm12, %v5930_v7, -inf }
 0x3a3   :  { %v5938_v57 = vpop.f32.mrf.mxu3 }
 0x3a5   :  { %v1988_v37 = vpop.f32.mrf.mxu1 }
 0x3a6   :  { %v5914_v44 = vmul.f32 0.17677669, %v1988_v37 }
 0x3a8   :  { %v2355_v45 = vsel %vm2352_vm12, %v5914_v44, -inf  ;;  %4359 = vmatmul.msk.bf16.gmra.mxu1 %vm1922_vm11, %v7443_v9  ;;  %4373 = vmatmul.msk.bf16.gmra.mxu3 %vm1922_vm11, %v2134_v61  ;;  %v7458_v9 = vpack.c.b16 %v5785_v6, %v5783_v5 }
 0x3a9   :  { %v2356_v41 = vmax.f32 %v2353_v36, %v2355_v45  ;;  %v7455_v45 = vld [vmem:[#allocation11_spill] sm:$0xff] }
 0x3aa   :  { %v7457_v24 = vpack.c.b16 %v7455_v45, %v7456_v38 }
 0x3ad   :  { %v1990_v34 = vpop.f32.mrf.mxu1 }
 0x3ae   :  { %v5932_v56 = vmul.f32 0.17677669, %v1990_v34 }
 0x3b0   :  { %v2357_v26 = vsel %vm2352_vm12, %v5932_v56, -inf }
 0x3b1   :  { %v2358_v46 = vmax.f32 %v2354_v19, %v2357_v26 }
 0x3b5   :  { %v1993_v51 = vpop.f32.mrf.mxu1 }
 0x3b6   :  { %v5940_v31 = vmul.f32 0.17677669, %v1993_v51 }
 0x3b8   :  { %v2359_v61 = vsel %vm2352_vm12, %v5940_v31, -inf  ;;  %4360 = vmatmul.msk.bf16.gmra.mxu1 %vm1922_vm11, %v7446_v29  ;;  %4374 = vmatmul.msk.bf16.gmra.mxu3 %vm1922_vm11, %v2135_v60  ;;  %v7449_v60 = vpack.c.b16 %v7447_v25, %v7448_v53 }
 0x3b9   :  { %v2360_v8 = vmax.f32 %v2356_v41, %v2359_v61 }
 0x3bb   :  { %v2208_v55 = vpop.f32.mrf.mxu3 }
 0x3bc   :  { %v5970_v2 = vmul.f32 0.17677669, %v2208_v55  ;;  %v7461_v55 = vld [vmem:[#allocation13_spill] sm:$0xff] }
 0x3bd   :  { %v1995_v21 = vpop.f32.mrf.mxu1 }
 0x3be   :  { %v5952_v14 = vmul.f32 0.17677669, %v1995_v21  ;;  %7451 = vst [vmem:[#allocation3_spill] sm:$0xff] %v5970_v2  ;;  %v2422_v18 = vsel %vm2352_vm12, %v5970_v2, -inf  ;;  %v7462_v21 = vld [vmem:[#allocation12_spill] sm:$0xff] }
 0x3c0   :  { %v2361_v1 = vsel %vm2352_vm12, %v5952_v14, -inf }
 0x3c1   :  { %v5956_v17 = vmax.f32 %v2358_v46, %v2361_v1  ;;  %v7463_v1 = vpack.c.b16 %v7461_v55, %v7462_v21 }
 0x3c3   :  { %v2210_v54 = vpop.f32.mrf.mxu3 }
 0x3c4   :  { %v5980_v13 = vmul.f32 0.17677669, %v2210_v54  ;;  %v7464_v54 = vpack.c.b16 %v5798_v52, %v5796_v12 }
 0x3c5   :  { %v1998_v30 = vpop.f32.mrf.mxu1 }
 0x3c6   :  { %v5958_v23 = vmul.f32 0.17677669, %v1998_v30  ;;  %7453 = vst [vmem:[#allocation17_spill] sm:$0xff] %v5980_v13  ;;  %v2423_v42 = vsel %vm2352_vm12, %v5980_v13, -inf }
 0x3c8   :  { %v2363_v16 = vsel %vm2352_vm12, %v5958_v23, -inf  ;;  %4361 = vmatmul.msk.bf16.gmra.mxu1 %vm1922_vm11, %v7449_v60  ;;  %4375 = vmatmul.msk.bf16.gmra.mxu3 %vm1922_vm11, %v7450_v27 }
 0x3c9   :  { %v2364_v4 = vmax.f32 %v2360_v8, %v2363_v16 }
 0x3cb   :  { %v2213_v35 = vpop.f32.mrf.mxu3 }
 0x3cc   :  { %v5972_v48 = vmul.f32 0.17677669, %v2213_v35 }
 0x3cd   :  { %v5974_v49 = vpop.f32.mrf.mxu1 }
 0x3ce   :  { %7452 = vst [vmem:[#allocation2_spill] sm:$0xff] %v5972_v48  ;;  %v2424_v11 = vsel %vm2352_vm12, %v5972_v48, -inf }
 0x3cf   :  { %v2425_v10 = vmax.f32 %v2422_v18, %v2424_v11 }
 0x3d3   :  { %v2215_v22 = vpop.f32.mrf.mxu3 }
 0x3d4   :  { %v5982_v39 = vmul.f32 0.17677669, %v2215_v22  ;;  %v7467_v22 = vld [vmem:[#allocation15_spill] sm:$0xff] }
 0x3d5   :  { %v2003_v15 = vpop.f32.mrf.mxu1 }
 0x3d6   :  { %7454 = vst [vmem:[#allocation16_spill] sm:$0xff] %v5982_v39  ;;  %v2426_v28 = vsel %vm2352_vm12, %v5982_v39, -inf  ;;  %v5988_v33 = vmul.f32 0.17677669, %v2003_v15  ;;  %v7468_v15 = vld [vmem:[#allocation14_spill] sm:$0xff] }
 0x3d7   :  { %v2427_v37 = vmax.f32 %v2423_v42, %v2426_v28  ;;  %v7469_v42 = vpack.c.b16 %v7467_v22, %v7468_v15  ;;  %v7470_v28 = vpack.c.b16 %v5806_v59, %v5804_v47  ;;  %v7472_v47 = vpack.c.b16 %v5814_v50, %v5812_v63 }
 0x3d8   :  { %v2367_v36 = vsel %vm2352_vm12, %v5988_v33, -inf  ;;  %4362 = vmatmul.msk.bf16.gmra.mxu1 %vm1922_vm11, %v7457_v24  ;;  %4376 = vmatmul.msk.bf16.gmra.mxu3 %vm1922_vm11, %v7458_v9  ;;  %v7474_v63 = vpack.c.b16 %v5822_v62, %v5820_v20  ;;  %v7476_v62 = vpack.c.b16 %v5830_v3, %v5828_v43 }
 0x3d9   :  { %v2368_v41 = vmax.f32 %v2364_v4, %v2367_v36 }
 0x3db   :  { %v2218_v34 = vpop.f32.mrf.mxu3 }
 0x3dc   :  { %v6000_v19 = vmul.f32 0.17677669, %v2218_v34 }
 0x3dd   :  { %v6002_v26 = vpop.f32.mrf.mxu1 }
 0x3de   :  { %7459 = vst [vmem:[#allocation5_spill] sm:$0xff] %v6000_v19  ;;  %v2428_v46 = vsel %vm2352_vm12, %v6000_v19, -inf }
 0x3df   :  { %v2429_v51 = vmax.f32 %v2425_v10, %v2428_v46 }
 0x3e3   :  { %v2220_v61 = vpop.f32.mrf.mxu3 }
 0x3e4   :  { %v6006_v0 = vmul.f32 0.17677669, %v2220_v61 }
 0x3e5   :  { %v2008_v40 = vpop.f32.mrf.mxu1 }
 0x3e6   :  { %7460 = vst [vmem:[#allocation4_spill] sm:$0xff] %v6006_v0  ;;  %v2430_v29 = vsel %vm2352_vm12, %v6006_v0, -inf  ;;  %v6010_v5 = vmul.f32 0.17677669, %v2008_v40 }
 0x3e7   :  { %v6012_v6 = vmax.f32 %v2427_v37, %v2430_v29 }
 0x3e8   :  { %v2371_v8 = vsel %vm2352_vm12, %v6010_v5, -inf  ;;  %4363 = vmatmul.msk.bf16.gmra.mxu1 %vm1922_vm11, %v7463_v1  ;;  %4377 = vmatmul.msk.bf16.gmra.mxu3 %vm1922_vm11, %v7464_v54 }
 0x3e9   :  { %v2372_v30 = vmax.f32 %v2368_v41, %v2371_v8 }
 0x3eb   :  { %v2223_v16 = vpop.f32.mrf.mxu3 }
 0x3ec   :  { %v6024_v25 = vmul.f32 0.17677669, %v2223_v16 }
 0x3ed   :  { %v6026_v53 = vpop.f32.mrf.mxu1 }
 0x3ee   :  { %7465 = vst [vmem:[#allocation7_spill] sm:$0xff] %v6024_v25  ;;  %v2432_v60 = vsel %vm2352_vm12, %v6024_v25, -inf }
 0x3ef   :  { %v2433_v27 = vmax.f32 %v2429_v51, %v2432_v60 }
 0x3f3   :  { %v2225_v4 = vpop.f32.mrf.mxu3 }
 0x3f4   :  { %v6030_v35 = vmul.f32 0.17677669, %v2225_v4 }
 0x3f5   :  { %v2013_v18 = vpop.f32.mrf.mxu1 }
 0x3f6   :  { %7466 = vst [vmem:[#allocation6_spill] sm:$0xff] %v6030_v35  ;;  %v6034_v11 = vsel %vm2352_vm12, %v6030_v35, -inf  ;;  %v6036_v12 = vmul.f32 0.17677669, %v2013_v18 }
 0x3f8   :  { %v2375_v10 = vsel %vm2352_vm12, %v6036_v12, -inf  ;;  %4364 = vmatmul.msk.bf16.gmra.mxu1 %vm1922_vm11, %v7469_v42  ;;  %4378 = vmatmul.msk.bf16.gmra.mxu3 %vm1922_vm11, %v7470_v28 }
 0x3f9   :  { %v2376_v37 = vmax.f32 %v2372_v30, %v2375_v10 }
 0x3fb   :  { %v2228_v36 = vpop.f32.mrf.mxu3 }
 0x3fc   :  { %v6050_v45 = vmul.f32 0.17677669, %v2228_v36 }
 0x3fd   :  { %v2015_v38 = vpop.f32.mrf.mxu1 }
 0x3fe   :  { %7471 = vst [vmem:[#allocation9_spill] sm:$0xff] %v6050_v45  ;;  %v2436_v24 = vsel %vm2352_vm12, %v6050_v45, -inf }
 0x3ff   :  { %v2437_v9 = vmax.f32 %v2433_v27, %v2436_v24 }
 0x403   :  { %v6054_v41 = vpop.f32.mrf.mxu3 }
 0x405   :  { %v2018_v34 = vpop.f32.mrf.mxu1 }
 0x406   :  { %v6056_v46 = vmul.f32 0.17677669, %v2018_v34 }
 0x408   :  { %v2379_v51 = vsel %vm2352_vm12, %v6056_v46, -inf  ;;  %4379 = vmatmul.msk.bf16.gmra.mxu3 %vm1922_vm11, %v7472_v47 }
 0x409   :  { %v2380_v59 = vmax.f32 %v2376_v37, %v2379_v51 }
 0x40b   :  { %v2233_v61 = vpop.f32.mrf.mxu3 }
 0x40c   :  { %v6064_v40 = vmul.f32 0.17677669, %v2233_v61 }
 0x40d   :  { %v2020_v29 = vpop.f32.mrf.mxu1 }
 0x40e   :  { %7473 = vst [vmem:[#allocation8_spill] sm:$0xff] %v6064_v40  ;;  %v2440_v8 = vsel %vm2352_vm12, %v6064_v40, -inf }
 0x40f   :  { %v2441_v55 = vmax.f32 %v2437_v9, %v2440_v8 }
 0x413   :  { %v6068_v21 = vpop.f32.mrf.mxu3 }
 0x415   :  { %v2023_v1 = vpop.f32.mrf.mxu1 }
 0x416   :  { %v6070_v54 = vmul.f32 0.17677669, %v2023_v1 }
 0x418   :  { %v2383_v30 = vsel %vm2352_vm12, %v6070_v54, -inf  ;;  %4380 = vmatmul.msk.bf16.gmra.mxu3 %vm1922_vm11, %v7474_v63 }
 0x419   :  { %v6078_v50 = vmax.f32 %v2380_v59, %v2383_v30 }
 0x41b   :  { %v2238_v16 = vpop.f32.mrf.mxu3 }
 0x41c   :  { %v6080_v60 = vmul.f32 0.17677669, %v2238_v16  ;;  %v6139_v16 = vmul.f32 0.17677669, %v2015_v38 }
 0x41d   :  { %v2025_v27 = vpop.f32.mrf.mxu1 }
 0x41e   :  { %7475 = vst [vmem:[#allocation11_spill] sm:$0xff] %v6080_v60  ;;  %v2444_v4 = vsel %vm2352_vm12, %v6080_v60, -inf  ;;  %v6150_v60 = vmul.f32 0.17677669, %v2025_v27 }
 0x41f   :  { %v2445_v18 = vmax.f32 %v2441_v55, %v2444_v4 }
 0x423   :  { %v6084_v10 = vpop.f32.mrf.mxu3 }
 0x425   :  { %v2028_v22 = vpop.f32.mrf.mxu1 }
 0x426   :  { %v6086_v15 = vmul.f32 0.17677669, %v2028_v22 }
 0x428   :  { %v6090_v20 = vsel %vm2352_vm12, %v6086_v15, -inf  ;;  %4381 = vmatmul.msk.bf16.gmra.mxu3 %vm1922_vm11, %v7476_v62 }
 0x429   :  { %v2388_v42 = vmax.f32 %v6078_v50, %v6090_v20 }
 0x42b   :  { %v2243_v28 = vpop.f32.mrf.mxu3 }
 0x42c   :  { %v6098_v37 = vmul.f32 0.17677669, %v2243_v28  ;;  %v6127_v28 = vmul.f32 0.17677669, %v5974_v49 }
 0x42d   :  { %v2030_v36 = vpop.f32.mrf.mxu1 }
 0x42e   :  { %7477 = vst [vmem:[#allocation10_spill] sm:$0xff] %v6098_v37  ;;  %v2448_v24 = vsel %vm2352_vm12, %v6098_v37, -inf  ;;  %v6154_v45 = vmul.f32 0.17677669, %v2030_v36 }
 0x42f   :  { %v2449_v9 = vmax.f32 %v2445_v18, %v2448_v24 }
 0x430   :  { %v2389_v27 = vsel %vm2352_vm12, %v6154_v45, -inf }
 0x433   :  { %v6102_v34 = vpop.f32.mrf.mxu3 }
 0x435   :  { %v2033_v51 = vpop.f32.mrf.mxu1 }
 0x43b   :  { %v2248_v47 = vpop.f32.mrf.mxu3 }
 0x43c   :  { %v6104_v59 = vmul.f32 0.17677669, %v2248_v47  ;;  %v2365_v47 = vsel %vm2352_vm12, %v6127_v28, -inf }
 0x43d   :  { %v2035_v43 = vpop.f32.mrf.mxu1  ;;  %v2366_v52 = vmax.f32 %v5956_v17, %v2365_v47  ;;  %v6156_v17 = vmul.f32 0.17677669, %v2033_v51 }
 0x43e   :  { %7478 = vst [vmem:[#allocation13_spill] sm:$0xff] %v6104_v59  ;;  %v2452_v3 = vsel %vm2352_vm12, %v6104_v59, -inf  ;;  %v6160_v35 = vmul.f32 0.17677669, %v2035_v43 }
 0x43f   :  { %v6108_v61 = vmax.f32 %v2449_v9, %v2452_v3  ;;  %v6130_v9 = vmul.f32 0.17677669, %v6002_v26  ;;  %v6135_v3 = vmul.f32 0.17677669, %v6026_v53  ;;  %v6146_v26 = vmul.f32 0.17677669, %v2020_v29 }
 0x440   :  { %v2377_v53 = vsel %vm2352_vm12, %v6139_v16, -inf  ;;  %v2385_v29 = vsel %vm2352_vm12, %v6150_v60, -inf  ;;  %v2393_v43 = vsel %vm2352_vm12, %v6160_v35, -inf }
 0x441   :  { %v2373_v49 = vsel %vm2352_vm12, %v6135_v3, -inf  ;;  %v2381_v38 = vsel %vm2352_vm12, %v6146_v26, -inf }
 0x443   :  { %v6110_v8 = vpop.f32.mrf.mxu3 }
 0x445   :  { %v2038_v55 = vpop.f32.mrf.mxu1 }
 0x44b   :  { %v2253_v1 = vpop.f32.mrf.mxu3 }
 0x44c   :  { %v6112_v30 = vmul.f32 0.17677669, %v2253_v1  ;;  %v2369_v1 = vsel %vm2352_vm12, %v6130_v9, -inf }
 0x44d   :  { %v2040_v63 = vpop.f32.mrf.mxu1  ;;  %v2370_v59 = vmax.f32 %v2366_v52, %v2369_v1  ;;  %v6162_v52 = vmul.f32 0.17677669, %v2038_v55 }
 0x44e   :  { %7479 = vst [vmem:[#allocation12_spill] sm:$0xff] %v6112_v30  ;;  %v6116_v50 = vsel %vm2352_vm12, %v6112_v30, -inf }
 0x44f   :  { %v2374_v40 = vmax.f32 %v2370_v59, %v2373_v49  ;;  %v2391_v59 = vsel %vm2352_vm12, %v6156_v17, -inf  ;;  %v6168_v49 = vmul.f32 0.17677669, %v2040_v63  ;;  %v2395_v55 = vsel %vm2352_vm12, %v6162_v52, -inf }
 0x450   :  { %v2392_v0 = vmax.f32 %v2388_v42, %v2391_v59 }
 0x451   :  { %v2378_v47 = vmax.f32 %v2374_v40, %v2377_v53  ;;  %v2397_v63 = vsel %vm2352_vm12, %v6168_v49, -inf }
 0x452   :  { %v2396_v39 = vmax.f32 %v2392_v0, %v2395_v55  ;;  %v6202_v0 = vmul.f32 0.17677669, %v5938_v57 }
 0x453   :  { %v6120_v4 = vpop.f32.mrf.mxu3  ;;  %v2382_v1 = vmax.f32 %v2378_v47, %v2381_v38 }
 0x455   :  { %v2043_v18 = vpop.f32.mrf.mxu1  ;;  %v2386_v51 = vmax.f32 %v2382_v1, %v2385_v29 }
 0x456   :  { %v6170_v36 = vmul.f32 0.17677669, %v2043_v18 }
 0x457   :  { %v2390_v25 = vmax.f32 %v2386_v51, %v2389_v27 }
 0x458   :  { %v2399_v18 = vsel %vm2352_vm12, %v6170_v36, -inf }
 0x459   :  { %v2394_v19 = vmax.f32 %v2390_v25, %v2393_v43  ;;  %v2400_v42 = vmax.f32 %v2396_v39, %v2399_v18  ;;  %v6199_v25 = vmul.f32 0.17677669, %v5928_v58  ;;  %v2413_v58 = vsel %vm2352_vm12, %v6202_v0, -inf }
 0x45b   :  { %v6122_v22 = vpop.f32.mrf.mxu3  ;;  %v2398_v27 = vmax.f32 %v2394_v19, %v2397_v63 }
 0x45d   :  { %v2045_v20 = vpop.f32.mrf.mxu1 }
 0x45e   :  { %v6178_v38 = vmul.f32 0.17677669, %v2045_v20 }
 0x460   :  { %v2401_v20 = vsel %vm2352_vm12, %v6178_v38, -inf }
 0x463   :  { %v6124_v62 = vpop.f32.mrf.mxu3 }
 0x465   :  { %v2048_v24 = vpop.f32.mrf.mxu1 }
 0x466   :  { %v6180_v47 = vmul.f32 0.17677669, %v2048_v24 }
 0x468   :  { %v2403_v24 = vsel %vm2352_vm12, %v6180_v47, -inf }
 0x469   :  { %v2404_v48 = vmax.f32 %v2400_v42, %v2403_v24 }
 0x46b   :  { %v6142_v30 = vpop.f32.mrf.mxu3 }
 0x46d   :  { %v2050_v37 = vpop.f32.mrf.mxu1 }
 0x46e   :  { %v6186_v29 = vmul.f32 0.17677669, %v2050_v37  ;;  %v2402_v37 = vmax.f32 %v2398_v27, %v2401_v20  ;;  %v2411_v20 = vsel %vm2352_vm12, %v6199_v25, -inf }
 0x470   :  { %v2405_v59 = vsel %vm2352_vm12, %v6186_v29, -inf }
 0x471   :  { %v2406_v55 = vmax.f32 %v2402_v37, %v2405_v59 }
 0x473   :  { %v6172_v40 = vpop.f32.mrf.mxu3 }
 0x475   :  { %v2053_v53 = vpop.f32.mrf.mxu1 }
 0x476   :  { %v6188_v1 = vmul.f32 0.17677669, %v2053_v53 }
 0x478   :  { %v2407_v51 = vsel %vm2352_vm12, %v6188_v1, -inf }
 0x479   :  { %v2408_v19 = vmax.f32 %v2404_v48, %v2407_v51 }
 0x47b   :  { %v6206_v39 = vpop.f32.mrf.mxu3  ;;  %v2412_v24 = vmax.f32 %v2408_v19, %v2411_v20 }
 0x47d   :  { %v2055_v53 = vpop.f32.mrf.mxu1 }
 0x47e   :  { %v6204_v43 = vmul.f32 0.17677669, %v2055_v53 }
 0x480   :  { %v2409_v63 = vsel %vm2352_vm12, %v6204_v43, -inf }
 0x481   :  { %v2410_v18 = vmax.f32 %v2406_v55, %v2409_v63 }
 0x483   :  { %v2414_v27 = vmax.f32 %v2410_v18, %v2413_v58  ;;  %v6214_v13 = vpop.f32.mrf.mxu3 }
 0x485   :  { %v2415_v57 = vmax.f32 %v2412_v24, %v2414_v27 }
 0x487   :  { %v2416_v42 = vrot.slane %v2415_v57, 4 }
 0x489   :  { %v2417_v53 = vmax.f32 %v2415_v57, %v2416_v42 }
 0x48b   :  { %v2418_v48 = vrot.slane %v2417_v53, 2  ;;  %v6218_v2 = vpop.f32.mrf.mxu3 }
 0x48d   :  { %v2419_v59 = vmax.f32 %v2417_v53, %v2418_v48  ;;  %v6260_v48 = vmul.f32 0.17677669, %v6068_v21 }
 0x48f   :  { %v2420_v51 = vrot.slane %v2419_v59, 1  ;;  %v2442_v21 = vsel %vm2352_vm12, %v6260_v48, -inf }
 0x491   :  { %v6216_v37 = vmax.f32 %v2419_v59, %v2420_v51  ;;  %v6274_v59 = vmul.f32 0.17677669, %v6102_v34 }
 0x493   :  { %v2491_v55 = vsub.f32 %v5912_v32, %v6216_v37  ;;  %v2492_v63 = vsub.f32 %v5930_v7, %v6216_v37  ;;  %v2493_v19 = vsub.f32 %v5914_v44, %v6216_v37  ;;  %v2494_v18 = vsub.f32 %v5932_v56, %v6216_v37  ;;  %v6257_v53 = vpop.f32.mrf.mxu3 }
 0x494   :  { %v2495_v20 = vsub.f32 %v5940_v31, %v6216_v37  ;;  %v2496_v58 = vsub.f32 %v5952_v14, %v6216_v37  ;;  %v2497_v24 = vsub.f32 %v5958_v23, %v6216_v37  ;;  %v2499_v32 = vsub.f32 %v5988_v33, %v6216_v37 }
 0x495   :  { %v2501_v7 = vsub.f32 %v6010_v5, %v6216_v37  ;;  %v6249_v33 = vmul.f32 0.17677669, %v6054_v41  ;;  %v2555_v51 = vmul.f32 1.442695, %v2491_v55  ;;  %v2557_v23 = vmul.f32 1.442695, %v2492_v63 }
 0x496   :  { %v2559_v27 = vmul.f32 1.442695, %v2493_v19  ;;  %v6269_v14 = vmul.f32 0.17677669, %v6084_v10  ;;  %v2561_v42 = vmul.f32 1.442695, %v2494_v18  ;;  %v7480_v55 = vmax.f32 %v6012_v6, %v6034_v11 }
 0x497   :  { %v2438_v57 = vsel %vm2352_vm12, %v6249_v33, -inf  ;;  %4625 = vpow2.f32 %v2555_v51  ;;  %v2563_v41 = vmul.f32 1.442695, %v2495_v20  ;;  %v6280_v19 = vmul.f32 0.17677669, %v6110_v8 }
 0x498   :  { %4627 = vpow2.f32 %v2557_v23  ;;  %v2439_v63 = vmax.f32 %v7480_v55, %v2438_v57  ;;  %v2446_v10 = vsel %vm2352_vm12, %v6269_v14, -inf  ;;  %v2498_v18 = vsub.f32 %v6127_v28, %v6216_v37 }
 0x499   :  { %4629 = vpow2.f32 %v2559_v27  ;;  %v2565_v23 = vmul.f32 1.442695, %v2496_v58  ;;  %v2450_v6 = vsel %vm2352_vm12, %v6274_v59, -inf  ;;  %v6293_v11 = vmul.f32 0.17677669, %v6120_v4 }
 0x49a   :  { %4631 = vpow2.f32 %v2561_v42  ;;  %v2443_v34 = vmax.f32 %v2439_v63, %v2442_v21  ;;  %v2567_v8 = vmul.f32 1.442695, %v2497_v24  ;;  %v2454_v28 = vsel %vm2352_vm12, %v6280_v19, -inf }
 0x49b   :  { %v6286_v51 = vpop.f32.mrf.mxu3  ;;  %4633 = vpow2.f32 %v2563_v41  ;;  %v2500_v42 = vsub.f32 %v6130_v9, %v6216_v37  ;;  %v2569_v21 = vmul.f32 1.442695, %v2498_v18  ;;  %v6306_v41 = vmul.f32 0.17677669, %v6122_v22 }
 0x49c   :  { %v2447_v57 = vmax.f32 %v2443_v34, %v2446_v10  ;;  %4635 = vpow2.f32 %v2565_v23  ;;  %v6309_v24 = vmul.f32 0.17677669, %v6124_v62  ;;  %v2458_v9 = vsel %vm2352_vm12, %v6293_v11, -inf }
 0x49d   :  { %v6288_v27 = vpop.eup %4625  ;;  %4637 = vpow2.f32 %v2567_v8  ;;  %v2571_v18 = vmul.f32 1.442695, %v2499_v32  ;;  %v6321_v22 = vmul.f32 0.17677669, %v6172_v40  ;;  %v2502_v31 = vsub.f32 %v6135_v3, %v6216_v37 }
 0x49e   :  { %v6295_v20 = vpop.eup %4627  ;;  %v2683_v55 = vsel %vm2352_vm12, %v6288_v27, 0.0  ;;  %v2451_v4 = vmax.f32 %v2447_v57, %v2450_v6  ;;  %v6318_v6 = vmul.f32 0.17677669, %v6142_v30  ;;  %4639 = vpow2.f32 %v2569_v21 }
 0x49f   :  { %v6299_v58 = vpop.eup %4629  ;;  %v2684_v63 = vsel %vm2352_vm12, %v6295_v20, 0.0  ;;  %v2573_v56 = vmul.f32 1.442695, %v2500_v42  ;;  %v2460_v30 = vsel %vm2352_vm12, %v6306_v41, -inf  ;;  %v2462_v40 = vsel %vm2352_vm12, %v6309_v24, -inf }
 0x4a0   :  { %v6313_v10 = vpop.eup %4631  ;;  %v2685_v23 = vadd.f32 %v2684_v63, %v2683_v55  ;;  %v2455_v34 = vmax.f32 %v2451_v4, %v2454_v28  ;;  %v2686_v62 = vsel %vm2352_vm12, %v6299_v58, 0.0  ;;  %v6338_v63 = vmul.f32 0.17677669, %v6206_v39 }
 0x4a1   :  { %v6325_v57 = vpop.eup %4633  ;;  %v2688_v28 = vsel %vm2352_vm12, %v6313_v10, 0.0  ;;  %4641 = vpow2.f32 %v2571_v18  ;;  %v2575_v3 = vmul.f32 1.442695, %v2501_v7  ;;  %v2464_v21 = vsel %vm2352_vm12, %v6318_v6, -inf }
 0x4a2   :  { %7481 = vst [vmem:[#allocation15_spill] sm:$0xff] %v6325_v57  ;;  %v2687_v8 = vadd.f32 %v2686_v62, %v2685_v23  ;;  %v2459_v55 = vmax.f32 %v2455_v34, %v2458_v9  ;;  %v6335_v4 = vpop.eup %4635  ;;  %v2466_v9 = vsel %vm2352_vm12, %v6321_v22, -inf  ;;  %v2690_v23 = vsel %vm2352_vm12, %v6325_v57, 0.0 }
 0x4a3   :  { %v2280_v32 = vpop.f32.mrf.mxu3  ;;  %v6350_v34 = vmul.f32 0.17677669, %v6214_v13  ;;  %v6352_v39 = vpop.eup %4637  ;;  %v2504_v18 = vsub.f32 %v6139_v16, %v6216_v37  ;;  %4643 = vpow2.f32 %v2573_v56  ;;  %v2577_v5 = vmul.f32 1.442695, %v2502_v31 }
 0x4a4   :  { %v2689_v42 = vadd.f32 %v2688_v28, %v2687_v8  ;;  %v7482_v62 = vmax.f32 %v6108_v61, %v6116_v50  ;;  %v2463_v28 = vmax.f32 %v2459_v55, %v2462_v40  ;;  %v2692_v44 = vsel %vm2352_vm12, %v6335_v4, 0.0  ;;  %v6361_v57 = vpop.eup %4639 }
 0x4a5   :  { %v2468_v13 = vsel %vm2352_vm12, %v6338_v63, -inf  ;;  %4645 = vpow2.f32 %v2575_v3  ;;  %v7483_v16 = vsub.f32 %v6036_v12, %v6216_v37  ;;  %v2694_v61 = vsel %vm2352_vm12, %v6352_v39, 0.0 }
 0x4a6   :  { %v2691_v7 = vadd.f32 %v2690_v23, %v2689_v42  ;;  %v2461_v8 = vmax.f32 %v7482_v62, %v2460_v30  ;;  %v2467_v23 = vmax.f32 %v2463_v28, %v2466_v9  ;;  %v2470_v50 = vsel %vm2352_vm12, %v6350_v34, -inf }
 0x4a7   :  { %v2579_v56 = vmul.f32 1.442695, %v7483_v16  ;;  %v6372_v55 = vpop.eup %4641  ;;  %v2506_v30 = vsub.f32 %v6146_v26, %v6216_v37  ;;  %4647 = vpow2.f32 %v2577_v5  ;;  %v2581_v40 = vmul.f32 1.442695, %v2504_v18 }
 0x4a8   :  { %v2693_v31 = vadd.f32 %v2692_v44, %v2691_v7  ;;  %v2465_v42 = vmax.f32 %v2461_v8, %v2464_v21  ;;  %v2696_v44 = vsel %vm2352_vm12, %v6361_v57, 0.0  ;;  %v6379_v21 = vmul.f32 0.17677669, %v6218_v2 }
 0x4a9   :  { %v6382_v9 = vmul.f32 0.17677669, %v6257_v53  ;;  %v6384_v7 = vpop.eup %4643  ;;  %4649 = vpow2.f32 %v2579_v56  ;;  %v7484_v26 = vsub.f32 %v6056_v46, %v6216_v37  ;;  %v2471_v8 = vmax.f32 %v2467_v23, %v2470_v50 }
 0x4aa   :  { %v2695_v3 = vadd.f32 %v2694_v61, %v2693_v31  ;;  %v2469_v12 = vmax.f32 %v2465_v42, %v2468_v13  ;;  %v2510_v28 = vsub.f32 %v6154_v45, %v6216_v37  ;;  %v2698_v13 = vsel %vm2352_vm12, %v6372_v55, 0.0 }
 0x4ab   :  { %v2283_v62 = vpop.f32.mrf.mxu3  ;;  %v2583_v5 = vmul.f32 1.442695, %v7484_v26  ;;  %v6394_v2 = vmul.f32 0.17677669, %v6286_v51  ;;  %v6396_v53 = vmul.f32 0.17677669, %v2280_v32  ;;  %v6398_v16 = vpop.eup %4645  ;;  %v2511_v56 = vsub.f32 %v6156_v17, %v6216_v37 }
 0x4ac   :  { %v2697_v18 = vadd.f32 %v2696_v44, %v2695_v3  ;;  %7485 = vst [vmem:[#allocation14_spill] sm:$0xff] %v6398_v16  ;;  %4651 = vpow2.f32 %v2581_v40  ;;  %v2585_v46 = vmul.f32 1.442695, %v2506_v30  ;;  %v2700_v42 = vsel %vm2352_vm12, %v6384_v7, 0.0 }
 0x4ad   :  { %v2472_v45 = vsel %vm2352_vm12, %v6379_v21, -inf  ;;  %v2474_v51 = vsel %vm2352_vm12, %v6382_v9, -inf  ;;  %v6408_v23 = vmul.f32 0.17677669, %v2283_v62  ;;  %v6410_v32 = vpop.eup %4647  ;;  %v2512_v61 = vsub.f32 %v6160_v35, %v6216_v37 }
 0x4ae   :  { %v2699_v31 = vadd.f32 %v2698_v13, %v2697_v18  ;;  %7486 = vst [vmem:[#allocation18_spill] sm:$0xff] %v6410_v32  ;;  %4653 = vpow2.f32 %v2583_v5  ;;  %v7487_v17 = vsub.f32 %v6070_v54, %v6216_v37  ;;  %v7488_v40 = vsub.f32 %v6150_v60, %v6216_v37 }
 0x4af   :  { %v2702_v44 = vsel %vm2352_vm12, %v6398_v16, 0.0  ;;  %v2476_v62 = vsel %vm2352_vm12, %v6394_v2, -inf  ;;  %v2478_v26 = vsel %vm2352_vm12, %v6396_v53, -inf  ;;  %v6426_v35 = vpop.eup %4649  ;;  %4655 = vpow2.f32 %v2585_v46 }
 0x4b0   :  { %v2587_v50 = vmul.f32 1.442695, %v7487_v17  ;;  %v2701_v30 = vadd.f32 %v2700_v42, %v2699_v31  ;;  %v2589_v3 = vmul.f32 1.442695, %v7488_v40  ;;  %v2473_v54 = vmax.f32 %v2469_v12, %v2472_v45 }
 0x4b1   :  { %v2475_v18 = vmax.f32 %v2471_v8, %v2474_v51  ;;  %v7489_v60 = vsub.f32 %v6086_v15, %v6216_v37  ;;  %v2704_v42 = vsel %vm2352_vm12, %v6410_v32, 0.0  ;;  %v2480_v17 = vsel %vm2352_vm12, %v6408_v23, -inf }
 0x4b2   :  { %v2703_v5 = vadd.f32 %v2702_v44, %v2701_v30  ;;  %v6437_v16 = vpop.eup %4651  ;;  %4657 = vpow2.f32 %v2587_v50  ;;  %v2477_v30 = vmax.f32 %v2473_v54, %v2476_v62  ;;  %v2593_v8 = vmul.f32 1.442695, %v2510_v28 }
 0x4b3   :  { %v2285_v13 = vpop.f32.mrf.mxu3  ;;  %v2591_v31 = vmul.f32 1.442695, %v7489_v60  ;;  %v2479_v12 = vmax.f32 %v2475_v18, %v2478_v26  ;;  %v2706_v45 = vsel %vm2352_vm12, %v6426_v35, 0.0  ;;  %4659 = vpow2.f32 %v2589_v3 }
 0x4b4   :  { %v6435_v40 = vmul.f32 0.17677669, %v2285_v13  ;;  %v2705_v46 = vadd.f32 %v2704_v42, %v2703_v5  ;;  %v6443_v51 = vpop.eup %4653  ;;  %v2481_v60 = vmax.f32 %v2477_v30, %v2480_v17  ;;  %v2513_v32 = vsub.f32 %v6162_v52, %v6216_v37 }
 0x4b5   :  { %v2595_v50 = vmul.f32 1.442695, %v2511_v56  ;;  %v2708_v62 = vsel %vm2352_vm12, %v6437_v16, 0.0  ;;  %v6449_v28 = vpop.eup %4655  ;;  %4661 = vpow2.f32 %v2591_v31  ;;  %v2597_v26 = vmul.f32 1.442695, %v2512_v61 }
 0x4b6   :  { %v2482_v15 = vsel %vm2352_vm12, %v6435_v40, -inf  ;;  %v2707_v44 = vadd.f32 %v2706_v45, %v2705_v46  ;;  %v2710_v18 = vsel %vm2352_vm12, %v6443_v51, 0.0  ;;  %v2514_v42 = vsub.f32 %v6168_v49, %v6216_v37 }
 0x4b7   :  { %v2483_v13 = vmax.f32 %v2479_v12, %v2482_v15  ;;  %4663 = vpow2.f32 %v2593_v8  ;;  %v2515_v17 = vsub.f32 %v6170_v36, %v6216_v37  ;;  %v2712_v61 = vsel %vm2352_vm12, %v6449_v28, 0.0 }
 0x4b8   :  { %v2709_v5 = vadd.f32 %v2708_v62, %v2707_v44  ;;  %v6453_v3 = vpop.eup %4657  ;;  %4665 = vpow2.f32 %v2595_v50  ;;  %v2599_v46 = vmul.f32 1.442695, %v2513_v32  ;;  %v2601_v8 = vmul.f32 1.442695, %v2514_v42 }
 0x4b9   :  { %v2484_v54 = vmax.f32 %v2481_v60, %v2483_v13  ;;  %v6461_v31 = vpop.eup %4659  ;;  %4667 = vpow2.f32 %v2597_v26  ;;  %v2714_v45 = vsel %vm2352_vm12, %v6453_v3, 0.0  ;;  %v2603_v13 = vmul.f32 1.442695, %v2515_v17 }
 0x4ba   :  { %v2711_v52 = vadd.f32 %v2710_v18, %v2709_v5  ;;  %v2716_v36 = vsel %vm2352_vm12, %v6461_v31, 0.0  ;;  %4669 = vpow2.f32 %v2599_v46  ;;  %v7493_v26 = vsub.f32 %v6178_v38, %v6216_v37 }
 0x4bb   :  { %v2485_v56 = vrot.slane %v2484_v54, 4  ;;  %v6465_v49 = vpop.eup %4661  ;;  %v2521_v42 = vsub.f32 %v6199_v25, %v6216_v37  ;;  %4671 = vpow2.f32 %v2601_v8  ;;  %v2522_v17 = vsub.f32 %v6202_v0, %v6216_v37 }
 0x4bc   :  { %v2713_v30 = vadd.f32 %v2712_v61, %v2711_v52  ;;  %7490 = vst [vmem:[#allocation19_spill] sm:$0xff] %v6465_v49  ;;  %v2605_v5 = vmul.f32 1.442695, %v7493_v26  ;;  %v7495_v61 = vsub.f32 %v6180_v47, %v6216_v37  ;;  %v7496_v38 = vsub.f32 %v6186_v29, %v6216_v37 }
 0x4bd   :  { %v2486_v12 = vmax.f32 %v2484_v54, %v2485_v56  ;;  %v6469_v60 = vpop.eup %4663  ;;  %v2718_v54 = vsel %vm2352_vm12, %v6465_v49, 0.0  ;;  %4673 = vpow2.f32 %v2603_v13  ;;  %v7497_v25 = vsub.f32 %v6188_v1, %v6216_v37  ;;  %v7500_v1 = vld [vmem:[#allocation3_spill] sm:$0xff] }
 0x4be   :  { %v2715_v15 = vadd.f32 %v2714_v45, %v2713_v30  ;;  %7491 = vst [vmem:[#allocation20_spill] sm:$0xff] %v6469_v60  ;;  %v6471_v32 = vpop.eup %4665  ;;  %v2607_v46 = vmul.f32 1.442695, %v7495_v61  ;;  %v2609_v30 = vmul.f32 1.442695, %v7496_v38  ;;  %4675 = vpow2.f32 %v2605_v5  ;;  %v7502_v5 = vld [vmem:[#allocation2_spill] sm:$0xff] }
 0x4bf   :  { %v2487_v44 = vrot.slane %v2486_v12, 2  ;;  %7492 = vst [vmem:[#allocation21_spill] sm:$0xff] %v6471_v32  ;;  %v6478_v18 = vpop.eup %4667  ;;  %v2611_v45 = vmul.f32 1.442695, %v7497_v25  ;;  %v7498_v47 = vsub.f32 %v6204_v43, %v6216_v37  ;;  %v2722_v29 = vsel %vm2352_vm12, %v6471_v32, 0.0  ;;  %v7503_v43 = vld [vmem:[#allocation16_spill] sm:$0xff] }
 0x4c0   :  { %v2717_v50 = vadd.f32 %v2716_v36, %v2715_v15  ;;  %7494 = vst [vmem:[#allocation22_spill] sm:$0xff] %v6478_v18  ;;  %v6504_v36 = vpop.eup %4669  ;;  %v7505_v61 = vld [vmem:[#allocation4_spill] sm:$0xff]  ;;  %4677 = vpow2.f32 %v2607_v46  ;;  %v7511_v32 = vld [vmem:[#allocation11_spill] sm:$0xff] }
 0x4c1   :  { %v2488_v62 = vmax.f32 %v2486_v12, %v2487_v44  ;;  %v2720_v12 = vsel %vm2352_vm12, %v6469_v60, 0.0  ;;  %v2613_v0 = vmul.f32 1.442695, %v7498_v47  ;;  %v2724_v44 = vsel %vm2352_vm12, %v6478_v18, 0.0  ;;  %7499 = vst [vmem:[#allocation23_spill] sm:$0xff] %v6504_v36  ;;  %v7510_v18 = vld [vmem:[#allocation8_spill] sm:$0xff] }
 0x4c2   :  { %v2719_v52 = vadd.f32 %v2718_v54, %v2717_v50  ;;  %4679 = vpow2.f32 %v2609_v30  ;;  %v2617_v30 = vmul.f32 1.442695, %v2522_v17 }
 0x4c3   :  { %v2489_v56 = vrot.slane %v2488_v62, 1  ;;  %4681 = vpow2.f32 %v2611_v45 }
 0x4c4   :  { %v2721_v8 = vadd.f32 %v2720_v12, %v2719_v52  ;;  %v7504_v52 = vld [vmem:[#allocation5_spill] sm:$0xff]  ;;  %v7506_v12 = vld [vmem:[#allocation7_spill] sm:$0xff]  ;;  %4683 = vpow2.f32 %v2613_v0 }
 0x4c5   :  { %v6495_v15 = vmax.f32 %v2488_v62, %v2489_v56  ;;  %v7501_v62 = vld [vmem:[#allocation17_spill] sm:$0xff] }
 0x4c6   :  { %v2723_v13 = vadd.f32 %v2722_v29, %v2721_v8  ;;  %v6520_v8 = vpop.eup %4671  ;;  %v7508_v29 = vld [vmem:[#allocation6_spill] sm:$0xff] }
 0x4c7   :  { %v2523_v50 = vsub.f32 %v7500_v1, %v6495_v15  ;;  %v2524_v26 = vsub.f32 %v7501_v62, %v6495_v15  ;;  %v2525_v54 = vsub.f32 %v7502_v5, %v6495_v15  ;;  %v2526_v37 = vsub.f32 %v7503_v43, %v6495_v15  ;;  %7507 = vst [vmem:[#allocation3_spill] sm:$0xff] %v6520_v8  ;;  %v7509_v62 = vld [vmem:[#allocation9_spill] sm:$0xff]  ;;  %v6532_v60 = vpop.eup %4673 }
 0x4c8   :  { %v2527_v56 = vsub.f32 %v7504_v52, %v6495_v15  ;;  %v2528_v38 = vsub.f32 %v7505_v61, %v6495_v15  ;;  %v2529_v25 = vsub.f32 %v7506_v12, %v6495_v15  ;;  %v2725_v47 = vadd.f32 %v2724_v44, %v2723_v13  ;;  %7512 = vst [vmem:[#allocation17_spill] sm:$0xff] %v6532_v60  ;;  %v7513_v44 = vld [vmem:[#allocation10_spill] sm:$0xff]  ;;  %v7514_v1 = vld [vmem:[#allocation13_spill] sm:$0xff]  ;;  %v7516_v12 = vld [vmem:[#allocation12_spill] sm:$0xff] }
 0x4c9   :  { %v2615_v43 = vmul.f32 1.442695, %v2521_v42  ;;  %v2726_v52 = vsel %vm2352_vm12, %v6504_v36, 0.0  ;;  %v6538_v42 = vpop.eup %4675  ;;  %v2728_v36 = vsel %vm2352_vm12, %v6520_v8, 0.0  ;;  %v2621_v45 = vmul.f32 1.442695, %v2524_v26 }
 0x4ca   :  { %v2727_v46 = vadd.f32 %v2726_v52, %v2725_v47  ;;  %7515 = vst [vmem:[#allocation2_spill] sm:$0xff] %v6538_v42  ;;  %v2730_v52 = vsel %vm2352_vm12, %v6532_v60, 0.0  ;;  %v6552_v13 = vpop.eup %4677 }
 0x4cb   :  { %4685 = vpow2.f32 %v2615_v43  ;;  %v6564_v5 = vpop.eup %4679  ;;  %v2734_v17 = vsel %vm2352_vm12, %v6552_v13, 0.0 }
 0x4cc   :  { %v2729_v47 = vadd.f32 %v2728_v36, %v2727_v46  ;;  %v2732_v36 = vsel %vm2352_vm12, %v6538_v42, 0.0  ;;  %v2619_v46 = vmul.f32 1.442695, %v2523_v50  ;;  %4687 = vpow2.f32 %v2617_v30  ;;  %v6566_v61 = vpop.eup %4681 }
 0x4cd   :  { %v6570_v0 = vpop.eup %4683  ;;  %v2625_v42 = vmul.f32 1.442695, %v2526_v37  ;;  %v2736_v50 = vsel %vm2352_vm12, %v6564_v5, 0.0 }
 0x4ce   :  { %v2731_v8 = vadd.f32 %v2730_v52, %v2729_v47  ;;  %v2623_v52 = vmul.f32 1.442695, %v2525_v54  ;;  %4689 = vpow2.f32 %v2619_v46  ;;  %7517 = vst [vmem:[#allocation16_spill] sm:$0xff] %v6570_v0  ;;  %v2738_v54 = vsel %vm2352_vm12, %v6566_v61, 0.0 }
 0x4cf   :  { %4691 = vpow2.f32 %v2621_v45  ;;  %v2629_v46 = vmul.f32 1.442695, %v2528_v38  ;;  %v2740_v37 = vsel %vm2352_vm12, %v6570_v0, 0.0  ;;  %v7520_v38 = vsub.f32 %v7508_v29, %v6495_v15 }
 0x4d0   :  { %v2733_v47 = vadd.f32 %v2732_v36, %v2731_v8  ;;  %4693 = vpow2.f32 %v2623_v52  ;;  %v2627_v8 = vmul.f32 1.442695, %v2527_v56  ;;  %v2534_v29 = vsub.f32 %v6260_v48, %v6495_v15 }
 0x4d1   :  { %v6572_v60 = vpop.eup %4685  ;;  %4695 = vpow2.f32 %v2625_v42  ;;  %v2532_v42 = vsub.f32 %v6249_v33, %v6495_v15  ;;  %v7521_v33 = vsub.f32 %v7509_v62, %v6495_v15 }
 0x4d2   :  { %v2735_v49 = vadd.f32 %v2734_v17, %v2733_v47  ;;  %7518 = vst [vmem:[#allocation5_spill] sm:$0xff] %v6572_v60  ;;  %v6578_v30 = vpop.eup %4687  ;;  %4697 = vpow2.f32 %v2627_v8  ;;  %v2742_v56 = vsel %vm2352_vm12, %v6572_v60, 0.0 }
 0x4d3   :  { %7519 = vst [vmem:[#allocation4_spill] sm:$0xff] %v6578_v30  ;;  %4699 = vpow2.f32 %v2629_v46  ;;  %v2635_v46 = vmul.f32 1.442695, %v7521_v33 }
 0x4d4   :  { %v2737_v26 = vadd.f32 %v2736_v50, %v2735_v49  ;;  %v6580_v43 = vpop.eup %4689  ;;  %v2631_v49 = vmul.f32 1.442695, %v2529_v25  ;;  %v2633_v50 = vmul.f32 1.442695, %v7520_v38 }
 0x4d5   :  { %v6584_v45 = vpop.eup %4691  ;;  %v2752_v25 = vsel %vm2352_vm12, %v6580_v43, 0.0 }
 0x4d6   :  { %v2739_v36 = vadd.f32 %v2738_v54, %v2737_v26  ;;  %v6588_v47 = vpop.eup %4693  ;;  %v2744_v26 = vsel %vm2352_vm12, %v6578_v30, 0.0  ;;  %v2753_v8 = vsel %vm2352_vm12, %v6584_v45, 0.0  ;;  %4701 = vpow2.f32 %v2631_v49 }
 0x4d7   :  { %v6601_v54 = vpop.eup %4695  ;;  %4703 = vpow2.f32 %v2633_v50  ;;  %v2637_v30 = vmul.f32 1.442695, %v2532_v42 }
 0x4d8   :  { %v2741_v17 = vadd.f32 %v2740_v37, %v2739_v36  ;;  %v2754_v37 = vadd.f32 %v2753_v8, %v2752_v25  ;;  %v2757_v49 = vsel %vm2352_vm12, %v6601_v54, 0.0  ;;  %4705 = vpow2.f32 %v2635_v46 }
 0x4d9   :  { %v2536_v8 = vsub.f32 %v6269_v14, %v6495_v15  ;;  %4707 = vpow2.f32 %v2637_v30 }
 0x4da   :  { %v2743_v52 = vadd.f32 %v2742_v56, %v2741_v17  ;;  %v2755_v17 = vsel %vm2352_vm12, %v6588_v47, 0.0  ;;  %v6610_v56 = vpop.eup %4697 }
 0x4db   :  { %v2756_v60 = vadd.f32 %v2755_v17, %v2754_v37  ;;  %v2759_v50 = vsel %vm2352_vm12, %v6610_v56, 0.0  ;;  %v2641_v37 = vmul.f32 1.442695, %v2534_v29  ;;  %v2538_v29 = vsub.f32 %v6274_v59, %v6495_v15 }
 0x4dc   :  { %v2745_v36 = vadd.f32 %v2744_v26, %v2743_v52  ;;  %v6614_v52 = vpop.eup %4699  ;;  %v7522_v26 = vsub.f32 %v7510_v18, %v6495_v15 }
 0x4dd   :  { %v2758_v25 = vadd.f32 %v2757_v49, %v2756_v60  ;;  %v6623_v42 = vpop.eup %4701  ;;  %v7523_v60 = vsub.f32 %v7511_v32, %v6495_v15  ;;  %v2645_v49 = vmul.f32 1.442695, %v2536_v8  ;;  %v7524_v8 = vsub.f32 %v7513_v44, %v6495_v15 }
 0x4de   :  { %v2746_v38 = vrot.slane %v2745_v36, 4  ;;  %v2639_v48 = vmul.f32 1.442695, %v7522_v26  ;;  %v6627_v46 = vpop.eup %4703  ;;  %v2763_v26 = vsel %vm2352_vm12, %v6623_v42, 0.0  ;;  %v2649_v59 = vmul.f32 1.442695, %v2538_v29 }
 0x4df   :  { %v2760_v17 = vadd.f32 %v2759_v50, %v2758_v25  ;;  %v2643_v14 = vmul.f32 1.442695, %v7523_v60  ;;  %v6634_v0 = vpop.eup %4705  ;;  %v2647_v50 = vmul.f32 1.442695, %v7524_v8  ;;  %v7525_v44 = vsub.f32 %v7514_v1, %v6495_v15 }
 0x4e0   :  { %v2747_v62 = vadd.f32 %v2746_v38, %v2745_v36  ;;  %v2761_v36 = vsel %vm2352_vm12, %v6614_v52, 0.0  ;;  %4709 = vpow2.f32 %v2639_v48  ;;  %v6640_v48 = vpop.eup %4707  ;;  %v7526_v29 = vsub.f32 %v6280_v19, %v6495_v15 }
 0x4e1   :  { %v2762_v38 = vadd.f32 %v2761_v36, %v2760_v17  ;;  %4711 = vpow2.f32 %v2641_v37  ;;  %v2767_v17 = vsel %vm2352_vm12, %v6634_v0, 0.0  ;;  %v2769_v60 = vsel %vm2352_vm12, %v6640_v48, 0.0 }
 0x4e2   :  { %v2748_v33 = vrot.slane %v2747_v62, 2  ;;  %4713 = vpow2.f32 %v2643_v14 }
 0x4e3   :  { %v2764_v25 = vadd.f32 %v2763_v26, %v2762_v38  ;;  %4715 = vpow2.f32 %v2645_v49 }
 0x4e4   :  { %v2749_v18 = vadd.f32 %v2748_v33, %v2747_v62  ;;  %v2765_v62 = vsel %vm2352_vm12, %v6627_v46, 0.0 }
 0x4e5   :  { %v2766_v33 = vadd.f32 %v2765_v62, %v2764_v25  ;;  %v2653_v25 = vmul.f32 1.442695, %v7526_v29 }
 0x4e6   :  { %v2750_v30 = vrot.slane %v2749_v18, 1  ;;  %v6647_v36 = vpop.eup %4709 }
 0x4e7   :  { %v2768_v37 = vadd.f32 %v2767_v17, %v2766_v33  ;;  %v6651_v38 = vpop.eup %4711  ;;  %v2771_v49 = vsel %vm2352_vm12, %v6647_v36, 0.0 }
 0x4e8   :  { %v2751_v32 = vadd.f32 %v2750_v30, %v2749_v18  ;;  %v2651_v18 = vmul.f32 1.442695, %v7525_v44  ;;  %v6658_v26 = vpop.eup %4713  ;;  %v2542_v30 = vsub.f32 %v6293_v11, %v6495_v15  ;;  %v2773_v1 = vsel %vm2352_vm12, %v6651_v38, 0.0 }
 0x4e9   :  { %v2770_v14 = vadd.f32 %v2769_v60, %v2768_v37  ;;  %v7527_v11 = vsub.f32 %v7516_v12, %v6495_v15  ;;  %v2775_v37 = vsel %vm2352_vm12, %v6658_v26, 0.0 }
 0x4ea   :  { %4717 = vrcp.f32 %v2751_v32  ;;  %v6665_v32 = vpop.eup %4715  ;;  %v2657_v44 = vmul.f32 1.442695, %v2542_v30 }
 0x4eb   :  { %4719 = vpow2.f32 %v2647_v50  ;;  %v2772_v62 = vadd.f32 %v2771_v49, %v2770_v14  ;;  %v2543_v50 = vsub.f32 %v6306_v41, %v6495_v15  ;;  %v2655_v33 = vmul.f32 1.442695, %v7527_v11 }
 0x4ec   :  { %4721 = vpow2.f32 %v2649_v59  ;;  %v2544_v41 = vsub.f32 %v6309_v24, %v6495_v15  ;;  %v2777_v49 = vsel %vm2352_vm12, %v6665_v32, 0.0 }
 0x4ed   :  { %4723 = vpow2.f32 %v2651_v18  ;;  %v2774_v17 = vadd.f32 %v2773_v1, %v2772_v62  ;;  %v2659_v29 = vmul.f32 1.442695, %v2543_v50  ;;  %v2547_v50 = vsub.f32 %v6338_v63, %v6495_v15 }
 0x4ee   :  { %4725 = vpow2.f32 %v2653_v25  ;;  %v2546_v25 = vsub.f32 %v6321_v22, %v6495_v15 }
 0x4ef   :  { %v2776_v18 = vadd.f32 %v2775_v37, %v2774_v17  ;;  %4727 = vpow2.f32 %v2655_v33  ;;  %v2661_v17 = vmul.f32 1.442695, %v2544_v41  ;;  %v2548_v41 = vsub.f32 %v6350_v34, %v6495_v15 }
 0x4f0   :  { %v6669_v8 = vpop.eup %4717  ;;  %4729 = vpow2.f32 %v2657_v44  ;;  %v2665_v44 = vmul.f32 1.442695, %v2546_v25 }
 0x4f1   :  { %v2823_v19 = vmul.f32 %v6669_v8, %v6288_v27  ;;  %v2824_v59 = vmul.f32 %v6669_v8, %v6295_v20  ;;  %v6682_v60 = vpop.eup %4719  ;;  %v2545_v20 = vsub.f32 %v6318_v6, %v6495_v15  ;;  %v2778_v62 = vadd.f32 %v2777_v49, %v2776_v18 }
 0x4f2   :  { %v6688_v27 = vpop.eup %4721  ;;  %v2779_v24 = vsel %vm2352_vm12, %v6682_v60, 0.0  ;;  %4731 = vpow2.f32 %v2659_v29  ;;  %v2825_v63 = vmul.f32 %v6669_v8, %v6299_v58 }
 0x4f3   :  { %v2887_v12 = vpack.c.bf16 %v2823_v19, %v2823_v19  ;;  %v2888_v14 = vpack.c.bf16 %v2824_v59, %v2824_v59  ;;  %v6694_v30 = vpop.eup %4723  ;;  %v2780_v19 = vadd.f32 %v2779_v24, %v2778_v62  ;;  %v2781_v6 = vsel %vm2352_vm12, %v6688_v27, 0.0 }
 0x4f4   :  { %v6700_v33 = vpop.eup %4725  ;;  %v2663_v37 = vmul.f32 1.442695, %v2545_v20  ;;  %4733 = vpow2.f32 %v2661_v17  ;;  %v2826_v20 = vmul.f32 %v6669_v8, %v6313_v10  ;;  %v2667_v62 = vmul.f32 1.442695, %v2547_v50 }
 0x4f5   :  { %v2987_v1 = vunpack.c.l.b16 %v2887_v12  ;;  %v2988_v11 = vunpack.c.l.b16 %v2888_v14  ;;  %v2782_v18 = vadd.f32 %v2781_v6, %v2780_v19  ;;  %v2783_v12 = vsel %vm2352_vm12, %v6694_v30, 0.0  ;;  %v6707_v22 = vpop.eup %4727 }
 0x4f6   :  { %v2785_v49 = vsel %vm2352_vm12, %v6700_v33, 0.0  ;;  %v6717_v29 = vpop.eup %4729  ;;  %4735 = vpow2.f32 %v2663_v37  ;;  %v2787_v34 = vsel %vm2352_vm12, %v6707_v22, 0.0  ;;  %v2669_v24 = vmul.f32 1.442695, %v2548_v41 }
 0x4f7   :  { %v3019_v59 = vpack.c.b16 %v2988_v11, %v2987_v1  ;;  %v2784_v14 = vadd.f32 %v2783_v12, %v2782_v18  ;;  %4737 = vpow2.f32 %v2665_v44  ;;  %v2789_v17 = vsel %vm2352_vm12, %v6717_v29, 0.0 }
 0x4f8   :  { %v6721_v11 = vpop.eup %4731  ;;  %v2889_v58 = vpack.c.bf16 %v2825_v63, %v2825_v63  ;;  %v2890_v19 = vpack.c.bf16 %v2826_v20, %v2826_v20  ;;  %4739 = vpow2.f32 %v2667_v62  ;;  %v7528_v10 = vsub.f32 %v6379_v21, %v6495_v15 }
 0x4f9   :  { %4382 = vmatmul.msk.bf16.vlgmr.msra.gmra.mxu3 %vm2352_vm12, %v3019_v59  ;;  %v2786_v1 = vadd.f32 %v2785_v49, %v2784_v14  ;;  %v2791_v37 = vsel %vm2352_vm12, %v6721_v11, 0.0  ;;  %4741 = vpow2.f32 %v2669_v24  ;;  %v7529_v12 = vsub.f32 %v6382_v9, %v6495_v15 }
 0x4fa   :  { %v6725_v59 = vpop.eup %4733  ;;  %v2671_v6 = vmul.f32 1.442695, %v7528_v10  ;;  %v2989_v49 = vunpack.c.l.b16 %v2889_v58  ;;  %v2990_v63 = vunpack.c.l.b16 %v2890_v19  ;;  %v7530_v21 = vsub.f32 %v6394_v2, %v6495_v15 }
 0x4fb   :  { %v2788_v25 = vadd.f32 %v2787_v34, %v2786_v1  ;;  %v2673_v41 = vmul.f32 1.442695, %v7529_v12  ;;  %v2793_v14 = vsel %vm2352_vm12, %v6725_v59, 0.0  ;;  %v7531_v9 = vsub.f32 %v6396_v53, %v6495_v15 }
 0x4fc   :  { %v6732_v18 = vpop.eup %4735  ;;  %4743 = vpow2.f32 %v2671_v6  ;;  %v2675_v62 = vmul.f32 1.442695, %v7530_v21  ;;  %v3020_v19 = vpack.c.b16 %v2990_v63, %v2989_v49  ;;  %v7532_v2 = vsub.f32 %v6408_v23, %v6495_v15  ;;  %v7534_v49 = vld [vmem:[#allocation15_spill] sm:$0xff] }
 0x4fd   :  { %v2790_v50 = vadd.f32 %v2789_v17, %v2788_v25  ;;  %v6739_v20 = vpop.eup %4737  ;;  %v2795_v34 = vsel %vm2352_vm12, %v6732_v18, 0.0  ;;  %4745 = vpow2.f32 %v2673_v41  ;;  %v2677_v25 = vmul.f32 1.442695, %v7531_v9 }
 0x4fe   :  { %v6746_v24 = vpop.eup %4739  ;;  %v2797_v58 = vsel %vm2352_vm12, %v6739_v20, 0.0  ;;  %4747 = vpow2.f32 %v2675_v62  ;;  %v2679_v6 = vmul.f32 1.442695, %v7532_v2  ;;  %v7533_v12 = vsub.f32 %v6435_v40, %v6495_v15 }
 0x4ff   :  { %v2792_v44 = vadd.f32 %v2791_v37, %v2790_v50  ;;  %v6753_v10 = vpop.eup %4741  ;;  %v2799_v37 = vsel %vm2352_vm12, %v6746_v24, 0.0  ;;  %4749 = vpow2.f32 %v2677_v25  ;;  %v2827_v23 = vmul.f32 %v6669_v8, %v7534_v49 }
 0x500   :  { %v2681_v41 = vmul.f32 1.442695, %v7533_v12  ;;  %v2828_v63 = vmul.f32 %v6669_v8, %v6335_v4  ;;  %4751 = vpow2.f32 %v2679_v6 }
 0x501   :  { %v2794_v1 = vadd.f32 %v2793_v14, %v2792_v44  ;;  %v2801_v14 = vsel %vm2352_vm12, %v6753_v10, 0.0  ;;  %v2891_v9 = vpack.c.bf16 %v2827_v23, %v2827_v23 }
 0x502   :  { %v6761_v53 = vpop.eup %4743  ;;  %4753 = vpow2.f32 %v2681_v41  ;;  %v2892_v25 = vpack.c.bf16 %v2828_v63, %v2828_v63 }
 0x503   :  { %v2796_v17 = vadd.f32 %v2795_v34, %v2794_v1  ;;  %v6772_v21 = vpop.eup %4745  ;;  %v2803_v1 = vsel %vm2352_vm12, %v6761_v53, 0.0 }
 0x504   :  { %v6776_v34 = vpop.eup %4747  ;;  %v2805_v15 = vsel %vm2352_vm12, %v6772_v21, 0.0 }
 0x505   :  { %v2798_v50 = vadd.f32 %v2797_v58, %v2796_v17  ;;  %v6780_v17 = vpop.eup %4749  ;;  %v2807_v4 = vsel %vm2352_vm12, %v6776_v34, 0.0 }
 0x506   :  { %v2809_v6 = vsel %vm2352_vm12, %v6780_v17, 0.0 }
 0x507   :  { %v2800_v44 = vadd.f32 %v2799_v37, %v2798_v50  ;;  %v2991_v50 = vunpack.c.l.b16 %v2891_v9  ;;  %v2992_v37 = vunpack.c.l.b16 %v2892_v25 }
 0x509   :  { %4383 = vmatmul.msk.bf16.gmra.mxu3 %vm2352_vm12, %v3020_v19  ;;  %v2802_v62 = vadd.f32 %v2801_v14, %v2800_v44  ;;  %v6784_v19 = vpop.eup %4751  ;;  %v3021_v23 = vpack.c.b16 %v2992_v37, %v2991_v50  ;;  %v2831_v37 = vmul.f32 %v6669_v8, %v6372_v55 }
 0x50a   :  { %v6788_v12 = vpop.eup %4753  ;;  %v2811_v44 = vsel %vm2352_vm12, %v6784_v19, 0.0 }
 0x50b   :  { %v2804_v40 = vadd.f32 %v2803_v1, %v2802_v62  ;;  %v2813_v49 = vsel %vm2352_vm12, %v6788_v12, 0.0  ;;  %v2829_v1 = vmul.f32 %v6669_v8, %v6352_v39  ;;  %v2832_v39 = vmul.f32 %v6669_v8, %v6384_v7 }
 0x50d   :  { %v2806_v58 = vadd.f32 %v2805_v15, %v2804_v40  ;;  %v2830_v40 = vmul.f32 %v6669_v8, %v6361_v57  ;;  %v2893_v25 = vpack.c.bf16 %v2829_v1, %v2829_v1  ;;  %v2896_v1 = vpack.c.bf16 %v2832_v39, %v2832_v39 }
 0x50f   :  { %v2808_v2 = vadd.f32 %v2807_v4, %v2806_v58  ;;  %v2894_v58 = vpack.c.bf16 %v2830_v40, %v2830_v40  ;;  %v2996_v55 = vunpack.c.l.b16 %v2896_v1 }
 0x511   :  { %v2810_v41 = vadd.f32 %v2809_v6, %v2808_v2  ;;  %v2993_v6 = vunpack.c.l.b16 %v2893_v25 }
 0x513   :  { %v2812_v14 = vadd.f32 %v2811_v44, %v2810_v41  ;;  %v2994_v41 = vunpack.c.l.b16 %v2894_v58 }
 0x515   :  { %v2814_v63 = vadd.f32 %v2813_v49, %v2812_v14  ;;  %v3022_v50 = vpack.c.b16 %v2994_v41, %v2993_v6  ;;  %v7536_v41 = vld [vmem:[#allocation18_spill] sm:$0xff] }
 0x517   :  { %v2815_v62 = vrot.slane %v2814_v63, 4 }
 0x519   :  { %4384 = vmatmul.msk.bf16.gmra.mxu3 %vm2352_vm12, %v3021_v23  ;;  %v2816_v15 = vadd.f32 %v2815_v62, %v2814_v63  ;;  %v2895_v62 = vpack.c.bf16 %v2831_v37, %v2831_v37 }
 0x51b   :  { %v2817_v9 = vrot.slane %v2816_v15, 2  ;;  %v2995_v25 = vunpack.c.l.b16 %v2895_v62 }
 0x51d   :  { %v2818_v4 = vadd.f32 %v2817_v9, %v2816_v15  ;;  %v3023_v7 = vpack.c.b16 %v2996_v55, %v2995_v25 }
 0x51f   :  { %v2819_v2 = vrot.slane %v2818_v4, 1 }
 0x521   :  { %v2820_v44 = vadd.f32 %v2819_v2, %v2818_v4  ;;  %v7535_v2 = vld [vmem:[#allocation14_spill] sm:$0xff] }
 0x522   :  { %v2833_v6 = vmul.f32 %v6669_v8, %v7535_v2 }
 0x523   :  { %4755 = vrcp.f32 %v2820_v44  ;;  %v2834_v44 = vmul.f32 %v6669_v8, %v7536_v41  ;;  %v2838_v41 = vmul.f32 %v6669_v8, %v6449_v28 }
 0x524   :  { %v2897_v39 = vpack.c.bf16 %v2833_v6, %v2833_v6  ;;  %v2837_v6 = vmul.f32 %v6669_v8, %v6443_v51 }
 0x529   :  { %4385 = vmatmul.msk.bf16.gmra.mxu3 %vm2352_vm12, %v3022_v50  ;;  %v6804_v57 = vpop.eup %4755 }
 0x52a   :  { %v2855_v14 = vmul.f32 %v6804_v57, %v6580_v43  ;;  %v2856_v49 = vmul.f32 %v6804_v57, %v6584_v45  ;;  %v2857_v58 = vmul.f32 %v6804_v57, %v6588_v47  ;;  %v2858_v43 = vmul.f32 %v6804_v57, %v6601_v54 }
 0x52b   :  { %v2860_v62 = vmul.f32 %v6804_v57, %v6614_v52  ;;  %v2862_v2 = vmul.f32 %v6804_v57, %v6627_v46  ;;  %v4587_v46 = vld [vmem:[%s7349_s8 + $0x8] sm:$0xff]  ;;  %v2863_v51 = vmul.f32 %v6804_v57, %v6634_v0  ;;  %v2864_v28 = vmul.f32 %v6804_v57, %v6640_v48 }
 0x52c   :  { %v2919_v23 = vpack.c.bf16 %v2855_v14, %v2855_v14  ;;  %v2920_v63 = vpack.c.bf16 %v2856_v49, %v2856_v49  ;;  %v2921_v45 = vpack.c.bf16 %v2857_v58, %v2857_v58  ;;  %v2922_v4 = vpack.c.bf16 %v2858_v43, %v2858_v43  ;;  %3555 = vmatpush.bf16.msrb.mxu2 %v4587_v46 }
 0x52d   :  { %v2898_v14 = vpack.c.bf16 %v2834_v44, %v2834_v44 }
 0x52e   :  { %v3210_v40 = vunpack.c.l.b16 %v2919_v23  ;;  %v3211_v15 = vunpack.c.l.b16 %v2920_v63  ;;  %v3212_v50 = vunpack.c.l.b16 %v2921_v45  ;;  %v3213_v37 = vunpack.c.l.b16 %v2922_v4 }
 0x52f   :  { %v2997_v23 = vunpack.c.l.b16 %v2897_v39  ;;  %v2998_v47 = vunpack.c.l.b16 %v2898_v14  ;;  %v2859_v63 = vmul.f32 %v6804_v57, %v6610_v56  ;;  %v2861_v4 = vmul.f32 %v6804_v57, %v6623_v42 }
 0x530   :  { %v3242_v9 = vpack.c.b16 %v3211_v15, %v3210_v40  ;;  %v3243_v49 = vpack.c.b16 %v3213_v37, %v3212_v50  ;;  %v2924_v40 = vpack.c.bf16 %v2860_v62, %v2860_v62  ;;  %v2835_v15 = vmul.f32 %v6669_v8, %v6426_v35 }
 0x531   :  { %v3024_v54 = vpack.c.b16 %v2998_v47, %v2997_v23  ;;  %v2923_v1 = vpack.c.bf16 %v2859_v63, %v2859_v63  ;;  %v2925_v35 = vpack.c.bf16 %v2861_v4, %v2861_v4  ;;  %v2901_v37 = vpack.c.bf16 %v2837_v6, %v2837_v6  ;;  %v4586_v47 = vld [vmem:[%s7349_s8] sm:$0xff] }
 0x532   :  { %4398 = vmatmul.msk.bf16.vlgmr.msra.gmra.mxu1 %vm2352_vm12, %v3242_v9  ;;  %v2836_v9 = vmul.f32 %v6669_v8, %v6437_v16  ;;  %v3215_v55 = vunpack.c.l.b16 %v2924_v40  ;;  %v2926_v16 = vpack.c.bf16 %v2862_v2, %v2862_v2  ;;  %v2902_v39 = vpack.c.bf16 %v2838_v41, %v2838_v41  ;;  %3556 = vmatpush.bf16.msrb.mxu2 %v4586_v47 }
 0x533   :  { %v3214_v25 = vunpack.c.l.b16 %v2923_v1  ;;  %v3216_v44 = vunpack.c.l.b16 %v2925_v35  ;;  %v2928_v63 = vpack.c.bf16 %v2864_v28, %v2864_v28  ;;  %v2839_v62 = vmul.f32 %v6669_v8, %v6453_v3  ;;  %v7540_v28 = vld [vmem:[#allocation22_spill] sm:$0xff] }
 0x534   :  { %v2900_v58 = vpack.c.bf16 %v2836_v9, %v2836_v9  ;;  %v3217_v50 = vunpack.c.l.b16 %v2926_v16  ;;  %v3002_v42 = vunpack.c.l.b16 %v2902_v39  ;;  %v2840_v1 = vmul.f32 %v6669_v8, %v6461_v31 }
 0x535   :  { %v3244_v43 = vpack.c.b16 %v3215_v55, %v3214_v25  ;;  %v3219_v40 = vunpack.c.l.b16 %v2928_v63  ;;  %v2866_v3 = vmul.f32 %v6804_v57, %v6651_v38  ;;  %v2844_v47 = vmul.f32 %v6669_v8, %v7540_v28 }
 0x536   :  { %v3000_v56 = vunpack.c.l.b16 %v2900_v58  ;;  %v3245_v14 = vpack.c.b16 %v3217_v50, %v3216_v44  ;;  %v2904_v48 = vpack.c.bf16 %v2840_v1, %v2840_v1  ;;  %v2865_v58 = vmul.f32 %v6804_v57, %v6647_v36 }
 0x538   :  { %v3004_v55 = vunpack.c.l.b16 %v2904_v48  ;;  %v2929_v31 = vpack.c.bf16 %v2865_v58, %v2865_v58 }
 0x539   :  { %4386 = vmatmul.msk.bf16.gmra.mxu3 %vm2352_vm12, %v3023_v7  ;;  %v2899_v7 = vpack.c.bf16 %v2835_v15, %v2835_v15  ;;  %v2903_v15 = vpack.c.bf16 %v2839_v62, %v2839_v62 }
 0x53a   :  { %v3220_v35 = vunpack.c.l.b16 %v2929_v31 }
 0x53b   :  { %v2999_v45 = vunpack.c.l.b16 %v2899_v7  ;;  %v3003_v25 = vunpack.c.l.b16 %v2903_v15 }
 0x53d   :  { %v3025_v52 = vpack.c.b16 %v3000_v56, %v2999_v45  ;;  %v3027_v7 = vpack.c.b16 %v3004_v55, %v3003_v25  ;;  %v7537_v45 = vld [vmem:[#allocation19_spill] sm:$0xff]  ;;  %v2869_v25 = vmul.f32 %v6804_v57, %v6682_v60  ;;  %v2870_v55 = vmul.f32 %v6804_v57, %v6688_v27 }
 0x53e   :  { %v2841_v56 = vmul.f32 %v6669_v8, %v7537_v45 }
 0x53f   :  { %v2934_v58 = vpack.c.bf16 %v2870_v55, %v2870_v55  ;;  %v2850_v55 = vmul.f32 %v6669_v8, %v6564_v5  ;;  %v2875_v5 = vmul.f32 %v6804_v57, %v6721_v11 }
 0x540   :  { %v2905_v6 = vpack.c.bf16 %v2841_v56, %v2841_v56 }
 0x542   :  { %4399 = vmatmul.msk.bf16.gmra.mxu1 %vm2352_vm12, %v3243_v49  ;;  %v3001_v49 = vunpack.c.l.b16 %v2901_v37  ;;  %v3005_v36 = vunpack.c.l.b16 %v2905_v6 }
 0x544   :  { %v3026_v23 = vpack.c.b16 %v3002_v42, %v3001_v49  ;;  %v2868_v49 = vmul.f32 %v6804_v57, %v6665_v32 }
 0x546   :  { %v2932_v46 = vpack.c.bf16 %v2868_v49, %v2868_v49  ;;  %v7544_v49 = vld [vmem:[#allocation2_spill] sm:$0xff] }
 0x548   :  { %v3223_v62 = vunpack.c.l.b16 %v2932_v46 }
 0x549   :  { %4387 = vmatmul.msk.bf16.gmra.mxu3 %vm2352_vm12, %v3024_v54  ;;  %v2927_v54 = vpack.c.bf16 %v2863_v51, %v2863_v51 }
 0x54b   :  { %v3218_v0 = vunpack.c.l.b16 %v2927_v54 }
 0x54d   :  { %v3246_v9 = vpack.c.b16 %v3219_v40, %v3218_v0  ;;  %v2908_v0 = vpack.c.bf16 %v2844_v47, %v2844_v47 }
 0x54f   :  { %v3008_v15 = vunpack.c.l.b16 %v2908_v0 }
 0x552   :  { %4400 = vmatmul.msk.bf16.gmra.mxu1 %vm2352_vm12, %v3244_v43  ;;  %v2930_v43 = vpack.c.bf16 %v2866_v3, %v2866_v3  ;;  %v7541_v3 = vld [vmem:[#allocation23_spill] sm:$0xff] }
 0x553   :  { %v2845_v31 = vmul.f32 %v6669_v8, %v7541_v3 }
 0x554   :  { %v3221_v16 = vunpack.c.l.b16 %v2930_v43  ;;  %v7542_v43 = vld [vmem:[#allocation3_spill] sm:$0xff] }
 0x555   :  { %v2846_v45 = vmul.f32 %v6669_v8, %v7542_v43 }
 0x556   :  { %v3247_v44 = vpack.c.b16 %v3221_v16, %v3220_v35 }
 0x557   :  { %v2910_v35 = vpack.c.bf16 %v2846_v45, %v2846_v45 }
 0x559   :  { %4388 = vmatmul.msk.bf16.gmra.mxu3 %vm2352_vm12, %v3025_v52  ;;  %v7538_v52 = vld [vmem:[#allocation20_spill] sm:$0xff]  ;;  %v3010_v6 = vunpack.c.l.b16 %v2910_v35 }
 0x55a   :  { %v2842_v4 = vmul.f32 %v6669_v8, %v7538_v52 }
 0x55c   :  { %v2906_v41 = vpack.c.bf16 %v2842_v4, %v2842_v4  ;;  %v3225_v4 = vunpack.c.l.b16 %v2934_v58 }
 0x55e   :  { %v3006_v50 = vunpack.c.l.b16 %v2906_v41 }
 0x560   :  { %v3028_v39 = vpack.c.b16 %v3006_v50, %v3005_v36  ;;  %v2871_v36 = vmul.f32 %v6804_v57, %v6694_v30  ;;  %v2872_v50 = vmul.f32 %v6804_v57, %v6700_v33 }
 0x562   :  { %4401 = vmatmul.msk.bf16.gmra.mxu1 %vm2352_vm12, %v3245_v14  ;;  %v2867_v14 = vmul.f32 %v6804_v57, %v6658_v26 }
 0x564   :  { %v2931_v42 = vpack.c.bf16 %v2867_v14, %v2867_v14 }
 0x566   :  { %v3222_v63 = vunpack.c.l.b16 %v2931_v42  ;;  %v2848_v42 = vmul.f32 %v6669_v8, %v7544_v49 }
 0x568   :  { %v3248_v40 = vpack.c.b16 %v3223_v62, %v3222_v63  ;;  %v2912_v47 = vpack.c.bf16 %v2848_v42, %v2848_v42 }
 0x569   :  { %4389 = vmatmul.msk.bf16.gmra.mxu3 %vm2352_vm12, %v3026_v23  ;;  %v7539_v23 = vld [vmem:[#allocation21_spill] sm:$0xff] }
 0x56a   :  { %v2843_v51 = vmul.f32 %v6669_v8, %v7539_v23  ;;  %v3012_v33 = vunpack.c.l.b16 %v2912_v47  ;;  %v7546_v47 = vld [vmem:[#allocation5_spill] sm:$0xff] }
 0x56c   :  { %v2907_v1 = vpack.c.bf16 %v2843_v51, %v2843_v51 }
 0x56e   :  { %v3007_v26 = vunpack.c.l.b16 %v2907_v1 }
 0x572   :  { %4402 = vmatmul.msk.bf16.gmra.mxu1 %vm2352_vm12, %v3246_v9  ;;  %v3029_v9 = vpack.c.b16 %v3008_v15, %v3007_v26  ;;  %v2874_v26 = vmul.f32 %v6804_v57, %v6717_v29  ;;  %v2914_v29 = vpack.c.bf16 %v2850_v55, %v2850_v55 }
 0x579   :  { %4390 = vmatmul.msk.bf16.gmra.mxu3 %vm2352_vm12, %v3027_v7  ;;  %v2933_v7 = vpack.c.bf16 %v2869_v25, %v2869_v25  ;;  %v2938_v25 = vpack.c.bf16 %v2874_v26, %v2874_v26 }
 0x57b   :  { %v3224_v52 = vunpack.c.l.b16 %v2933_v7  ;;  %v3229_v58 = vunpack.c.l.b16 %v2938_v25 }
 0x57c   :  { %v3098_v2 = vpop.f32.mrf.mxu3 }
 0x57d   :  { %v3249_v16 = vpack.c.b16 %v3225_v4, %v3224_v52 }
 0x582   :  { %4403 = vmatmul.msk.bf16.gmra.mxu1 %vm2352_vm12, %v3247_v44 }
 0x584   :  { %v3100_v37 = vpop.f32.mrf.mxu3 }
 0x585   :  { %v3401_v38 = vpack.c.bf16 %v3100_v37, %v3098_v2  ;;  %v2909_v2 = vpack.c.bf16 %v2845_v31, %v2845_v31  ;;  %v2935_v37 = vpack.c.bf16 %v2871_v36, %v2871_v36 }
 0x587   :  { %4422 = vmatmul.msk.bf16.vlgmr.msrb.gmra.mxu2 %vm1922_vm11, %v3401_v38  ;;  %v3009_v60 = vunpack.c.l.b16 %v2909_v2  ;;  %v2936_v38 = vpack.c.bf16 %v2872_v50, %v2872_v50  ;;  %v3226_v23 = vunpack.c.l.b16 %v2935_v37  ;;  %v2876_v2 = vmul.f32 %v6804_v57, %v6725_v59 }
 0x589   :  { %4391 = vmatmul.msk.bf16.gmra.mxu3 %vm2352_vm12, %v3028_v39  ;;  %v3030_v44 = vpack.c.b16 %v3010_v6, %v3009_v60  ;;  %v7543_v39 = vld [vmem:[#allocation17_spill] sm:$0xff]  ;;  %v3227_v51 = vunpack.c.l.b16 %v2936_v38  ;;  %v2939_v6 = vpack.c.bf16 %v2875_v5, %v2875_v5 }
 0x58a   :  { %v2847_v14 = vmul.f32 %v6669_v8, %v7543_v39 }
 0x58b   :  { %v3250_v30 = vpack.c.b16 %v3227_v51, %v3226_v23  ;;  %v3230_v11 = vunpack.c.l.b16 %v2939_v6  ;;  %v2877_v23 = vmul.f32 %v6804_v57, %v6732_v18  ;;  %v2878_v51 = vmul.f32 %v6804_v57, %v6739_v20 }
 0x58c   :  { %v3103_v54 = vpop.f32.mrf.mxu3  ;;  %v2911_v28 = vpack.c.bf16 %v2847_v14, %v2847_v14  ;;  %v2882_v6 = vmul.f32 %v6804_v57, %v6772_v21  ;;  %v2884_v21 = vmul.f32 %v6804_v57, %v6780_v17 }
 0x58e   :  { %v3011_v63 = vunpack.c.l.b16 %v2911_v28 }
 0x590   :  { %v3031_v0 = vpack.c.b16 %v3012_v33, %v3011_v63  ;;  %v2941_v33 = vpack.c.bf16 %v2877_v23, %v2877_v23 }
 0x592   :  { %4404 = vmatmul.msk.bf16.gmra.mxu1 %vm2352_vm12, %v3248_v40  ;;  %v2873_v40 = vmul.f32 %v6804_v57, %v6707_v22  ;;  %v3232_v18 = vunpack.c.l.b16 %v2941_v33 }
 0x594   :  { %v3105_v48 = vpop.f32.mrf.mxu3 }
 0x595   :  { %v3402_v32 = vpack.c.bf16 %v3105_v48, %v3103_v54  ;;  %v2849_v48 = vmul.f32 %v6669_v8, %v6552_v13 }
 0x597   :  { %4423 = vmatmul.msk.bf16.gmra.mxu2 %vm1922_vm11, %v3402_v32  ;;  %v2913_v3 = vpack.c.bf16 %v2849_v48, %v2849_v48 }
 0x599   :  { %4392 = vmatmul.msk.bf16.gmra.mxu3 %vm2352_vm12, %v3029_v9  ;;  %v2937_v9 = vpack.c.bf16 %v2873_v40, %v2873_v40  ;;  %v3013_v45 = vunpack.c.l.b16 %v2913_v3 }
 0x59b   :  { %v3228_v22 = vunpack.c.l.b16 %v2937_v9 }
 0x59c   :  { %v3108_v56 = vpop.f32.mrf.mxu3 }
 0x59d   :  { %v3251_v43 = vpack.c.b16 %v3229_v58, %v3228_v22 }
 0x5a2   :  { %4405 = vmatmul.msk.bf16.gmra.mxu1 %vm2352_vm12, %v3249_v16  ;;  %v2851_v16 = vmul.f32 %v6669_v8, %v6566_v61 }
 0x5a4   :  { %v3110_v41 = vpop.f32.mrf.mxu3  ;;  %v2915_v37 = vpack.c.bf16 %v2851_v16, %v2851_v16 }
 0x5a5   :  { %v3403_v27 = vpack.c.bf16 %v3110_v41, %v3108_v56  ;;  %v3014_v56 = vunpack.c.l.b16 %v2914_v29  ;;  %v2940_v41 = vpack.c.bf16 %v2876_v2, %v2876_v2  ;;  %v2880_v29 = vmul.f32 %v6804_v57, %v6753_v10 }
 0x5a6   :  { %v3015_v14 = vunpack.c.l.b16 %v2915_v37  ;;  %v2881_v10 = vmul.f32 %v6804_v57, %v6761_v53  ;;  %v2883_v53 = vmul.f32 %v6804_v57, %v6776_v34 }
 0x5a7   :  { %4424 = vmatmul.msk.bf16.gmra.mxu2 %vm1922_vm11, %v3403_v27  ;;  %v3032_v4 = vpack.c.b16 %v3014_v56, %v3013_v45  ;;  %v7545_v27 = vld [vmem:[#allocation16_spill] sm:$0xff]  ;;  %v3231_v50 = vunpack.c.l.b16 %v2940_v41 }
 0x5a8   :  { %v2945_v41 = vpack.c.bf16 %v2881_v10, %v2881_v10 }
 0x5a9   :  { %4393 = vmatmul.msk.bf16.gmra.mxu3 %vm2352_vm12, %v3030_v44  ;;  %v2852_v44 = vmul.f32 %v6669_v8, %v7545_v27  ;;  %v3252_v39 = vpack.c.b16 %v3231_v50, %v3230_v11  ;;  %v2946_v27 = vpack.c.bf16 %v2882_v6, %v2882_v6 }
 0x5ab   :  { %v2916_v59 = vpack.c.bf16 %v2852_v44, %v2852_v44  ;;  %v3237_v11 = vunpack.c.l.b16 %v2946_v27 }
 0x5ac   :  { %v3113_v46 = vpop.f32.mrf.mxu3 }
 0x5ad   :  { %v3016_v49 = vunpack.c.l.b16 %v2916_v59 }
 0x5af   :  { %v6899_v54 = vpop.f32.mrf.mxu1 }
 0x5b2   :  { %4406 = vmatmul.msk.bf16.gmra.mxu1 %vm2352_vm12, %v3250_v30  ;;  %v2853_v30 = vmul.f32 %v6669_v8, %v7546_v47 }
 0x5b4   :  { %v3115_v62 = vpop.f32.mrf.mxu3  ;;  %v2917_v48 = vpack.c.bf16 %v2853_v30, %v2853_v30 }
 0x5b5   :  { %v3404_v1 = vpack.c.bf16 %v3115_v62, %v3113_v46  ;;  %v3033_v46 = vpack.c.b16 %v3016_v49, %v3015_v14  ;;  %v2942_v62 = vpack.c.bf16 %v2878_v51, %v2878_v51 }
 0x5b6   :  { %v3017_v55 = vunpack.c.l.b16 %v2917_v48 }
 0x5b7   :  { %4425 = vmatmul.msk.bf16.gmra.mxu2 %vm1922_vm11, %v3404_v1  ;;  %v6908_v15 = vpop.f32.mrf.mxu1  ;;  %v7547_v1 = vld [vmem:[#allocation4_spill] sm:$0xff]  ;;  %v3233_v26 = vunpack.c.l.b16 %v2942_v62  ;;  %v2885_v62 = vmul.f32 %v6804_v57, %v6784_v19 }
 0x5b8   :  { %v3417_v32 = vpack.c.bf16 %v6908_v15, %v6899_v54 }
 0x5b9   :  { %4394 = vmatmul.msk.bf16.gmra.mxu3 %vm2352_vm12, %v3031_v0  ;;  %v2854_v0 = vmul.f32 %v6669_v8, %v7547_v1  ;;  %v3253_v25 = vpack.c.b16 %v3233_v26, %v3232_v18  ;;  %v2879_v8 = vmul.f32 %v6804_v57, %v6746_v24  ;;  %v2886_v1 = vmul.f32 %v6804_v57, %v6788_v12 }
 0x5ba   :  { %v2949_v18 = vpack.c.bf16 %v2885_v62, %v2885_v62 }
 0x5bb   :  { %v2918_v20 = vpack.c.bf16 %v2854_v0, %v2854_v0  ;;  %v2943_v56 = vpack.c.bf16 %v2879_v8, %v2879_v8  ;;  %v2950_v26 = vpack.c.bf16 %v2886_v1, %v2886_v1 }
 0x5bc   :  { %v3118_v7 = vpop.f32.mrf.mxu3 }
 0x5bf   :  { %v6916_v31 = vpop.f32.mrf.mxu1 }
 0x5c2   :  { %4407 = vmatmul.msk.bf16.gmra.mxu1 %vm2352_vm12, %v3251_v43 }
 0x5c4   :  { %v3120_v52 = vpop.f32.mrf.mxu3 }
 0x5c5   :  { %v3405_v13 = vpack.c.bf16 %v3120_v52, %v3118_v7  ;;  %v3018_v7 = vunpack.c.l.b16 %v2918_v20  ;;  %v2944_v52 = vpack.c.bf16 %v2880_v29, %v2880_v29  ;;  %v3240_v20 = vunpack.c.l.b16 %v2949_v18 }
 0x5c7   :  { %4426 = vmatmul.msk.bf16.gmra.mxu2 %vm1922_vm11, %v3405_v13  ;;  %v6925_v35 = vpop.f32.mrf.mxu1  ;;  %v3034_v3 = vpack.c.b16 %v3018_v7, %v3017_v55  ;;  %v3235_v5 = vunpack.c.l.b16 %v2944_v52 }
 0x5c8   :  { %v3418_v60 = vpack.c.bf16 %v6925_v35, %v6916_v31 }
 0x5c9   :  { %4395 = vmatmul.msk.bf16.gmra.mxu3 %vm2352_vm12, %v3032_v4  ;;  %v3234_v4 = vunpack.c.l.b16 %v2943_v56 }
 0x5cb   :  { %v3254_v2 = vpack.c.b16 %v3235_v5, %v3234_v4 }
 0x5cc   :  { %v3123_v36 = vpop.f32.mrf.mxu3 }
 0x5cf   :  { %v6933_v38 = vpop.f32.mrf.mxu1 }
 0x5d2   :  { %4408 = vmatmul.msk.bf16.gmra.mxu1 %vm2352_vm12, %v3252_v39  ;;  %v6974_v39 = vld [vmem:[%s7350_s9] ss:$0 sm:$0xff] }
 0x5d4   :  { %v3125_v42 = vpop.f32.mrf.mxu3 }
 0x5d5   :  { %v3406_v61 = vpack.c.bf16 %v3125_v42, %v3123_v36  ;;  %v3236_v36 = vunpack.c.l.b16 %v2945_v41  ;;  %v2947_v42 = vpack.c.bf16 %v2883_v53, %v2883_v53 }
 0x5d7   :  { %4427 = vmatmul.msk.bf16.gmra.mxu2 %vm1922_vm11, %v3406_v61  ;;  %v6942_v28 = vpop.f32.mrf.mxu1  ;;  %v3255_v50 = vpack.c.b16 %v3237_v11, %v3236_v36  ;;  %v2948_v61 = vpack.c.bf16 %v2884_v21, %v2884_v21  ;;  %v3238_v23 = vunpack.c.l.b16 %v2947_v42 }
 0x5d8   :  { %v3419_v63 = vpack.c.bf16 %v6942_v28, %v6933_v38 }
 0x5d9   :  { %4396 = vmatmul.msk.bf16.gmra.mxu3 %vm2352_vm12, %v3033_v46  ;;  %v3239_v51 = vunpack.c.l.b16 %v2948_v61 }
 0x5db   :  { %v3256_v30 = vpack.c.b16 %v3239_v51, %v3238_v23 }
 0x5dc   :  { %v3128_v40 = vpop.f32.mrf.mxu3 }
 0x5df   :  { %v6950_v9 = vpop.f32.mrf.mxu1 }
 0x5e2   :  { %4409 = vmatmul.msk.bf16.gmra.mxu1 %vm2352_vm12, %v3253_v25  ;;  %v3241_v25 = vunpack.c.l.b16 %v2950_v26 }
 0x5e4   :  { %v3130_v22 = vpop.f32.mrf.mxu3  ;;  %v3257_v7 = vpack.c.b16 %v3241_v25, %v3240_v20 }
 0x5e5   :  { %v3407_v58 = vpack.c.bf16 %v3130_v22, %v3128_v40 }
 0x5e7   :  { %4428 = vmatmul.msk.bf16.gmra.mxu2 %vm1922_vm11, %v3407_v58  ;;  %v6959_v43 = vpop.f32.mrf.mxu1 }
 0x5e8   :  { %v3420_v45 = vpack.c.bf16 %v6959_v43, %v6950_v9 }
 0x5e9   :  { %4397 = vmatmul.msk.bf16.gmra.mxu3 %vm2352_vm12, %v3034_v3 }
 0x5ec   :  { %v3133_v13 = vpop.f32.mrf.mxu3 }
 0x5ef   :  { %v3341_v18 = vpop.f32.mrf.mxu1 }
 0x5f2   :  { %4410 = vmatmul.msk.bf16.gmra.mxu1 %vm2352_vm12, %v3254_v2 }
 0x5f4   :  { %v3135_v16 = vpop.f32.mrf.mxu3 }
 0x5f5   :  { %v3408_v24 = vpack.c.bf16 %v3135_v16, %v3133_v13 }
 0x5f7   :  { %4429 = vmatmul.msk.bf16.gmra.mxu2 %vm1922_vm11, %v3408_v24  ;;  %v3343_v54 = vpop.f32.mrf.mxu1 }
 0x5fc   :  { %v3138_v44 = vpop.f32.mrf.mxu3 }
 0x5ff   :  { %v3346_v20 = vpop.f32.mrf.mxu1 }
 0x602   :  { %4411 = vmatmul.msk.bf16.gmra.mxu1 %vm2352_vm12, %v3255_v50 }
 0x604   :  { %v3140_v37 = vpop.f32.mrf.mxu3 }
 0x605   :  { %v3409_v59 = vpack.c.bf16 %v3140_v37, %v3138_v44 }
 0x607   :  { %4430 = vmatmul.msk.bf16.gmra.mxu2 %vm1922_vm11, %v3409_v59  ;;  %v3348_v31 = vpop.f32.mrf.mxu1 }
 0x60a   :  { %v3558_v14 = vpop.f32.mrf.mxu2 }
 0x60b   :  { %v3559_v49 = vadd.f32 %v6974_v39, %v3558_v14 }
 0x60c   :  { %v3143_v46 = vpop.f32.mrf.mxu3 }
 0x60d   :  { %3718 = vst.msk [vmem:[%s7351_s10] sm:$0xff] %vm976_vm0, %v3559_v49 }
 0x612   :  { %v3560_v47 = vpop.f32.mrf.mxu2  ;;  %4412 = vmatmul.msk.bf16.gmra.mxu1 %vm2352_vm12, %v3256_v30 }
 0x613   :  { %v3561_v34 = vadd.f32 %v6974_v39, %v3560_v47 }
 0x614   :  { %v3145_v33 = vpop.f32.mrf.mxu3 }
 0x615   :  { %3719 = vst.msk [vmem:[%s7351_s10 + $0x8] sm:$0xff] %vm976_vm0, %v3561_v34  ;;  %v3410_v17 = vpack.c.bf16 %v3145_v33, %v3143_v46 }
 0x617   :  { %4431 = vmatmul.msk.bf16.gmra.mxu2 %vm1922_vm11, %v3410_v17 }
 0x61a   :  { %v3563_v0 = vpop.f32.mrf.mxu2 }
 0x61b   :  { %v3564_v40 = vadd.f32 %v6974_v39, %v3563_v0 }
 0x61c   :  { %v3148_v48 = vpop.f32.mrf.mxu3 }
 0x61d   :  { %3720 = vst.msk [vmem:[%s7351_s10 + $0x10] sm:$0xff] %vm976_vm0, %v3564_v40 }
 0x622   :  { %v3565_v55 = vpop.f32.mrf.mxu2  ;;  %4413 = vmatmul.msk.bf16.gmra.mxu1 %vm2352_vm12, %v3257_v7 }
 0x623   :  { %v3566_v19 = vadd.f32 %v6974_v39, %v3565_v55 }
 0x624   :  { %v3150_v22 = vpop.f32.mrf.mxu3 }
 0x625   :  { %3721 = vst.msk [vmem:[%s7351_s10 + $0x18] sm:$0xff] %vm976_vm0, %v3566_v19  ;;  %v3411_v12 = vpack.c.bf16 %v3150_v22, %v3148_v48  ;;  %v3351_v22 = vpop.f32.mrf.mxu1 }
 0x627   :  { %4432 = vmatmul.msk.bf16.gmra.mxu2 %vm1922_vm11, %v3411_v12 }
 0x62a   :  { %v3568_v57 = vpop.f32.mrf.mxu2 }
 0x62b   :  { %v3569_v58 = vadd.f32 %v6974_v39, %v3568_v57 }
 0x62c   :  { %v3153_v3 = vpop.f32.mrf.mxu3 }
 0x62d   :  { %3722 = vst.msk [vmem:[%s7351_s10 + $0x20] sm:$0xff] %vm976_vm0, %v3569_v58  ;;  %v3421_v58 = vpack.c.bf16 %v3343_v54, %v3341_v18 }
 0x632   :  { %v3570_v8 = vpop.f32.mrf.mxu2 }
 0x633   :  { %v3571_v29 = vadd.f32 %v6974_v39, %v3570_v8 }
 0x634   :  { %v3155_v56 = vpop.f32.mrf.mxu3 }
 0x635   :  { %3723 = vst.msk [vmem:[%s7351_s10 + $0x28] sm:$0xff] %vm976_vm0, %v3571_v29  ;;  %v3412_v52 = vpack.c.bf16 %v3155_v56, %v3153_v3  ;;  %v3422_v56 = vpack.c.bf16 %v3348_v31, %v3346_v20 }
 0x637   :  { %4433 = vmatmul.msk.bf16.gmra.mxu2 %vm1922_vm11, %v3412_v52 }
 0x63a   :  { %v3573_v13 = vpop.f32.mrf.mxu2 }
 0x63b   :  { %v3574_v4 = vadd.f32 %v6974_v39, %v3573_v13 }
 0x63c   :  { %v3158_v5 = vpop.f32.mrf.mxu3 }
 0x63d   :  { %3724 = vst.msk [vmem:[%s7351_s10 + $0x30] sm:$0xff] %vm976_vm0, %v3574_v4 }
 0x642   :  { %v3575_v2 = vpop.f32.mrf.mxu2 }
 0x643   :  { %v3576_v16 = vadd.f32 %v6974_v39, %v3575_v2 }
 0x644   :  { %v3160_v24 = vpop.f32.mrf.mxu3 }
 0x645   :  { %3725 = vst.msk [vmem:[%s7351_s10 + $0x38] sm:$0xff] %vm976_vm0, %v3576_v16  ;;  %v3413_v10 = vpack.c.bf16 %v3160_v24, %v3158_v5 }
 0x647   :  { %4434 = vmatmul.msk.bf16.gmra.mxu2 %vm1922_vm11, %v3413_v10 }
 0x64a   :  { %v3578_v6 = vpop.f32.mrf.mxu2 }
 0x64b   :  { %v3579_v41 = vadd.f32 %v6974_v39, %v3578_v6 }
 0x64c   :  { %v3163_v27 = vpop.f32.mrf.mxu3 }
 0x64d   :  { %3726 = vst.msk [vmem:[%s7351_s10 + $0x40] sm:$0xff] %vm976_vm0, %v3579_v41 }
 0x652   :  { %v3580_v44 = vpop.f32.mrf.mxu2 }
 0x653   :  { %v3581_v36 = vadd.f32 %v6974_v39, %v3580_v44 }
 0x654   :  { %v3165_v11 = vpop.f32.mrf.mxu3 }
 0x655   :  { %3727 = vst.msk [vmem:[%s7351_s10 + $0x48] sm:$0xff] %vm976_vm0, %v3581_v36  ;;  %v3414_v50 = vpack.c.bf16 %v3165_v11, %v3163_v27 }
 0x657   :  { %4435 = vmatmul.msk.bf16.gmra.mxu2 %vm1922_vm11, %v3414_v50 }
 0x65a   :  { %v3583_v37 = vpop.f32.mrf.mxu2 }
 0x65b   :  { %v3584_v59 = vadd.f32 %v6974_v39, %v3583_v37 }
 0x65c   :  { %v3168_v53 = vpop.f32.mrf.mxu3 }
 0x65d   :  { %3728 = vst.msk [vmem:[%s7351_s10 + $0x50] sm:$0xff] %vm976_vm0, %v3584_v59 }
 0x662   :  { %v3585_v21 = vpop.f32.mrf.mxu2 }
 0x663   :  { %v3586_v14 = vadd.f32 %v6974_v39, %v3585_v21 }
 0x664   :  { %v3170_v49 = vpop.f32.mrf.mxu3 }
 0x665   :  { %3729 = vst.msk [vmem:[%s7351_s10 + $0x58] sm:$0xff] %vm976_vm0, %v3586_v14  ;;  %v3415_v42 = vpack.c.bf16 %v3170_v49, %v3168_v53 }
 0x667   :  { %4436 = vmatmul.msk.bf16.gmra.mxu2 %vm1922_vm11, %v3415_v42 }
 0x66a   :  { %v3588_v61 = vpop.f32.mrf.mxu2 }
 0x66b   :  { %v3589_v46 = vadd.f32 %v6974_v39, %v3588_v61 }
 0x66c   :  { %v3173_v23 = vpop.f32.mrf.mxu3 }
 0x66d   :  { %3730 = vst.msk [vmem:[%s7351_s10 + $0x60] sm:$0xff] %vm976_vm0, %v3589_v46 }
 0x672   :  { %v3590_v51 = vpop.f32.mrf.mxu2 }
 0x673   :  { %v3591_v47 = vadd.f32 %v6974_v39, %v3590_v51 }
 0x674   :  { %v3175_v30 = vpop.f32.mrf.mxu3 }
 0x675   :  { %3731 = vst.msk [vmem:[%s7351_s10 + $0x68] sm:$0xff] %vm976_vm0, %v3591_v47  ;;  %v3416_v34 = vpack.c.bf16 %v3175_v30, %v3173_v23 }
 0x677   :  { %4437 = vmatmul.msk.bf16.gmra.mxu2 %vm1922_vm11, %v3416_v34 }
 0x67a   :  { %v3593_v33 = vpop.f32.mrf.mxu2 }
 0x67b   :  { %v3594_v17 = vadd.f32 %v6974_v39, %v3593_v33 }
 0x67d   :  { %3732 = vst.msk [vmem:[%s7351_s10 + $0x70] sm:$0xff] %vm976_vm0, %v3594_v17 }
 0x682   :  { %v3595_v62 = vpop.f32.mrf.mxu2 }
 0x683   :  { %v3596_v1 = vadd.f32 %v6974_v39, %v3595_v62 }
 0x685   :  { %3733 = vst.msk [vmem:[%s7351_s10 + $0x78] sm:$0xff] %vm976_vm0, %v3596_v1 }
 0x687   :  { %4438 = vmatmul.msk.bf16.gmra.mxu2 %vm1922_vm11, %v3417_v32 }
 0x68a   :  { %v3598_v0 = vpop.f32.mrf.mxu2 }
 0x68b   :  { %v3599_v40 = vadd.f32 %v6974_v39, %v3598_v0 }
 0x68d   :  { %3734 = vst.msk [vmem:[%s7351_s10 + $0x80] sm:$0xff] %vm976_vm0, %v3599_v40 }
 0x692   :  { %v3600_v26 = vpop.f32.mrf.mxu2 }
 0x693   :  { %v3601_v48 = vadd.f32 %v6974_v39, %v3600_v26 }
 0x695   :  { %3735 = vst.msk [vmem:[%s7351_s10 + $0x88] sm:$0xff] %vm976_vm0, %v3601_v48 }
 0x697   :  { %4439 = vmatmul.msk.bf16.gmra.mxu2 %vm1922_vm11, %v3418_v60 }
 0x69a   :  { %v3603_v15 = vpop.f32.mrf.mxu2 }
 0x69b   :  { %v3604_v32 = vadd.f32 %v6974_v39, %v3603_v15 }
 0x69d   :  { %3736 = vst.msk [vmem:[%s7351_s10 + $0x90] sm:$0xff] %vm976_vm0, %v3604_v32 }
 0x6a2   :  { %v3605_v25 = vpop.f32.mrf.mxu2 }
 0x6a3   :  { %v3606_v55 = vadd.f32 %v6974_v39, %v3605_v25 }
 0x6a5   :  { %3737 = vst.msk [vmem:[%s7351_s10 + $0x98] sm:$0xff] %vm976_vm0, %v3606_v55 }
 0x6a7   :  { %4440 = vmatmul.msk.bf16.gmra.mxu2 %vm1922_vm11, %v3419_v63  ;;  %v3353_v63 = vpop.f32.mrf.mxu1 }
 0x6a8   :  { %v3423_v16 = vpack.c.bf16 %v3353_v63, %v3351_v22 }
 0x6aa   :  { %v3608_v35 = vpop.f32.mrf.mxu2 }
 0x6ab   :  { %v3609_v60 = vadd.f32 %v6974_v39, %v3608_v35 }
 0x6ad   :  { %3738 = vst.msk [vmem:[%s7351_s10 + $0xa0] sm:$0xff] %vm976_vm0, %v3609_v60 }
 0x6af   :  { %v3356_v9 = vpop.f32.mrf.mxu1 }
 0x6b2   :  { %v3610_v7 = vpop.f32.mrf.mxu2 }
 0x6b3   :  { %v3611_v19 = vadd.f32 %v6974_v39, %v3610_v7 }
 0x6b5   :  { %3739 = vst.msk [vmem:[%s7351_s10 + $0xa8] sm:$0xff] %vm976_vm0, %v3611_v19 }
 0x6b7   :  { %4441 = vmatmul.msk.bf16.gmra.mxu2 %vm1922_vm11, %v3420_v45  ;;  %v3358_v3 = vpop.f32.mrf.mxu1 }
 0x6b8   :  { %v3424_v36 = vpack.c.bf16 %v3358_v3, %v3356_v9 }
 0x6ba   :  { %v3613_v38 = vpop.f32.mrf.mxu2 }
 0x6bb   :  { %v3614_v28 = vadd.f32 %v6974_v39, %v3613_v38 }
 0x6bd   :  { %3740 = vst.msk [vmem:[%s7351_s10 + $0xb0] sm:$0xff] %vm976_vm0, %v3614_v28 }
 0x6bf   :  { %v3361_v4 = vpop.f32.mrf.mxu1 }
 0x6c2   :  { %v3615_v12 = vpop.f32.mrf.mxu2 }
 0x6c3   :  { %v3616_v57 = vadd.f32 %v6974_v39, %v3615_v12 }
 0x6c5   :  { %3741 = vst.msk [vmem:[%s7351_s10 + $0xb8] sm:$0xff] %vm976_vm0, %v3616_v57 }
 0x6c7   :  { %4442 = vmatmul.msk.bf16.gmra.mxu2 %vm1922_vm11, %v3421_v58  ;;  %v3363_v24 = vpop.f32.mrf.mxu1 }
 0x6c8   :  { %v3425_v14 = vpack.c.bf16 %v3363_v24, %v3361_v4 }
 0x6ca   :  { %v3618_v43 = vpop.f32.mrf.mxu2 }
 0x6cb   :  { %v3619_v45 = vadd.f32 %v6974_v39, %v3618_v43 }
 0x6cd   :  { %3742 = vst.msk [vmem:[%s7351_s10 + $0xc0] sm:$0xff] %vm976_vm0, %v3619_v45 }
 0x6cf   :  { %v3366_v41 = vpop.f32.mrf.mxu1 }
 0x6d2   :  { %v3620_v8 = vpop.f32.mrf.mxu2 }
 0x6d3   :  { %v3621_v29 = vadd.f32 %v6974_v39, %v3620_v8 }
 0x6d5   :  { %3743 = vst.msk [vmem:[%s7351_s10 + $0xc8] sm:$0xff] %vm976_vm0, %v3621_v29 }
 0x6d7   :  { %4443 = vmatmul.msk.bf16.gmra.mxu2 %vm1922_vm11, %v3422_v56  ;;  %v3368_v11 = vpop.f32.mrf.mxu1 }
 0x6d8   :  { %v3426_v51 = vpack.c.bf16 %v3368_v11, %v3366_v41 }
 0x6da   :  { %v3623_v52 = vpop.f32.mrf.mxu2 }
 0x6db   :  { %v3624_v13 = vadd.f32 %v6974_v39, %v3623_v52 }
 0x6dd   :  { %3744 = vst.msk [vmem:[%s7351_s10 + $0xd0] sm:$0xff] %vm976_vm0, %v3624_v13 }
 0x6df   :  { %v3371_v21 = vpop.f32.mrf.mxu1 }
 0x6e2   :  { %v3625_v5 = vpop.f32.mrf.mxu2 }
 0x6e3   :  { %v3626_v2 = vadd.f32 %v6974_v39, %v3625_v5 }
 0x6e5   :  { %3745 = vst.msk [vmem:[%s7351_s10 + $0xd8] sm:$0xff] %vm976_vm0, %v3626_v2 }
 0x6e7   :  { %4444 = vmatmul.msk.bf16.gmra.mxu2 %vm1922_vm11, %v3423_v16  ;;  %v3373_v61 = vpop.f32.mrf.mxu1 }
 0x6e8   :  { %v3427_v1 = vpack.c.bf16 %v3373_v61, %v3371_v21 }
 0x6ea   :  { %v3628_v10 = vpop.f32.mrf.mxu2 }
 0x6eb   :  { %v3629_v6 = vadd.f32 %v6974_v39, %v3628_v10 }
 0x6ed   :  { %3746 = vst.msk [vmem:[%s7351_s10 + $0xe0] sm:$0xff] %vm976_vm0, %v3629_v6 }
 0x6ef   :  { %v3376_v47 = vpop.f32.mrf.mxu1 }
 0x6f2   :  { %v3630_v27 = vpop.f32.mrf.mxu2 }
 0x6f3   :  { %v3631_v44 = vadd.f32 %v6974_v39, %v3630_v27 }
 0x6f5   :  { %3747 = vst.msk [vmem:[%s7351_s10 + $0xe8] sm:$0xff] %vm976_vm0, %v3631_v44 }
 0x6f7   :  { %4445 = vmatmul.msk.bf16.gmra.mxu2 %vm1922_vm11, %v3424_v36  ;;  %v3378_v33 = vpop.f32.mrf.mxu1 }
 0x6f8   :  { %v3428_v54 = vpack.c.bf16 %v3378_v33, %v3376_v47 }
 0x6fa   :  { %v3633_v50 = vpop.f32.mrf.mxu2 }
 0x6fb   :  { %v3634_v37 = vadd.f32 %v6974_v39, %v3633_v50 }
 0x6fd   :  { %3748 = vst.msk [vmem:[%s7351_s10 + $0xf0] sm:$0xff] %vm976_vm0, %v3634_v37 }
 0x6ff   :  { %v3381_v18 = vpop.f32.mrf.mxu1 }
 0x702   :  { %v3635_v59 = vpop.f32.mrf.mxu2 }
 0x703   :  { %v3636_v53 = vadd.f32 %v6974_v39, %v3635_v59 }
 0x705   :  { %3749 = vst.msk [vmem:[%s7351_s10 + $0xf8] sm:$0xff] %vm976_vm0, %v3636_v53 }
 0x707   :  { %4446 = vmatmul.msk.bf16.gmra.mxu2 %vm1922_vm11, %v3425_v14  ;;  %v3383_v15 = vpop.f32.mrf.mxu1 }
 0x708   :  { %v3429_v35 = vpack.c.bf16 %v3383_v15, %v3381_v18 }
 0x70a   :  { %v3638_v49 = vpop.f32.mrf.mxu2 }
 0x70b   :  { %v3639_v42 = vadd.f32 %v6974_v39, %v3638_v49 }
 0x70d   :  { %3750 = vst.msk [vmem:[%s7351_s10 + $0x100] sm:$0xff] %vm976_vm0, %v3639_v42 }
 0x70f   :  { %v3386_v25 = vpop.f32.mrf.mxu1 }
 0x712   :  { %v3640_v46 = vpop.f32.mrf.mxu2 }
 0x713   :  { %v3641_v23 = vadd.f32 %v6974_v39, %v3640_v46 }
 0x715   :  { %3751 = vst.msk [vmem:[%s7351_s10 + $0x108] sm:$0xff] %vm976_vm0, %v3641_v23 }
 0x717   :  { %4447 = vmatmul.msk.bf16.gmra.mxu2 %vm1922_vm11, %v3426_v51  ;;  %v3388_v60 = vpop.f32.mrf.mxu1 }
 0x718   :  { %v3430_v63 = vpack.c.bf16 %v3388_v60, %v3386_v25 }
 0x71a   :  { %v3643_v30 = vpop.f32.mrf.mxu2 }
 0x71b   :  { %v3644_v34 = vadd.f32 %v6974_v39, %v3643_v30 }
 0x71d   :  { %3752 = vst.msk [vmem:[%s7351_s10 + $0x110] sm:$0xff] %vm976_vm0, %v3644_v34 }
 0x71f   :  { %v3391_v28 = vpop.f32.mrf.mxu1 }
 0x722   :  { %v3645_v17 = vpop.f32.mrf.mxu2 }
 0x723   :  { %v3646_v62 = vadd.f32 %v6974_v39, %v3645_v17 }
 0x725   :  { %3753 = vst.msk [vmem:[%s7351_s10 + $0x118] sm:$0xff] %vm976_vm0, %v3646_v62 }
 0x727   :  { %4448 = vmatmul.msk.bf16.gmra.mxu2 %vm1922_vm11, %v3427_v1  ;;  %v3393_v58 = vpop.f32.mrf.mxu1 }
 0x728   :  { %v3431_v45 = vpack.c.bf16 %v3393_v58, %v3391_v28 }
 0x72a   :  { %v3648_v0 = vpop.f32.mrf.mxu2 }
 0x72b   :  { %v3649_v40 = vadd.f32 %v6974_v39, %v3648_v0 }
 0x72d   :  { %3754 = vst.msk [vmem:[%s7351_s10 + $0x120] sm:$0xff] %vm976_vm0, %v3649_v40 }
 0x72f   :  { %v3396_v3 = vpop.f32.mrf.mxu1 }
 0x732   :  { %v3650_v26 = vpop.f32.mrf.mxu2 }
 0x733   :  { %v3651_v48 = vadd.f32 %v6974_v39, %v3650_v26 }
 0x735   :  { %3755 = vst.msk [vmem:[%s7351_s10 + $0x128] sm:$0xff] %vm976_vm0, %v3651_v48 }
 0x737   :  { %4449 = vmatmul.msk.bf16.gmra.mxu2 %vm1922_vm11, %v3428_v54  ;;  %v3398_v56 = vpop.f32.mrf.mxu1 }
 0x738   :  { %v3432_v4 = vpack.c.bf16 %v3398_v56, %v3396_v3 }
 0x73a   :  { %v3653_v32 = vpop.f32.mrf.mxu2 }
 0x73b   :  { %v3654_v20 = vadd.f32 %v6974_v39, %v3653_v32 }
 0x73d   :  { %3756 = vst.msk [vmem:[%s7351_s10 + $0x130] sm:$0xff] %vm976_vm0, %v3654_v20 }
 0x742   :  { %v3655_v55 = vpop.f32.mrf.mxu2 }
 0x743   :  { %v3656_v31 = vadd.f32 %v6974_v39, %v3655_v55 }
 0x745   :  { %3757 = vst.msk [vmem:[%s7351_s10 + $0x138] sm:$0xff] %vm976_vm0, %v3656_v31 }
 0x747   :  { %4450 = vmatmul.msk.bf16.gmra.mxu2 %vm1922_vm11, %v3429_v35 }
 0x74a   :  { %v3658_v7 = vpop.f32.mrf.mxu2 }
 0x74b   :  { %v3659_v19 = vadd.f32 %v6974_v39, %v3658_v7 }
 0x74d   :  { %3758 = vst.msk [vmem:[%s7351_s10 + $0x140] sm:$0xff] %vm976_vm0, %v3659_v19 }
 0x752   :  { %v3660_v22 = vpop.f32.mrf.mxu2 }
 0x753   :  { %v3661_v38 = vadd.f32 %v6974_v39, %v3660_v22 }
 0x755   :  { %3759 = vst.msk [vmem:[%s7351_s10 + $0x148] sm:$0xff] %vm976_vm0, %v3661_v38 }
 0x757   :  { %4451 = vmatmul.msk.bf16.gmra.mxu2 %vm1922_vm11, %v3430_v63 }
 0x75a   :  { %v3663_v12 = vpop.f32.mrf.mxu2 }
 0x75b   :  { %v3664_v57 = vadd.f32 %v6974_v39, %v3663_v12 }
 0x75d   :  { %3760 = vst.msk [vmem:[%s7351_s10 + $0x150] sm:$0xff] %vm976_vm0, %v3664_v57 }
 0x762   :  { %v3665_v9 = vpop.f32.mrf.mxu2 }
 0x763   :  { %v3666_v43 = vadd.f32 %v6974_v39, %v3665_v9 }
 0x765   :  { %3761 = vst.msk [vmem:[%s7351_s10 + $0x158] sm:$0xff] %vm976_vm0, %v3666_v43 }
 0x767   :  { %4452 = vmatmul.msk.bf16.gmra.mxu2 %vm1922_vm11, %v3431_v45 }
 0x76a   :  { %v3668_v8 = vpop.f32.mrf.mxu2 }
 0x76b   :  { %v3669_v29 = vadd.f32 %v6974_v39, %v3668_v8 }
 0x76d   :  { %3762 = vst.msk [vmem:[%s7351_s10 + $0x160] sm:$0xff] %vm976_vm0, %v3669_v29 }
 0x772   :  { %v3670_v52 = vpop.f32.mrf.mxu2 }
 0x773   :  { %v3671_v13 = vadd.f32 %v6974_v39, %v3670_v52 }
 0x775   :  { %3763 = vst.msk [vmem:[%s7351_s10 + $0x168] sm:$0xff] %vm976_vm0, %v3671_v13 }
 0x777   :  { %4453 = vmatmul.msk.bf16.gmra.mxu2 %vm1922_vm11, %v3432_v4 }
 0x77a   :  { %v3673_v5 = vpop.f32.mrf.mxu2 }
 0x77b   :  { %v3674_v2 = vadd.f32 %v6974_v39, %v3673_v5 }
 0x77d   :  { %3764 = vst.msk [vmem:[%s7351_s10 + $0x170] sm:$0xff] %vm976_vm0, %v3674_v2 }
 0x782   :  { %v3675_v16 = vpop.f32.mrf.mxu2 }
 0x783   :  { %v3676_v24 = vadd.f32 %v6974_v39, %v3675_v16 }
 0x785   :  { %3765 = vst.msk [vmem:[%s7351_s10 + $0x178] sm:$0xff] %vm976_vm0, %v3676_v24 }
 0x78a   :  { %v3678_v10 = vpop.f32.mrf.mxu2 }
 0x78b   :  { %v3679_v6 = vadd.f32 %v6974_v39, %v3678_v10 }
 0x78d   :  { %3766 = vst.msk [vmem:[%s7351_s10 + $0x180] sm:$0xff] %vm976_vm0, %v3679_v6 }
 0x792   :  { %v3680_v41 = vpop.f32.mrf.mxu2 }
 0x793   :  { %v3681_v27 = vadd.f32 %v6974_v39, %v3680_v41 }
 0x795   :  { %3767 = vst.msk [vmem:[%s7351_s10 + $0x188] sm:$0xff] %vm976_vm0, %v3681_v27 }
 0x79a   :  { %v3683_v44 = vpop.f32.mrf.mxu2 }
 0x79b   :  { %v3684_v36 = vadd.f32 %v6974_v39, %v3683_v44 }
 0x79d   :  { %3768 = vst.msk [vmem:[%s7351_s10 + $0x190] sm:$0xff] %vm976_vm0, %v3684_v36 }
 0x7a2   :  { %v3685_v11 = vpop.f32.mrf.mxu2 }
 0x7a3   :  { %v3686_v50 = vadd.f32 %v6974_v39, %v3685_v11 }
 0x7a5   :  { %3769 = vst.msk [vmem:[%s7351_s10 + $0x198] sm:$0xff] %vm976_vm0, %v3686_v50 }
 0x7aa   :  { %v3688_v37 = vpop.f32.mrf.mxu2 }
 0x7ab   :  { %v3689_v59 = vadd.f32 %v6974_v39, %v3688_v37 }
 0x7ad   :  { %3770 = vst.msk [vmem:[%s7351_s10 + $0x1a0] sm:$0xff] %vm976_vm0, %v3689_v59 }
 0x7b2   :  { %v3690_v53 = vpop.f32.mrf.mxu2 }
 0x7b3   :  { %v3691_v21 = vadd.f32 %v6974_v39, %v3690_v53 }
 0x7b5   :  { %3771 = vst.msk [vmem:[%s7351_s10 + $0x1a8] sm:$0xff] %vm976_vm0, %v3691_v21 }
 0x7ba   :  { %v3693_v14 = vpop.f32.mrf.mxu2 }
 0x7bb   :  { %v3694_v49 = vadd.f32 %v6974_v39, %v3693_v14 }
 0x7bd   :  { %3772 = vst.msk [vmem:[%s7351_s10 + $0x1b0] sm:$0xff] %vm976_vm0, %v3694_v49 }
 0x7c2   :  { %v3695_v42 = vpop.f32.mrf.mxu2 }
 0x7c3   :  { %v3696_v61 = vadd.f32 %v6974_v39, %v3695_v42 }
 0x7c5   :  { %3773 = vst.msk [vmem:[%s7351_s10 + $0x1b8] sm:$0xff] %vm976_vm0, %v3696_v61 }
 0x7ca   :  { %v3698_v46 = vpop.f32.mrf.mxu2 }
 0x7cb   :  { %v3699_v23 = vadd.f32 %v6974_v39, %v3698_v46 }
 0x7cd   :  { %3774 = vst.msk [vmem:[%s7351_s10 + $0x1c0] sm:$0xff] %vm976_vm0, %v3699_v23 }
 0x7d2   :  { %v3700_v51 = vpop.f32.mrf.mxu2 }
 0x7d3   :  { %v3701_v47 = vadd.f32 %v6974_v39, %v3700_v51 }
 0x7d5   :  { %3775 = vst.msk [vmem:[%s7351_s10 + $0x1c8] sm:$0xff] %vm976_vm0, %v3701_v47 }
 0x7da   :  { %v3703_v30 = vpop.f32.mrf.mxu2 }
 0x7db   :  { %v3704_v34 = vadd.f32 %v6974_v39, %v3703_v30 }
 0x7dd   :  { %3776 = vst.msk [vmem:[%s7351_s10 + $0x1d0] sm:$0xff] %vm976_vm0, %v3704_v34 }
 0x7e2   :  { %v3705_v33 = vpop.f32.mrf.mxu2 }
 0x7e3   :  { %v3706_v17 = vadd.f32 %v6974_v39, %v3705_v33 }
 0x7e5   :  { %3777 = vst.msk [vmem:[%s7351_s10 + $0x1d8] sm:$0xff] %vm976_vm0, %v3706_v17 }
 0x7ea   :  { %v3708_v62 = vpop.f32.mrf.mxu2 }
 0x7eb   :  { %v3709_v1 = vadd.f32 %v6974_v39, %v3708_v62 }
 0x7ed   :  { %3778 = vst.msk [vmem:[%s7351_s10 + $0x1e0] sm:$0xff] %vm976_vm0, %v3709_v1 }
 0x7f2   :  { %v3710_v0 = vpop.f32.mrf.mxu2 }
 0x7f3   :  { %v3711_v40 = vadd.f32 %v6974_v39, %v3710_v0 }
 0x7f5   :  { %3779 = vst.msk [vmem:[%s7351_s10 + $0x1e8] sm:$0xff] %vm976_vm0, %v3711_v40 }
 0x7fa   :  { %v3713_v18 = vpop.f32.mrf.mxu2 }
 0x7fb   :  { %v3714_v26 = vadd.f32 %v6974_v39, %v3713_v18 }
 0x7fd   :  { %3780 = vst.msk [vmem:[%s7351_s10 + $0x1f0] sm:$0xff] %vm976_vm0, %v3714_v26 }
 0x802   :  { %v3715_v48 = vpop.f32.mrf.mxu2 }
 0x803   :  { %v3716_v54 = vadd.f32 %v6974_v39, %v3715_v48 }
 0x805   :  { %3781 = vst.msk [vmem:[%s7351_s10 + $0x1f8] sm:$0xff] %vm976_vm0, %v3716_v54 }

</bundles_post_ra>
